<compile_context>
chip_gen: v7x
topology: tpu7x:2x2x1
jax: 0.10.0
libtpu: 0.0.40
codegen_flags: <defaults>
</compile_context>

<pallas_src>
import math
from functools import partial

import numpy as np
import jax
import jax.numpy as jnp
from jax.experimental import pallas as pl
from jax.experimental.pallas import tpu as pltpu

BN_EPS = 1e-5
CONV_CFG = [(3, 16), (16, 32), (32, 48)]      # (Cin, Cout) per stage, 4x4/s2/p1


# ----------------------------- in-kernel helpers ----------------------------

def _bn_relu(z, gb):
    """Training-mode BatchNorm (batch stats, biased var, single pass) + ReLU."""
    m = z.shape[0]
    s1 = jnp.sum(z, axis=0, keepdims=True)
    s2 = jnp.sum(z * z, axis=0, keepdims=True)
    mean = s1 * (1.0 / m)
    var = s2 * (1.0 / m) - mean * mean
    gamma = gb[0:1, :]
    beta = gb[1:2, :]
    scale = gamma * jax.lax.rsqrt(var + BN_EPS)
    shift = beta - mean * scale
    return jnp.maximum(z * scale + shift, 0.0)


def _conv_taps(y_b, g_ref, w_ref):
    """4x4 / stride-2 / pad-1 conv of a VMEM-resident activation.

    y_b:   (M_in, C_in) bf16, rows ordered (spatial, batch)
    g_ref: (16*M_out, M_in) constant 0/1 tap-gather matrix (bf16)
    w_ref: (16*C_in, C_out) conv weight, taps stacked along rows (bf16)
    """
    c_in = w_ref.shape[0] // 16
    c_out = w_ref.shape[1]
    m_out = g_ref.shape[0] // 16
    # One MXU pass gathers all 16 shifted copies of the activation.
    p = jnp.dot(g_ref[...], y_b, preferred_element_type=jnp.float32)
    z = jnp.zeros((m_out, c_out), jnp.float32)
    for t in range(16):                                    # static, unrolled
        pt = p[t * m_out:(t + 1) * m_out, :].astype(jnp.bfloat16)
        wt = w_ref[t * c_in:(t + 1) * c_in, :]
        z = z + jnp.dot(pt, wt, preferred_element_type=jnp.float32)
    return z


def _head(y_b, t_ref, mk_ref, h_ref, b_ref, e_ref):
    """EfficientHead with the adaptive pool folded into the fc weight.

    out[n, k] = sum_{s,c} y[s*N + n, c] * H[s*C + c, k] + b[k]
    computed as E @ ((y @ T) * Mask) @ H + b (all 2-D, MXU friendly).
    """
    ex = jnp.dot(y_b, t_ref[...], preferred_element_type=jnp.float32)
    ex = ex * mk_ref[...].astype(jnp.float32)
    q = jnp.dot(ex.astype(jnp.bfloat16), h_ref[...],
                preferred_element_type=jnp.float32)
    out = jnp.dot(e_ref[...], q, preferred_element_type=jnp.float32)
    return out + b_ref[...]


# --------------------------------- kernel -----------------------------------

def inverter_kernel(p1, w1, gb1, t1, mk1, h1, b1, e1,
                    g2, w2, gb2, t2, mk2, h2, b2, e2,
                    g3, w3, gb3, t3, mk3, h3, b3, e3,
                    o_ref):
    # ---- stage 1: conv1 (pre-built im2col patches) + BN + ReLU + head 1 ----
    z1 = jnp.dot(p1[...], w1[...], preferred_element_type=jnp.float32)
    y1 = _bn_relu(z1, gb1[...])
    y1b = y1.astype(jnp.bfloat16)
    o1 = _head(y1b, t1, mk1, h1, b1, e1)

    # ---- stage 2: conv2 (in-kernel gather) + BN + ReLU + head 2 ----
    z2 = _conv_taps(y1b, g2, w2)
    y2 = _bn_relu(z2, gb2[...])
    y2b = y2.astype(jnp.bfloat16)
    o2 = _head(y2b, t2, mk2, h2, b2, e2)

    # ---- stage 3: conv3 (in-kernel gather) + BN + ReLU + head 3 ----
    z3 = _conv_taps(y2b, g3, w3)
    y3 = _bn_relu(z3, gb3[...])
    y3b = y3.astype(jnp.bfloat16)
    o3 = _head(y3b, t3, mk3, h3, b3, e3)

    k1 = h1.shape[1]
    k2 = h2.shape[1]
    k3 = h3.shape[1]
    o_ref[:, 0:k1] = o1
    o_ref[:, k1:k1 + k2] = o2
    o_ref[:, k1 + k2:k1 + k2 + k3] = o3


# ---------------------- trace-time constants (numpy) -------------------------

def _adaptive_pool_matrix(in_size, out_size):
    """Row-stochastic matrix replicating nn.AdaptiveAvgPool2d's bin rule (1-D)."""
    P = np.zeros((out_size, in_size), np.float32)
    for i in range(out_size):
        a = (i * in_size) // out_size
        b = math.ceil((i + 1) * in_size / out_size)
        P[i, a:b] = 1.0 / (b - a)
    return P


def _pool_flatten_matrix(H, W, C, ps):
    """(H*W*C, C*ps*ps): rows (h, w, c); cols follow torch.flatten(NCHW pooled)."""
    Ph = _adaptive_pool_matrix(H, ps)
    Pw = _adaptive_pool_matrix(W, ps)
    T = np.einsum("ph,qw->hwpq", Ph, Pw)
    M = np.einsum("hwpq,cd->hwcdpq", T, np.eye(C, dtype=np.float32))
    return M.reshape(H * W * C, C * ps * ps)


def _conv_gather_matrix(oh_in, ow_in, n):
    """(16*M_out, M_in) 0/1 matrix: row (tap, s_out, n) selects source (s_in, n)."""
    oh_out, ow_out = oh_in // 2, ow_in // 2
    m_in = oh_in * ow_in * n
    m_out = oh_out * ow_out * n
    G = np.zeros((16 * m_out, m_in), np.float32)
    for kh in range(4):
        for kw in range(4):
            t = kh * 4 + kw
            for h2 in range(oh_out):
                h1 = 2 * h2 - 1 + kh
                if h1 < 0 or h1 >= oh_in:
                    continue
                for w2 in range(ow_out):
                    w1 = 2 * w2 - 1 + kw
                    if w1 < 0 or w1 >= ow_in:
                        continue
                    for b in range(n):
                        G[t * m_out + (h2 * ow_out + w2) * n + b,
                          (h1 * ow_in + w1) * n + b] = 1.0
    return G


def _head_constants(S, C, N):
    T = np.tile(np.eye(C, dtype=np.float32), (1, S))        # (C, S*C)
    mask = np.zeros((S * N, S * C), np.float32)
    for s in range(S):
        mask[s * N:(s + 1) * N, s * C:(s + 1) * C] = 1.0
    E = np.tile(np.eye(N, dtype=np.float32), (1, S))        # (N, S*N)
    return T, mask, E


def _im2col_stage1(x):
    """x: (N, H, W, C) -> (OH*OW*N, 16*C), rows (oh, ow, n), cols (kh, kw, c)."""
    N, H, W, C = x.shape
    OH, OW = H // 2, W // 2
    xp = jnp.pad(x, ((0, 0), (1, 1), (1, 1), (0, 0)))
    cols = [xp[:, i:i + 2 * OH:2, j:j + 2 * OW:2, :]
            for i in range(4) for j in range(4)]
    p = jnp.stack(cols, axis=3)                 # (N, OH, OW, 16, C)
    p = jnp.transpose(p, (1, 2, 0, 3, 4))       # (OH, OW, N, 16, C)
    return p.reshape(OH * OW * N, 16 * C)


# ------------------------------- parameters ---------------------------------

def init_params(key, n1, n2, n3, w_dim):
    heads = [(16, 7, n1), (32, 5, n2), (48, 3, n3)]
    keys = jax.random.split(key, 9)
    params = {}
    k = 0
    for i, (cin, cout) in enumerate(CONV_CFG, start=1):
        fan_in = cin * 16
        params[f"conv{i}_w"] = (
            jax.random.normal(keys[k], (4, 4, cin, cout), jnp.float32)
            / math.sqrt(fan_in))
        k += 1
        # conv bias omitted: training-mode BN cancels it exactly (dead compute).
        params[f"bn{i}_gamma"] = jnp.ones((1, cout), jnp.float32)
        params[f"bn{i}_beta"] = jnp.zeros((1, cout), jnp.float32)
    for i, (c, ps, n) in enumerate(heads, start=1):
        in_dim = c * ps * ps
        params[f"fc{i}_w"] = (
            jax.random.normal(keys[k], (in_dim, n * w_dim), jnp.float32)
            / math.sqrt(in_dim))
        k += 1
        params[f"fc{i}_b"] = (
            jax.random.normal(keys[k], (1, n * w_dim), jnp.float32) * 0.01)
        k += 1
    return params


# ------------------------------- forward pass --------------------------------

@partial(jax.jit, static_argnames=("n1", "n2", "n3", "w_dim"))
def inverter_forward(x_nchw, params, *, n1, n2, n3, w_dim):
    bf16 = jnp.bfloat16
    x = jnp.transpose(x_nchw, (0, 2, 3, 1)).astype(jnp.float32)   # NHWC
    N, H, W, _ = x.shape
    heads = [(16, 7, n1), (32, 5, n2), (48, 3, n3)]
    spatial = [(H // 2, W // 2), (H // 4, W // 4), (H // 8, W // 8)]

    # stage-1 im2col on the raw input only (stages 2/3 gather in-kernel).
    p1 = _im2col_stage1(x).astype(bf16)

    args = []
    for i in range(3):
        oh, ow = spatial[i]
        c, ps, n_head = heads[i]
        S = oh * ow
        cin = CONV_CFG[i][0]

        if i == 0:
            conv_in = p1
        else:
            oh_in, ow_in = spatial[i - 1]
            conv_in = jnp.asarray(_conv_gather_matrix(oh_in, ow_in, N), bf16)

        wmat = params[f"conv{i+1}_w"].reshape(16 * cin, c).astype(bf16)
        gb = jnp.concatenate(
            [params[f"bn{i+1}_gamma"], params[f"bn{i+1}_beta"]], axis=0)

        # Fold adaptive-avg-pool into the fc weight (pool is linear -> exact).
        poolmat = jnp.asarray(_pool_flatten_matrix(oh, ow, c, ps))
        hmat = jnp.dot(poolmat, params[f"fc{i+1}_w"]).astype(bf16)   # (S*C, K)
        bvec = params[f"fc{i+1}_b"]
        tmat, mask, emat = _head_constants(S, c, N)

        args += [conv_in, wmat, gb,
                 jnp.asarray(tmat, bf16), jnp.asarray(mask, bf16),
                 hmat, bvec, jnp.asarray(emat)]

    k_total = (n1 + n2 + n3) * w_dim
    out = pl.pallas_call(
        inverter_kernel,
        out_shape=jax.ShapeDtypeStruct((N, k_total), jnp.float32),
        compiler_params=pltpu.CompilerParams(
            vmem_limit_bytes=32 * 1024 * 1024),
    )(*args)
    return out.reshape(N, n1 + n2 + n3, w_dim)


# ----------------------- pure-JAX reference (for checking) -------------------

def _reference_forward(x_nchw, params, n1, n2, n3, w_dim):
    x = jnp.transpose(x_nchw, (0, 2, 3, 1)).astype(jnp.float32)
    heads = [(16, 7, n1), (32, 5, n2), (48, 3, n3)]
    outs = []
    for i in range(3):
        w = params[f"conv{i+1}_w"]                       # (4,4,Cin,Cout)
        z = jax.lax.conv_general_dilated(
            x, w, window_strides=(2, 2), padding=((1, 1), (1, 1)),
            dimension_numbers=("NHWC", "HWIO", "NHWC"))
        mean = jnp.mean(z, axis=(0, 1, 2), keepdims=True)
        var = jnp.mean((z - mean) ** 2, axis=(0, 1, 2), keepdims=True)
        zn = (z - mean) * jax.lax.rsqrt(var + BN_EPS)
        y = jnp.maximum(
            params[f"bn{i+1}_gamma"].reshape(1, 1, 1, -1) * zn
            + params[f"bn{i+1}_beta"].reshape(1, 1, 1, -1), 0.0)
        c, ps, n_head = heads[i]
        Ph = jnp.asarray(_adaptive_pool_matrix(y.shape[1], ps))
        Pw = jnp.asarray(_adaptive_pool_matrix(y.shape[2], ps))
        pooled = jnp.einsum("ph,qw,nhwc->ncpq", Ph, Pw, y)
        flat = pooled.reshape(y.shape[0], -1)
        out = flat @ params[f"fc{i+1}_w"] + params[f"fc{i+1}_b"]
        outs.append(out.reshape(y.shape[0], n_head, w_dim))
        x = y
    return jnp.concatenate(outs, axis=1)


# ----------------------------------- main ------------------------------------

if __name__ == "__main__":
    N, s = 2, 16                              # s must be a power of two
    num_wplus = int(math.log2(s)) * 2 - 2     # = 6
    n1, n2, n3, w_dim = 2, 2, 2, 32
    assert n1 + n2 + n3 == num_wplus

    x = jax.random.normal(jax.random.PRNGKey(0), (N, 3, s, s), jnp.float32)
    params = init_params(jax.random.PRNGKey(42), n1, n2, n3, w_dim)

    out = inverter_forward(x, params, n1=n1, n2=n2, n3=n3, w_dim=w_dim)
    out = jax.block_until_ready(out)

    assert out.shape == (N, n1 + n2 + n3, w_dim), out.shape
    assert bool(jnp.all(jnp.isfinite(out)))

    ref = _reference_forward(x, params, n1, n2, n3, w_dim)
    err = float(jnp.max(jnp.abs(out - ref)))
    assert err < 5e-2, f"kernel/reference mismatch: max abs err = {err}"

    print("KERNEL_OK")
</pallas_src>

<mosaic_0001>
module attributes {stable_mosaic.version = 11 : i64} {
  func.func @inverter_kernel(%arg0: memref<128x48xbf16, #tpu.memory_space<vmem>>, %arg1: memref<48x16xbf16, #tpu.memory_space<vmem>>, %arg2: memref<2x16xf32, #tpu.memory_space<vmem>>, %arg3: memref<16x1024xbf16, #tpu.memory_space<vmem>>, %arg4: memref<128x1024xbf16, #tpu.memory_space<vmem>>, %arg5: memref<1024x64xbf16, #tpu.memory_space<vmem>>, %arg6: memref<1x64xf32, #tpu.memory_space<vmem>>, %arg7: memref<2x128xf32, #tpu.memory_space<vmem>>, %arg8: memref<512x128xbf16, #tpu.memory_space<vmem>>, %arg9: memref<256x32xbf16, #tpu.memory_space<vmem>>, %arg10: memref<2x32xf32, #tpu.memory_space<vmem>>, %arg11: memref<32x512xbf16, #tpu.memory_space<vmem>>, %arg12: memref<32x512xbf16, #tpu.memory_space<vmem>>, %arg13: memref<512x64xbf16, #tpu.memory_space<vmem>>, %arg14: memref<1x64xf32, #tpu.memory_space<vmem>>, %arg15: memref<2x32xf32, #tpu.memory_space<vmem>>, %arg16: memref<128x32xbf16, #tpu.memory_space<vmem>>, %arg17: memref<512x48xbf16, #tpu.memory_space<vmem>>, %arg18: memref<2x48xf32, #tpu.memory_space<vmem>>, %arg19: memref<48x192xbf16, #tpu.memory_space<vmem>>, %arg20: memref<8x192xbf16, #tpu.memory_space<vmem>>, %arg21: memref<192x64xbf16, #tpu.memory_space<vmem>>, %arg22: memref<1x64xf32, #tpu.memory_space<vmem>>, %arg23: memref<2x8xf32, #tpu.memory_space<vmem>>, %arg24: memref<2x192xf32, #tpu.memory_space<vmem>>) attributes {dimension_semantics = [], scalar_prefetch = 0 : i64, scratch_operands = 0 : i64, tpu.core_type = #tpu.core_type<tc>} {
    %c0 = arith.constant 0 : index
    %c0_0 = arith.constant 0 : index
    %0 = vector.load %arg0[%c0, %c0_0] : memref<128x48xbf16, #tpu.memory_space<vmem>>, vector<128x48xbf16>
    %c0_1 = arith.constant 0 : index
    %c0_2 = arith.constant 0 : index
    %1 = vector.load %arg1[%c0_1, %c0_2] : memref<48x16xbf16, #tpu.memory_space<vmem>>, vector<48x16xbf16>
    %cst = arith.constant dense<0.000000e+00> : vector<128x16xf32>
    %2 = tpu.matmul %0, %1, %cst {dimension_numbers = #tpu.dot_dimension_numbers<[1], [0], [0], [1], [0, 0, 1, 1], [], []>} : vector<128x48xbf16>, vector<48x16xbf16>, vector<128x16xf32> -> vector<128x16xf32>
    %c0_3 = arith.constant 0 : index
    %c0_4 = arith.constant 0 : index
    %3 = vector.load %arg2[%c0_3, %c0_4] : memref<2x16xf32, #tpu.memory_space<vmem>>, vector<2x16xf32>
    %cst_5 = arith.constant dense<0.000000e+00> : vector<16xf32>
    %4 = vector.multi_reduction <add>, %2, %cst_5 [0] : vector<128x16xf32> to vector<16xf32>
    %5 = vector.shape_cast %4 : vector<16xf32> to vector<1x16xf32>
    %6 = arith.mulf %2, %2 : vector<128x16xf32>
    %cst_6 = arith.constant dense<0.000000e+00> : vector<16xf32>
    %7 = vector.multi_reduction <add>, %6, %cst_6 [0] : vector<128x16xf32> to vector<16xf32>
    %8 = vector.shape_cast %7 : vector<16xf32> to vector<1x16xf32>
    %cst_7 = arith.constant 7.812500e-03 : f32
    %9 = vector.broadcast %cst_7 : f32 to vector<1x16xf32>
    %10 = arith.mulf %5, %9 : vector<1x16xf32>
    %cst_8 = arith.constant 7.812500e-03 : f32
    %11 = vector.broadcast %cst_8 : f32 to vector<1x16xf32>
    %12 = arith.mulf %8, %11 : vector<1x16xf32>
    %13 = arith.mulf %10, %10 : vector<1x16xf32>
    %14 = arith.subf %12, %13 : vector<1x16xf32>
    %15 = vector.extract_strided_slice %3 {offsets = [0, 0], sizes = [1, 16], strides = [1, 1]} : vector<2x16xf32> to vector<1x16xf32>
    %16 = vector.extract_strided_slice %3 {offsets = [1, 0], sizes = [1, 16], strides = [1, 1]} : vector<2x16xf32> to vector<1x16xf32>
    %cst_9 = arith.constant 9.99999974E-6 : f32
    %17 = vector.broadcast %cst_9 : f32 to vector<1x16xf32>
    %18 = arith.addf %14, %17 : vector<1x16xf32>
    %19 = math.rsqrt %18 : vector<1x16xf32>
    %20 = arith.mulf %15, %19 : vector<1x16xf32>
    %21 = arith.mulf %10, %20 : vector<1x16xf32>
    %22 = arith.subf %16, %21 : vector<1x16xf32>
    %23 = vector.broadcast %20 : vector<1x16xf32> to vector<128x16xf32>
    %24 = arith.mulf %2, %23 : vector<128x16xf32>
    %25 = vector.broadcast %22 : vector<1x16xf32> to vector<128x16xf32>
    %26 = arith.addf %24, %25 : vector<128x16xf32>
    %cst_10 = arith.constant 0.000000e+00 : f32
    %27 = vector.broadcast %cst_10 : f32 to vector<128x16xf32>
    %28 = arith.maximumf %26, %27 : vector<128x16xf32>
    %29 = arith.truncf %28 : vector<128x16xf32> to vector<128x16xbf16>
    %c0_11 = arith.constant 0 : index
    %c0_12 = arith.constant 0 : index
    %30 = vector.load %arg3[%c0_11, %c0_12] : memref<16x1024xbf16, #tpu.memory_space<vmem>>, vector<16x1024xbf16>
    %cst_13 = arith.constant dense<0.000000e+00> : vector<128x1024xf32>
    %31 = tpu.matmul %29, %30, %cst_13 {dimension_numbers = #tpu.dot_dimension_numbers<[1], [0], [0], [1], [0, 0, 1, 1], [], []>} : vector<128x16xbf16>, vector<16x1024xbf16>, vector<128x1024xf32> -> vector<128x1024xf32>
    %c0_14 = arith.constant 0 : index
    %c0_15 = arith.constant 0 : index
    %32 = vector.load %arg4[%c0_14, %c0_15] : memref<128x1024xbf16, #tpu.memory_space<vmem>>, vector<128x1024xbf16>
    %33 = arith.extf %32 : vector<128x1024xbf16> to vector<128x1024xf32>
    %34 = arith.mulf %31, %33 : vector<128x1024xf32>
    %35 = arith.truncf %34 : vector<128x1024xf32> to vector<128x1024xbf16>
    %c0_16 = arith.constant 0 : index
    %c0_17 = arith.constant 0 : index
    %36 = vector.load %arg5[%c0_16, %c0_17] : memref<1024x64xbf16, #tpu.memory_space<vmem>>, vector<1024x64xbf16>
    %cst_18 = arith.constant dense<0.000000e+00> : vector<128x64xf32>
    %37 = tpu.matmul %35, %36, %cst_18 {dimension_numbers = #tpu.dot_dimension_numbers<[1], [0], [0], [1], [0, 0, 1, 1], [], []>} : vector<128x1024xbf16>, vector<1024x64xbf16>, vector<128x64xf32> -> vector<128x64xf32>
    %c0_19 = arith.constant 0 : index
    %c0_20 = arith.constant 0 : index
    %38 = vector.load %arg7[%c0_19, %c0_20] : memref<2x128xf32, #tpu.memory_space<vmem>>, vector<2x128xf32>
    %cst_21 = arith.constant dense<0.000000e+00> : vector<2x64xf32>
    %39 = tpu.matmul %38, %37, %cst_21 {dimension_numbers = #tpu.dot_dimension_numbers<[1], [0], [0], [1], [0, 0, 1, 1], [], []>} : vector<2x128xf32>, vector<128x64xf32>, vector<2x64xf32> -> vector<2x64xf32>
    %c0_22 = arith.constant 0 : index
    %c0_23 = arith.constant 0 : index
    %40 = vector.load %arg6[%c0_22, %c0_23] : memref<1x64xf32, #tpu.memory_space<vmem>>, vector<1x64xf32>
    %41 = vector.broadcast %40 : vector<1x64xf32> to vector<2x64xf32>
    %42 = arith.addf %39, %41 : vector<2x64xf32>
    %c0_24 = arith.constant 0 : index
    %c0_25 = arith.constant 0 : index
    %43 = vector.load %arg8[%c0_24, %c0_25] : memref<512x128xbf16, #tpu.memory_space<vmem>>, vector<512x128xbf16>
    %cst_26 = arith.constant dense<0.000000e+00> : vector<512x16xf32>
    %44 = tpu.matmul %43, %29, %cst_26 {dimension_numbers = #tpu.dot_dimension_numbers<[1], [0], [0], [1], [0, 0, 1, 1], [], []>} : vector<512x128xbf16>, vector<128x16xbf16>, vector<512x16xf32> -> vector<512x16xf32>
    %cst_27 = arith.constant 0.000000e+00 : f32
    %45 = vector.broadcast %cst_27 : f32 to vector<32x32xf32>
    %46 = vector.extract_strided_slice %44 {offsets = [0, 0], sizes = [32, 16], strides = [1, 1]} : vector<512x16xf32> to vector<32x16xf32>
    %47 = arith.truncf %46 : vector<32x16xf32> to vector<32x16xbf16>
    %c0_28 = arith.constant 0 : index
    %c0_29 = arith.constant 0 : index
    %48 = vector.load %arg9[%c0_28, %c0_29] : memref<256x32xbf16, #tpu.memory_space<vmem>>, vector<16x32xbf16>
    %cst_30 = arith.constant dense<0.000000e+00> : vector<32x32xf32>
    %49 = tpu.matmul %47, %48, %cst_30 {dimension_numbers = #tpu.dot_dimension_numbers<[1], [0], [0], [1], [0, 0, 1, 1], [], []>} : vector<32x16xbf16>, vector<16x32xbf16>, vector<32x32xf32> -> vector<32x32xf32>
    %50 = arith.addf %45, %49 : vector<32x32xf32>
    %51 = vector.extract_strided_slice %44 {offsets = [32, 0], sizes = [32, 16], strides = [1, 1]} : vector<512x16xf32> to vector<32x16xf32>
    %52 = arith.truncf %51 : vector<32x16xf32> to vector<32x16xbf16>
    %c16 = arith.constant 16 : index
    %c0_31 = arith.constant 0 : index
    %53 = vector.load %arg9[%c16, %c0_31] : memref<256x32xbf16, #tpu.memory_space<vmem>>, vector<16x32xbf16>
    %cst_32 = arith.constant dense<0.000000e+00> : vector<32x32xf32>
    %54 = tpu.matmul %52, %53, %cst_32 {dimension_numbers = #tpu.dot_dimension_numbers<[1], [0], [0], [1], [0, 0, 1, 1], [], []>} : vector<32x16xbf16>, vector<16x32xbf16>, vector<32x32xf32> -> vector<32x32xf32>
    %55 = arith.addf %50, %54 : vector<32x32xf32>
    %56 = vector.extract_strided_slice %44 {offsets = [64, 0], sizes = [32, 16], strides = [1, 1]} : vector<512x16xf32> to vector<32x16xf32>
    %57 = arith.truncf %56 : vector<32x16xf32> to vector<32x16xbf16>
    %c32 = arith.constant 32 : index
    %c0_33 = arith.constant 0 : index
    %58 = vector.load %arg9[%c32, %c0_33] : memref<256x32xbf16, #tpu.memory_space<vmem>>, vector<16x32xbf16>
    %cst_34 = arith.constant dense<0.000000e+00> : vector<32x32xf32>
    %59 = tpu.matmul %57, %58, %cst_34 {dimension_numbers = #tpu.dot_dimension_numbers<[1], [0], [0], [1], [0, 0, 1, 1], [], []>} : vector<32x16xbf16>, vector<16x32xbf16>, vector<32x32xf32> -> vector<32x32xf32>
    %60 = arith.addf %55, %59 : vector<32x32xf32>
    %61 = vector.extract_strided_slice %44 {offsets = [96, 0], sizes = [32, 16], strides = [1, 1]} : vector<512x16xf32> to vector<32x16xf32>
    %62 = arith.truncf %61 : vector<32x16xf32> to vector<32x16xbf16>
    %c48 = arith.constant 48 : index
    %c0_35 = arith.constant 0 : index
    %63 = vector.load %arg9[%c48, %c0_35] : memref<256x32xbf16, #tpu.memory_space<vmem>>, vector<16x32xbf16>
    %cst_36 = arith.constant dense<0.000000e+00> : vector<32x32xf32>
    %64 = tpu.matmul %62, %63, %cst_36 {dimension_numbers = #tpu.dot_dimension_numbers<[1], [0], [0], [1], [0, 0, 1, 1], [], []>} : vector<32x16xbf16>, vector<16x32xbf16>, vector<32x32xf32> -> vector<32x32xf32>
    %65 = arith.addf %60, %64 : vector<32x32xf32>
    %66 = vector.extract_strided_slice %44 {offsets = [128, 0], sizes = [32, 16], strides = [1, 1]} : vector<512x16xf32> to vector<32x16xf32>
    %67 = arith.truncf %66 : vector<32x16xf32> to vector<32x16xbf16>
    %c64 = arith.constant 64 : index
    %c0_37 = arith.constant 0 : index
    %68 = vector.load %arg9[%c64, %c0_37] : memref<256x32xbf16, #tpu.memory_space<vmem>>, vector<16x32xbf16>
    %cst_38 = arith.constant dense<0.000000e+00> : vector<32x32xf32>
    %69 = tpu.matmul %67, %68, %cst_38 {dimension_numbers = #tpu.dot_dimension_numbers<[1], [0], [0], [1], [0, 0, 1, 1], [], []>} : vector<32x16xbf16>, vector<16x32xbf16>, vector<32x32xf32> -> vector<32x32xf32>
    %70 = arith.addf %65, %69 : vector<32x32xf32>
    %71 = vector.extract_strided_slice %44 {offsets = [160, 0], sizes = [32, 16], strides = [1, 1]} : vector<512x16xf32> to vector<32x16xf32>
    %72 = arith.truncf %71 : vector<32x16xf32> to vector<32x16xbf16>
    %c80 = arith.constant 80 : index
    %c0_39 = arith.constant 0 : index
    %73 = vector.load %arg9[%c80, %c0_39] : memref<256x32xbf16, #tpu.memory_space<vmem>>, vector<16x32xbf16>
    %cst_40 = arith.constant dense<0.000000e+00> : vector<32x32xf32>
    %74 = tpu.matmul %72, %73, %cst_40 {dimension_numbers = #tpu.dot_dimension_numbers<[1], [0], [0], [1], [0, 0, 1, 1], [], []>} : vector<32x16xbf16>, vector<16x32xbf16>, vector<32x32xf32> -> vector<32x32xf32>
    %75 = arith.addf %70, %74 : vector<32x32xf32>
    %76 = vector.extract_strided_slice %44 {offsets = [192, 0], sizes = [32, 16], strides = [1, 1]} : vector<512x16xf32> to vector<32x16xf32>
    %77 = arith.truncf %76 : vector<32x16xf32> to vector<32x16xbf16>
    %c96 = arith.constant 96 : index
    %c0_41 = arith.constant 0 : index
    %78 = vector.load %arg9[%c96, %c0_41] : memref<256x32xbf16, #tpu.memory_space<vmem>>, vector<16x32xbf16>
    %cst_42 = arith.constant dense<0.000000e+00> : vector<32x32xf32>
    %79 = tpu.matmul %77, %78, %cst_42 {dimension_numbers = #tpu.dot_dimension_numbers<[1], [0], [0], [1], [0, 0, 1, 1], [], []>} : vector<32x16xbf16>, vector<16x32xbf16>, vector<32x32xf32> -> vector<32x32xf32>
    %80 = arith.addf %75, %79 : vector<32x32xf32>
    %81 = vector.extract_strided_slice %44 {offsets = [224, 0], sizes = [32, 16], strides = [1, 1]} : vector<512x16xf32> to vector<32x16xf32>
    %82 = arith.truncf %81 : vector<32x16xf32> to vector<32x16xbf16>
    %c112 = arith.constant 112 : index
    %c0_43 = arith.constant 0 : index
    %83 = vector.load %arg9[%c112, %c0_43] : memref<256x32xbf16, #tpu.memory_space<vmem>>, vector<16x32xbf16>
    %cst_44 = arith.constant dense<0.000000e+00> : vector<32x32xf32>
    %84 = tpu.matmul %82, %83, %cst_44 {dimension_numbers = #tpu.dot_dimension_numbers<[1], [0], [0], [1], [0, 0, 1, 1], [], []>} : vector<32x16xbf16>, vector<16x32xbf16>, vector<32x32xf32> -> vector<32x32xf32>
    %85 = arith.addf %80, %84 : vector<32x32xf32>
    %86 = vector.extract_strided_slice %44 {offsets = [256, 0], sizes = [32, 16], strides = [1, 1]} : vector<512x16xf32> to vector<32x16xf32>
    %87 = arith.truncf %86 : vector<32x16xf32> to vector<32x16xbf16>
    %c128 = arith.constant 128 : index
    %c0_45 = arith.constant 0 : index
    %88 = vector.load %arg9[%c128, %c0_45] : memref<256x32xbf16, #tpu.memory_space<vmem>>, vector<16x32xbf16>
    %cst_46 = arith.constant dense<0.000000e+00> : vector<32x32xf32>
    %89 = tpu.matmul %87, %88, %cst_46 {dimension_numbers = #tpu.dot_dimension_numbers<[1], [0], [0], [1], [0, 0, 1, 1], [], []>} : vector<32x16xbf16>, vector<16x32xbf16>, vector<32x32xf32> -> vector<32x32xf32>
    %90 = arith.addf %85, %89 : vector<32x32xf32>
    %91 = vector.extract_strided_slice %44 {offsets = [288, 0], sizes = [32, 16], strides = [1, 1]} : vector<512x16xf32> to vector<32x16xf32>
    %92 = arith.truncf %91 : vector<32x16xf32> to vector<32x16xbf16>
    %c144 = arith.constant 144 : index
    %c0_47 = arith.constant 0 : index
    %93 = vector.load %arg9[%c144, %c0_47] : memref<256x32xbf16, #tpu.memory_space<vmem>>, vector<16x32xbf16>
    %cst_48 = arith.constant dense<0.000000e+00> : vector<32x32xf32>
    %94 = tpu.matmul %92, %93, %cst_48 {dimension_numbers = #tpu.dot_dimension_numbers<[1], [0], [0], [1], [0, 0, 1, 1], [], []>} : vector<32x16xbf16>, vector<16x32xbf16>, vector<32x32xf32> -> vector<32x32xf32>
    %95 = arith.addf %90, %94 : vector<32x32xf32>
    %96 = vector.extract_strided_slice %44 {offsets = [320, 0], sizes = [32, 16], strides = [1, 1]} : vector<512x16xf32> to vector<32x16xf32>
    %97 = arith.truncf %96 : vector<32x16xf32> to vector<32x16xbf16>
    %c160 = arith.constant 160 : index
    %c0_49 = arith.constant 0 : index
    %98 = vector.load %arg9[%c160, %c0_49] : memref<256x32xbf16, #tpu.memory_space<vmem>>, vector<16x32xbf16>
    %cst_50 = arith.constant dense<0.000000e+00> : vector<32x32xf32>
    %99 = tpu.matmul %97, %98, %cst_50 {dimension_numbers = #tpu.dot_dimension_numbers<[1], [0], [0], [1], [0, 0, 1, 1], [], []>} : vector<32x16xbf16>, vector<16x32xbf16>, vector<32x32xf32> -> vector<32x32xf32>
    %100 = arith.addf %95, %99 : vector<32x32xf32>
    %101 = vector.extract_strided_slice %44 {offsets = [352, 0], sizes = [32, 16], strides = [1, 1]} : vector<512x16xf32> to vector<32x16xf32>
    %102 = arith.truncf %101 : vector<32x16xf32> to vector<32x16xbf16>
    %c176 = arith.constant 176 : index
    %c0_51 = arith.constant 0 : index
    %103 = vector.load %arg9[%c176, %c0_51] : memref<256x32xbf16, #tpu.memory_space<vmem>>, vector<16x32xbf16>
    %cst_52 = arith.constant dense<0.000000e+00> : vector<32x32xf32>
    %104 = tpu.matmul %102, %103, %cst_52 {dimension_numbers = #tpu.dot_dimension_numbers<[1], [0], [0], [1], [0, 0, 1, 1], [], []>} : vector<32x16xbf16>, vector<16x32xbf16>, vector<32x32xf32> -> vector<32x32xf32>
    %105 = arith.addf %100, %104 : vector<32x32xf32>
    %106 = vector.extract_strided_slice %44 {offsets = [384, 0], sizes = [32, 16], strides = [1, 1]} : vector<512x16xf32> to vector<32x16xf32>
    %107 = arith.truncf %106 : vector<32x16xf32> to vector<32x16xbf16>
    %c192 = arith.constant 192 : index
    %c0_53 = arith.constant 0 : index
    %108 = vector.load %arg9[%c192, %c0_53] : memref<256x32xbf16, #tpu.memory_space<vmem>>, vector<16x32xbf16>
    %cst_54 = arith.constant dense<0.000000e+00> : vector<32x32xf32>
    %109 = tpu.matmul %107, %108, %cst_54 {dimension_numbers = #tpu.dot_dimension_numbers<[1], [0], [0], [1], [0, 0, 1, 1], [], []>} : vector<32x16xbf16>, vector<16x32xbf16>, vector<32x32xf32> -> vector<32x32xf32>
    %110 = arith.addf %105, %109 : vector<32x32xf32>
    %111 = vector.extract_strided_slice %44 {offsets = [416, 0], sizes = [32, 16], strides = [1, 1]} : vector<512x16xf32> to vector<32x16xf32>
    %112 = arith.truncf %111 : vector<32x16xf32> to vector<32x16xbf16>
    %c208 = arith.constant 208 : index
    %c0_55 = arith.constant 0 : index
    %113 = vector.load %arg9[%c208, %c0_55] : memref<256x32xbf16, #tpu.memory_space<vmem>>, vector<16x32xbf16>
    %cst_56 = arith.constant dense<0.000000e+00> : vector<32x32xf32>
    %114 = tpu.matmul %112, %113, %cst_56 {dimension_numbers = #tpu.dot_dimension_numbers<[1], [0], [0], [1], [0, 0, 1, 1], [], []>} : vector<32x16xbf16>, vector<16x32xbf16>, vector<32x32xf32> -> vector<32x32xf32>
    %115 = arith.addf %110, %114 : vector<32x32xf32>
    %116 = vector.extract_strided_slice %44 {offsets = [448, 0], sizes = [32, 16], strides = [1, 1]} : vector<512x16xf32> to vector<32x16xf32>
    %117 = arith.truncf %116 : vector<32x16xf32> to vector<32x16xbf16>
    %c224 = arith.constant 224 : index
    %c0_57 = arith.constant 0 : index
    %118 = vector.load %arg9[%c224, %c0_57] : memref<256x32xbf16, #tpu.memory_space<vmem>>, vector<16x32xbf16>
    %cst_58 = arith.constant dense<0.000000e+00> : vector<32x32xf32>
    %119 = tpu.matmul %117, %118, %cst_58 {dimension_numbers = #tpu.dot_dimension_numbers<[1], [0], [0], [1], [0, 0, 1, 1], [], []>} : vector<32x16xbf16>, vector<16x32xbf16>, vector<32x32xf32> -> vector<32x32xf32>
    %120 = arith.addf %115, %119 : vector<32x32xf32>
    %121 = vector.extract_strided_slice %44 {offsets = [480, 0], sizes = [32, 16], strides = [1, 1]} : vector<512x16xf32> to vector<32x16xf32>
    %122 = arith.truncf %121 : vector<32x16xf32> to vector<32x16xbf16>
    %c240 = arith.constant 240 : index
    %c0_59 = arith.constant 0 : index
    %123 = vector.load %arg9[%c240, %c0_59] : memref<256x32xbf16, #tpu.memory_space<vmem>>, vector<16x32xbf16>
    %cst_60 = arith.constant dense<0.000000e+00> : vector<32x32xf32>
    %124 = tpu.matmul %122, %123, %cst_60 {dimension_numbers = #tpu.dot_dimension_numbers<[1], [0], [0], [1], [0, 0, 1, 1], [], []>} : vector<32x16xbf16>, vector<16x32xbf16>, vector<32x32xf32> -> vector<32x32xf32>
    %125 = arith.addf %120, %124 : vector<32x32xf32>
    %c0_61 = arith.constant 0 : index
    %c0_62 = arith.constant 0 : index
    %126 = vector.load %arg10[%c0_61, %c0_62] : memref<2x32xf32, #tpu.memory_space<vmem>>, vector<2x32xf32>
    %cst_63 = arith.constant dense<0.000000e+00> : vector<32xf32>
    %127 = vector.multi_reduction <add>, %125, %cst_63 [0] : vector<32x32xf32> to vector<32xf32>
    %128 = vector.shape_cast %127 : vector<32xf32> to vector<1x32xf32>
    %129 = arith.mulf %125, %125 : vector<32x32xf32>
    %cst_64 = arith.constant dense<0.000000e+00> : vector<32xf32>
    %130 = vector.multi_reduction <add>, %129, %cst_64 [0] : vector<32x32xf32> to vector<32xf32>
    %131 = vector.shape_cast %130 : vector<32xf32> to vector<1x32xf32>
    %cst_65 = arith.constant 3.125000e-02 : f32
    %132 = vector.broadcast %cst_65 : f32 to vector<1x32xf32>
    %133 = arith.mulf %128, %132 : vector<1x32xf32>
    %cst_66 = arith.constant 3.125000e-02 : f32
    %134 = vector.broadcast %cst_66 : f32 to vector<1x32xf32>
    %135 = arith.mulf %131, %134 : vector<1x32xf32>
    %136 = arith.mulf %133, %133 : vector<1x32xf32>
    %137 = arith.subf %135, %136 : vector<1x32xf32>
    %138 = vector.extract_strided_slice %126 {offsets = [0, 0], sizes = [1, 32], strides = [1, 1]} : vector<2x32xf32> to vector<1x32xf32>
    %139 = vector.extract_strided_slice %126 {offsets = [1, 0], sizes = [1, 32], strides = [1, 1]} : vector<2x32xf32> to vector<1x32xf32>
    %cst_67 = arith.constant 9.99999974E-6 : f32
    %140 = vector.broadcast %cst_67 : f32 to vector<1x32xf32>
    %141 = arith.addf %137, %140 : vector<1x32xf32>
    %142 = math.rsqrt %141 : vector<1x32xf32>
    %143 = arith.mulf %138, %142 : vector<1x32xf32>
    %144 = arith.mulf %133, %143 : vector<1x32xf32>
    %145 = arith.subf %139, %144 : vector<1x32xf32>
    %146 = vector.broadcast %143 : vector<1x32xf32> to vector<32x32xf32>
    %147 = arith.mulf %125, %146 : vector<32x32xf32>
    %148 = vector.broadcast %145 : vector<1x32xf32> to vector<32x32xf32>
    %149 = arith.addf %147, %148 : vector<32x32xf32>
    %cst_68 = arith.constant 0.000000e+00 : f32
    %150 = vector.broadcast %cst_68 : f32 to vector<32x32xf32>
    %151 = arith.maximumf %149, %150 : vector<32x32xf32>
    %152 = arith.truncf %151 : vector<32x32xf32> to vector<32x32xbf16>
    %c0_69 = arith.constant 0 : index
    %c0_70 = arith.constant 0 : index
    %153 = vector.load %arg11[%c0_69, %c0_70] : memref<32x512xbf16, #tpu.memory_space<vmem>>, vector<32x512xbf16>
    %cst_71 = arith.constant dense<0.000000e+00> : vector<32x512xf32>
    %154 = tpu.matmul %152, %153, %cst_71 {dimension_numbers = #tpu.dot_dimension_numbers<[1], [0], [0], [1], [0, 0, 1, 1], [], []>} : vector<32x32xbf16>, vector<32x512xbf16>, vector<32x512xf32> -> vector<32x512xf32>
    %c0_72 = arith.constant 0 : index
    %c0_73 = arith.constant 0 : index
    %155 = vector.load %arg12[%c0_72, %c0_73] : memref<32x512xbf16, #tpu.memory_space<vmem>>, vector<32x512xbf16>
    %156 = arith.extf %155 : vector<32x512xbf16> to vector<32x512xf32>
    %157 = arith.mulf %154, %156 : vector<32x512xf32>
    %158 = arith.truncf %157 : vector<32x512xf32> to vector<32x512xbf16>
    %c0_74 = arith.constant 0 : index
    %c0_75 = arith.constant 0 : index
    %159 = vector.load %arg13[%c0_74, %c0_75] : memref<512x64xbf16, #tpu.memory_space<vmem>>, vector<512x64xbf16>
    %cst_76 = arith.constant dense<0.000000e+00> : vector<32x64xf32>
    %160 = tpu.matmul %158, %159, %cst_76 {dimension_numbers = #tpu.dot_dimension_numbers<[1], [0], [0], [1], [0, 0, 1, 1], [], []>} : vector<32x512xbf16>, vector<512x64xbf16>, vector<32x64xf32> -> vector<32x64xf32>
    %c0_77 = arith.constant 0 : index
    %c0_78 = arith.constant 0 : index
    %161 = vector.load %arg15[%c0_77, %c0_78] : memref<2x32xf32, #tpu.memory_space<vmem>>, vector<2x32xf32>
    %cst_79 = arith.constant dense<0.000000e+00> : vector<2x64xf32>
    %162 = tpu.matmul %161, %160, %cst_79 {dimension_numbers = #tpu.dot_dimension_numbers<[1], [0], [0], [1], [0, 0, 1, 1], [], []>} : vector<2x32xf32>, vector<32x64xf32>, vector<2x64xf32> -> vector<2x64xf32>
    %c0_80 = arith.constant 0 : index
    %c0_81 = arith.constant 0 : index
    %163 = vector.load %arg14[%c0_80, %c0_81] : memref<1x64xf32, #tpu.memory_space<vmem>>, vector<1x64xf32>
    %164 = vector.broadcast %163 : vector<1x64xf32> to vector<2x64xf32>
    %165 = arith.addf %162, %164 : vector<2x64xf32>
    %c0_82 = arith.constant 0 : index
    %c0_83 = arith.constant 0 : index
    %166 = vector.load %arg16[%c0_82, %c0_83] : memref<128x32xbf16, #tpu.memory_space<vmem>>, vector<128x32xbf16>
    %cst_84 = arith.constant dense<0.000000e+00> : vector<128x32xf32>
    %167 = tpu.matmul %166, %152, %cst_84 {dimension_numbers = #tpu.dot_dimension_numbers<[1], [0], [0], [1], [0, 0, 1, 1], [], []>} : vector<128x32xbf16>, vector<32x32xbf16>, vector<128x32xf32> -> vector<128x32xf32>
    %cst_85 = arith.constant 0.000000e+00 : f32
    %168 = vector.broadcast %cst_85 : f32 to vector<8x48xf32>
    %169 = vector.extract_strided_slice %167 {offsets = [0, 0], sizes = [8, 32], strides = [1, 1]} : vector<128x32xf32> to vector<8x32xf32>
    %170 = arith.truncf %169 : vector<8x32xf32> to vector<8x32xbf16>
    %c0_86 = arith.constant 0 : index
    %c0_87 = arith.constant 0 : index
    %171 = vector.load %arg17[%c0_86, %c0_87] : memref<512x48xbf16, #tpu.memory_space<vmem>>, vector<32x48xbf16>
    %cst_88 = arith.constant dense<0.000000e+00> : vector<8x48xf32>
    %172 = tpu.matmul %170, %171, %cst_88 {dimension_numbers = #tpu.dot_dimension_numbers<[1], [0], [0], [1], [0, 0, 1, 1], [], []>} : vector<8x32xbf16>, vector<32x48xbf16>, vector<8x48xf32> -> vector<8x48xf32>
    %173 = arith.addf %168, %172 : vector<8x48xf32>
    %174 = vector.extract_strided_slice %167 {offsets = [8, 0], sizes = [8, 32], strides = [1, 1]} : vector<128x32xf32> to vector<8x32xf32>
    %175 = arith.truncf %174 : vector<8x32xf32> to vector<8x32xbf16>
    %c32_89 = arith.constant 32 : index
    %c0_90 = arith.constant 0 : index
    %176 = vector.load %arg17[%c32_89, %c0_90] : memref<512x48xbf16, #tpu.memory_space<vmem>>, vector<32x48xbf16>
    %cst_91 = arith.constant dense<0.000000e+00> : vector<8x48xf32>
    %177 = tpu.matmul %175, %176, %cst_91 {dimension_numbers = #tpu.dot_dimension_numbers<[1], [0], [0], [1], [0, 0, 1, 1], [], []>} : vector<8x32xbf16>, vector<32x48xbf16>, vector<8x48xf32> -> vector<8x48xf32>
    %178 = arith.addf %173, %177 : vector<8x48xf32>
    %179 = vector.extract_strided_slice %167 {offsets = [16, 0], sizes = [8, 32], strides = [1, 1]} : vector<128x32xf32> to vector<8x32xf32>
    %180 = arith.truncf %179 : vector<8x32xf32> to vector<8x32xbf16>
    %c64_92 = arith.constant 64 : index
    %c0_93 = arith.constant 0 : index
    %181 = vector.load %arg17[%c64_92, %c0_93] : memref<512x48xbf16, #tpu.memory_space<vmem>>, vector<32x48xbf16>
    %cst_94 = arith.constant dense<0.000000e+00> : vector<8x48xf32>
    %182 = tpu.matmul %180, %181, %cst_94 {dimension_numbers = #tpu.dot_dimension_numbers<[1], [0], [0], [1], [0, 0, 1, 1], [], []>} : vector<8x32xbf16>, vector<32x48xbf16>, vector<8x48xf32> -> vector<8x48xf32>
    %183 = arith.addf %178, %182 : vector<8x48xf32>
    %184 = vector.extract_strided_slice %167 {offsets = [24, 0], sizes = [8, 32], strides = [1, 1]} : vector<128x32xf32> to vector<8x32xf32>
    %185 = arith.truncf %184 : vector<8x32xf32> to vector<8x32xbf16>
    %c96_95 = arith.constant 96 : index
    %c0_96 = arith.constant 0 : index
    %186 = vector.load %arg17[%c96_95, %c0_96] : memref<512x48xbf16, #tpu.memory_space<vmem>>, vector<32x48xbf16>
    %cst_97 = arith.constant dense<0.000000e+00> : vector<8x48xf32>
    %187 = tpu.matmul %185, %186, %cst_97 {dimension_numbers = #tpu.dot_dimension_numbers<[1], [0], [0], [1], [0, 0, 1, 1], [], []>} : vector<8x32xbf16>, vector<32x48xbf16>, vector<8x48xf32> -> vector<8x48xf32>
    %188 = arith.addf %183, %187 : vector<8x48xf32>
    %189 = vector.extract_strided_slice %167 {offsets = [32, 0], sizes = [8, 32], strides = [1, 1]} : vector<128x32xf32> to vector<8x32xf32>
    %190 = arith.truncf %189 : vector<8x32xf32> to vector<8x32xbf16>
    %c128_98 = arith.constant 128 : index
    %c0_99 = arith.constant 0 : index
    %191 = vector.load %arg17[%c128_98, %c0_99] : memref<512x48xbf16, #tpu.memory_space<vmem>>, vector<32x48xbf16>
    %cst_100 = arith.constant dense<0.000000e+00> : vector<8x48xf32>
    %192 = tpu.matmul %190, %191, %cst_100 {dimension_numbers = #tpu.dot_dimension_numbers<[1], [0], [0], [1], [0, 0, 1, 1], [], []>} : vector<8x32xbf16>, vector<32x48xbf16>, vector<8x48xf32> -> vector<8x48xf32>
    %193 = arith.addf %188, %192 : vector<8x48xf32>
    %194 = vector.extract_strided_slice %167 {offsets = [40, 0], sizes = [8, 32], strides = [1, 1]} : vector<128x32xf32> to vector<8x32xf32>
    %195 = arith.truncf %194 : vector<8x32xf32> to vector<8x32xbf16>
    %c160_101 = arith.constant 160 : index
    %c0_102 = arith.constant 0 : index
    %196 = vector.load %arg17[%c160_101, %c0_102] : memref<512x48xbf16, #tpu.memory_space<vmem>>, vector<32x48xbf16>
    %cst_103 = arith.constant dense<0.000000e+00> : vector<8x48xf32>
    %197 = tpu.matmul %195, %196, %cst_103 {dimension_numbers = #tpu.dot_dimension_numbers<[1], [0], [0], [1], [0, 0, 1, 1], [], []>} : vector<8x32xbf16>, vector<32x48xbf16>, vector<8x48xf32> -> vector<8x48xf32>
    %198 = arith.addf %193, %197 : vector<8x48xf32>
    %199 = vector.extract_strided_slice %167 {offsets = [48, 0], sizes = [8, 32], strides = [1, 1]} : vector<128x32xf32> to vector<8x32xf32>
    %200 = arith.truncf %199 : vector<8x32xf32> to vector<8x32xbf16>
    %c192_104 = arith.constant 192 : index
    %c0_105 = arith.constant 0 : index
    %201 = vector.load %arg17[%c192_104, %c0_105] : memref<512x48xbf16, #tpu.memory_space<vmem>>, vector<32x48xbf16>
    %cst_106 = arith.constant dense<0.000000e+00> : vector<8x48xf32>
    %202 = tpu.matmul %200, %201, %cst_106 {dimension_numbers = #tpu.dot_dimension_numbers<[1], [0], [0], [1], [0, 0, 1, 1], [], []>} : vector<8x32xbf16>, vector<32x48xbf16>, vector<8x48xf32> -> vector<8x48xf32>
    %203 = arith.addf %198, %202 : vector<8x48xf32>
    %204 = vector.extract_strided_slice %167 {offsets = [56, 0], sizes = [8, 32], strides = [1, 1]} : vector<128x32xf32> to vector<8x32xf32>
    %205 = arith.truncf %204 : vector<8x32xf32> to vector<8x32xbf16>
    %c224_107 = arith.constant 224 : index
    %c0_108 = arith.constant 0 : index
    %206 = vector.load %arg17[%c224_107, %c0_108] : memref<512x48xbf16, #tpu.memory_space<vmem>>, vector<32x48xbf16>
    %cst_109 = arith.constant dense<0.000000e+00> : vector<8x48xf32>
    %207 = tpu.matmul %205, %206, %cst_109 {dimension_numbers = #tpu.dot_dimension_numbers<[1], [0], [0], [1], [0, 0, 1, 1], [], []>} : vector<8x32xbf16>, vector<32x48xbf16>, vector<8x48xf32> -> vector<8x48xf32>
    %208 = arith.addf %203, %207 : vector<8x48xf32>
    %209 = vector.extract_strided_slice %167 {offsets = [64, 0], sizes = [8, 32], strides = [1, 1]} : vector<128x32xf32> to vector<8x32xf32>
    %210 = arith.truncf %209 : vector<8x32xf32> to vector<8x32xbf16>
    %c256 = arith.constant 256 : index
    %c0_110 = arith.constant 0 : index
    %211 = vector.load %arg17[%c256, %c0_110] : memref<512x48xbf16, #tpu.memory_space<vmem>>, vector<32x48xbf16>
    %cst_111 = arith.constant dense<0.000000e+00> : vector<8x48xf32>
    %212 = tpu.matmul %210, %211, %cst_111 {dimension_numbers = #tpu.dot_dimension_numbers<[1], [0], [0], [1], [0, 0, 1, 1], [], []>} : vector<8x32xbf16>, vector<32x48xbf16>, vector<8x48xf32> -> vector<8x48xf32>
    %213 = arith.addf %208, %212 : vector<8x48xf32>
    %214 = vector.extract_strided_slice %167 {offsets = [72, 0], sizes = [8, 32], strides = [1, 1]} : vector<128x32xf32> to vector<8x32xf32>
    %215 = arith.truncf %214 : vector<8x32xf32> to vector<8x32xbf16>
    %c288 = arith.constant 288 : index
    %c0_112 = arith.constant 0 : index
    %216 = vector.load %arg17[%c288, %c0_112] : memref<512x48xbf16, #tpu.memory_space<vmem>>, vector<32x48xbf16>
    %cst_113 = arith.constant dense<0.000000e+00> : vector<8x48xf32>
    %217 = tpu.matmul %215, %216, %cst_113 {dimension_numbers = #tpu.dot_dimension_numbers<[1], [0], [0], [1], [0, 0, 1, 1], [], []>} : vector<8x32xbf16>, vector<32x48xbf16>, vector<8x48xf32> -> vector<8x48xf32>
    %218 = arith.addf %213, %217 : vector<8x48xf32>
    %219 = vector.extract_strided_slice %167 {offsets = [80, 0], sizes = [8, 32], strides = [1, 1]} : vector<128x32xf32> to vector<8x32xf32>
    %220 = arith.truncf %219 : vector<8x32xf32> to vector<8x32xbf16>
    %c320 = arith.constant 320 : index
    %c0_114 = arith.constant 0 : index
    %221 = vector.load %arg17[%c320, %c0_114] : memref<512x48xbf16, #tpu.memory_space<vmem>>, vector<32x48xbf16>
    %cst_115 = arith.constant dense<0.000000e+00> : vector<8x48xf32>
    %222 = tpu.matmul %220, %221, %cst_115 {dimension_numbers = #tpu.dot_dimension_numbers<[1], [0], [0], [1], [0, 0, 1, 1], [], []>} : vector<8x32xbf16>, vector<32x48xbf16>, vector<8x48xf32> -> vector<8x48xf32>
    %223 = arith.addf %218, %222 : vector<8x48xf32>
    %224 = vector.extract_strided_slice %167 {offsets = [88, 0], sizes = [8, 32], strides = [1, 1]} : vector<128x32xf32> to vector<8x32xf32>
    %225 = arith.truncf %224 : vector<8x32xf32> to vector<8x32xbf16>
    %c352 = arith.constant 352 : index
    %c0_116 = arith.constant 0 : index
    %226 = vector.load %arg17[%c352, %c0_116] : memref<512x48xbf16, #tpu.memory_space<vmem>>, vector<32x48xbf16>
    %cst_117 = arith.constant dense<0.000000e+00> : vector<8x48xf32>
    %227 = tpu.matmul %225, %226, %cst_117 {dimension_numbers = #tpu.dot_dimension_numbers<[1], [0], [0], [1], [0, 0, 1, 1], [], []>} : vector<8x32xbf16>, vector<32x48xbf16>, vector<8x48xf32> -> vector<8x48xf32>
    %228 = arith.addf %223, %227 : vector<8x48xf32>
    %229 = vector.extract_strided_slice %167 {offsets = [96, 0], sizes = [8, 32], strides = [1, 1]} : vector<128x32xf32> to vector<8x32xf32>
    %230 = arith.truncf %229 : vector<8x32xf32> to vector<8x32xbf16>
    %c384 = arith.constant 384 : index
    %c0_118 = arith.constant 0 : index
    %231 = vector.load %arg17[%c384, %c0_118] : memref<512x48xbf16, #tpu.memory_space<vmem>>, vector<32x48xbf16>
    %cst_119 = arith.constant dense<0.000000e+00> : vector<8x48xf32>
    %232 = tpu.matmul %230, %231, %cst_119 {dimension_numbers = #tpu.dot_dimension_numbers<[1], [0], [0], [1], [0, 0, 1, 1], [], []>} : vector<8x32xbf16>, vector<32x48xbf16>, vector<8x48xf32> -> vector<8x48xf32>
    %233 = arith.addf %228, %232 : vector<8x48xf32>
    %234 = vector.extract_strided_slice %167 {offsets = [104, 0], sizes = [8, 32], strides = [1, 1]} : vector<128x32xf32> to vector<8x32xf32>
    %235 = arith.truncf %234 : vector<8x32xf32> to vector<8x32xbf16>
    %c416 = arith.constant 416 : index
    %c0_120 = arith.constant 0 : index
    %236 = vector.load %arg17[%c416, %c0_120] : memref<512x48xbf16, #tpu.memory_space<vmem>>, vector<32x48xbf16>
    %cst_121 = arith.constant dense<0.000000e+00> : vector<8x48xf32>
    %237 = tpu.matmul %235, %236, %cst_121 {dimension_numbers = #tpu.dot_dimension_numbers<[1], [0], [0], [1], [0, 0, 1, 1], [], []>} : vector<8x32xbf16>, vector<32x48xbf16>, vector<8x48xf32> -> vector<8x48xf32>
    %238 = arith.addf %233, %237 : vector<8x48xf32>
    %239 = vector.extract_strided_slice %167 {offsets = [112, 0], sizes = [8, 32], strides = [1, 1]} : vector<128x32xf32> to vector<8x32xf32>
    %240 = arith.truncf %239 : vector<8x32xf32> to vector<8x32xbf16>
    %c448 = arith.constant 448 : index
    %c0_122 = arith.constant 0 : index
    %241 = vector.load %arg17[%c448, %c0_122] : memref<512x48xbf16, #tpu.memory_space<vmem>>, vector<32x48xbf16>
    %cst_123 = arith.constant dense<0.000000e+00> : vector<8x48xf32>
    %242 = tpu.matmul %240, %241, %cst_123 {dimension_numbers = #tpu.dot_dimension_numbers<[1], [0], [0], [1], [0, 0, 1, 1], [], []>} : vector<8x32xbf16>, vector<32x48xbf16>, vector<8x48xf32> -> vector<8x48xf32>
    %243 = arith.addf %238, %242 : vector<8x48xf32>
    %244 = vector.extract_strided_slice %167 {offsets = [120, 0], sizes = [8, 32], strides = [1, 1]} : vector<128x32xf32> to vector<8x32xf32>
    %245 = arith.truncf %244 : vector<8x32xf32> to vector<8x32xbf16>
    %c480 = arith.constant 480 : index
    %c0_124 = arith.constant 0 : index
    %246 = vector.load %arg17[%c480, %c0_124] : memref<512x48xbf16, #tpu.memory_space<vmem>>, vector<32x48xbf16>
    %cst_125 = arith.constant dense<0.000000e+00> : vector<8x48xf32>
    %247 = tpu.matmul %245, %246, %cst_125 {dimension_numbers = #tpu.dot_dimension_numbers<[1], [0], [0], [1], [0, 0, 1, 1], [], []>} : vector<8x32xbf16>, vector<32x48xbf16>, vector<8x48xf32> -> vector<8x48xf32>
    %248 = arith.addf %243, %247 : vector<8x48xf32>
    %c0_126 = arith.constant 0 : index
    %c0_127 = arith.constant 0 : index
    %249 = vector.load %arg18[%c0_126, %c0_127] : memref<2x48xf32, #tpu.memory_space<vmem>>, vector<2x48xf32>
    %cst_128 = arith.constant dense<0.000000e+00> : vector<48xf32>
    %250 = vector.multi_reduction <add>, %248, %cst_128 [0] : vector<8x48xf32> to vector<48xf32>
    %251 = vector.shape_cast %250 : vector<48xf32> to vector<1x48xf32>
    %252 = arith.mulf %248, %248 : vector<8x48xf32>
    %cst_129 = arith.constant dense<0.000000e+00> : vector<48xf32>
    %253 = vector.multi_reduction <add>, %252, %cst_129 [0] : vector<8x48xf32> to vector<48xf32>
    %254 = vector.shape_cast %253 : vector<48xf32> to vector<1x48xf32>
    %cst_130 = arith.constant 1.250000e-01 : f32
    %255 = vector.broadcast %cst_130 : f32 to vector<1x48xf32>
    %256 = arith.mulf %251, %255 : vector<1x48xf32>
    %cst_131 = arith.constant 1.250000e-01 : f32
    %257 = vector.broadcast %cst_131 : f32 to vector<1x48xf32>
    %258 = arith.mulf %254, %257 : vector<1x48xf32>
    %259 = arith.mulf %256, %256 : vector<1x48xf32>
    %260 = arith.subf %258, %259 : vector<1x48xf32>
    %261 = vector.extract_strided_slice %249 {offsets = [0, 0], sizes = [1, 48], strides = [1, 1]} : vector<2x48xf32> to vector<1x48xf32>
    %262 = vector.extract_strided_slice %249 {offsets = [1, 0], sizes = [1, 48], strides = [1, 1]} : vector<2x48xf32> to vector<1x48xf32>
    %cst_132 = arith.constant 9.99999974E-6 : f32
    %263 = vector.broadcast %cst_132 : f32 to vector<1x48xf32>
    %264 = arith.addf %260, %263 : vector<1x48xf32>
    %265 = math.rsqrt %264 : vector<1x48xf32>
    %266 = arith.mulf %261, %265 : vector<1x48xf32>
    %267 = arith.mulf %256, %266 : vector<1x48xf32>
    %268 = arith.subf %262, %267 : vector<1x48xf32>
    %269 = vector.broadcast %266 : vector<1x48xf32> to vector<8x48xf32>
    %270 = arith.mulf %248, %269 : vector<8x48xf32>
    %271 = vector.broadcast %268 : vector<1x48xf32> to vector<8x48xf32>
    %272 = arith.addf %270, %271 : vector<8x48xf32>
    %cst_133 = arith.constant 0.000000e+00 : f32
    %273 = vector.broadcast %cst_133 : f32 to vector<8x48xf32>
    %274 = arith.maximumf %272, %273 : vector<8x48xf32>
    %275 = arith.truncf %274 : vector<8x48xf32> to vector<8x48xbf16>
    %c0_134 = arith.constant 0 : index
    %c0_135 = arith.constant 0 : index
    %276 = vector.load %arg19[%c0_134, %c0_135] : memref<48x192xbf16, #tpu.memory_space<vmem>>, vector<48x192xbf16>
    %cst_136 = arith.constant dense<0.000000e+00> : vector<8x192xf32>
    %277 = tpu.matmul %275, %276, %cst_136 {dimension_numbers = #tpu.dot_dimension_numbers<[1], [0], [0], [1], [0, 0, 1, 1], [], []>} : vector<8x48xbf16>, vector<48x192xbf16>, vector<8x192xf32> -> vector<8x192xf32>
    %c0_137 = arith.constant 0 : index
    %c0_138 = arith.constant 0 : index
    %278 = vector.load %arg20[%c0_137, %c0_138] : memref<8x192xbf16, #tpu.memory_space<vmem>>, vector<8x192xbf16>
    %279 = arith.extf %278 : vector<8x192xbf16> to vector<8x192xf32>
    %280 = arith.mulf %277, %279 : vector<8x192xf32>
    %281 = arith.truncf %280 : vector<8x192xf32> to vector<8x192xbf16>
    %c0_139 = arith.constant 0 : index
    %c0_140 = arith.constant 0 : index
    %282 = vector.load %arg21[%c0_139, %c0_140] : memref<192x64xbf16, #tpu.memory_space<vmem>>, vector<192x64xbf16>
    %cst_141 = arith.constant dense<0.000000e+00> : vector<8x64xf32>
    %283 = tpu.matmul %281, %282, %cst_141 {dimension_numbers = #tpu.dot_dimension_numbers<[1], [0], [0], [1], [0, 0, 1, 1], [], []>} : vector<8x192xbf16>, vector<192x64xbf16>, vector<8x64xf32> -> vector<8x64xf32>
    %c0_142 = arith.constant 0 : index
    %c0_143 = arith.constant 0 : index
    %284 = vector.load %arg23[%c0_142, %c0_143] : memref<2x8xf32, #tpu.memory_space<vmem>>, vector<2x8xf32>
    %cst_144 = arith.constant dense<0.000000e+00> : vector<2x64xf32>
    %285 = tpu.matmul %284, %283, %cst_144 {dimension_numbers = #tpu.dot_dimension_numbers<[1], [0], [0], [1], [0, 0, 1, 1], [], []>} : vector<2x8xf32>, vector<8x64xf32>, vector<2x64xf32> -> vector<2x64xf32>
    %c0_145 = arith.constant 0 : index
    %c0_146 = arith.constant 0 : index
    %286 = vector.load %arg22[%c0_145, %c0_146] : memref<1x64xf32, #tpu.memory_space<vmem>>, vector<1x64xf32>
    %287 = vector.broadcast %286 : vector<1x64xf32> to vector<2x64xf32>
    %288 = arith.addf %285, %287 : vector<2x64xf32>
    %c0_147 = arith.constant 0 : index
    %c0_148 = arith.constant 0 : index
    %289 = vector.load %arg24[%c0_147, %c0_148] : memref<2x192xf32, #tpu.memory_space<vmem>>, vector<2x64xf32>
    tpu.vector_store %arg24[%c0_147, %c0_148], %42 {strides = array<i32>} : memref<2x192xf32, #tpu.memory_space<vmem>>, vector<2x64xf32>,
    %c0_149 = arith.constant 0 : index
    %c64_150 = arith.constant 64 : index
    %290 = vector.load %arg24[%c0_149, %c64_150] : memref<2x192xf32, #tpu.memory_space<vmem>>, vector<2x64xf32>
    tpu.vector_store %arg24[%c0_149, %c64_150], %165 {strides = array<i32>} : memref<2x192xf32, #tpu.memory_space<vmem>>, vector<2x64xf32>,
    %c0_151 = arith.constant 0 : index
    %c128_152 = arith.constant 128 : index
    %291 = vector.load %arg24[%c0_151, %c128_152] : memref<2x192xf32, #tpu.memory_space<vmem>>, vector<2x64xf32>
    tpu.vector_store %arg24[%c0_151, %c128_152], %288 {strides = array<i32>} : memref<2x192xf32, #tpu.memory_space<vmem>>, vector<2x64xf32>,
    return
  }
}

</mosaic_0001>

<bundles_post_ra>
// kernel: inverter_forward.1
= control target key start
LH: loop header
LB: loop body
LE: loop exit
PB: predicated region body
PF: predicated region fallthrough
CT: control target
= control target key end

     0   :  { %vm158_vm0 = vcmask 392192   ;;  %v7820_v19 = vmov 0   ;;  %vm281_vm1 = vcmask 130048   ;;  %vm7822_vm2 = vmmov 0   ;;  %s9499_s1 = inlined_call_operand.vmem [shape: bf16[48,16], index: 1, kind: input, shape index: {}]   ;;  %s9500_s0 = inlined_call_operand.vmem [shape: bf16[128,48], index: 0, kind: input, shape index: {}]   ;;  %s9501_s3 = inlined_call_operand.vmem [shape: bf16[16,1024], index: 3, kind: input, shape index: {}]   ;;  %s9502_s2 = inlined_call_operand.vmem [shape: f32[2,16], index: 2, kind: input, shape index: {}]   ;;  %s9503_s5 = inlined_call_operand.vmem [shape: bf16[1024,64], index: 5, kind: input, shape index: {}]   ;;  %s9504_s4 = inlined_call_operand.vmem [shape: bf16[128,1024], index: 4, kind: input, shape index: {}]   ;;  %s9505_s8 = inlined_call_operand.vmem [shape: bf16[512,128], index: 8, kind: input, shape index: {}]   ;;  %s9506_s9 = inlined_call_operand.vmem [shape: bf16[256,32], index: 9, kind: input, shape index: {}]   ;;  %s9507_s7 = inlined_call_operand.vmem [shape: f32[2,128], index: 7, kind: input, shape index: {}]   ;;  %s9508_s11 = inlined_call_operand.vmem [shape: bf16[32,512], index: 11, kind: input, shape index: {}]   ;;  %s9509_s6 = inlined_call_operand.vmem [shape: f32[1,64], index: 6, kind: input, shape index: {}]   ;;  %s9510_s24 = inlined_call_operand.vmem [shape: f32[2,192], index: 24, kind: output, shape index: {}]   ;;  %s9511_s13 = inlined_call_operand.vmem [shape: bf16[512,64], index: 13, kind: input, shape index: {}]   ;;  %s9512_s10 = inlined_call_operand.vmem [shape: f32[2,32], index: 10, kind: input, shape index: {}]   ;;  %s9513_s16 = inlined_call_operand.vmem [shape: bf16[128,32], index: 16, kind: input, shape index: {}]   ;;  %s9514_s12 = inlined_call_operand.vmem [shape: bf16[32,512], index: 12, kind: input, shape index: {}]   ;;  %s9515_s17 = inlined_call_operand.vmem [shape: bf16[512,48], index: 17, kind: input, shape index: {}]   ;;  %s9516_s15 = inlined_call_operand.vmem [shape: f32[2,32], index: 15, kind: input, shape index: {}]   ;;  %s9517_s14 = inlined_call_operand.vmem [shape: f32[1,64], index: 14, kind: input, shape index: {}]   ;;  %s9518_s19 = inlined_call_operand.vmem [shape: bf16[48,192], index: 19, kind: input, shape index: {}]   ;;  %s9519_s21 = inlined_call_operand.vmem [shape: bf16[192,64], index: 21, kind: input, shape index: {}]   ;;  %s9520_s18 = inlined_call_operand.vmem [shape: f32[2,48], index: 18, kind: input, shape index: {}]   ;;  %s9521_s20 = inlined_call_operand.vmem [shape: bf16[8,192], index: 20, kind: input, shape index: {}]   ;;  %s9522_s23 = inlined_call_operand.vmem [shape: f32[2,8], index: 23, kind: input, shape index: {}]   ;;  %s9523_s22 = inlined_call_operand.vmem [shape: f32[1,64], index: 22, kind: input, shape index: {}]  }
   0x1   :  { %9531 = sst [smem:[#allocation2_spill]] %s9499_s1  ;;  %552 = vmatprep.mubr.bf16.mxu1 %v7820_v19  ;;  %vm6184_vm3 = vcmask 517120   ;;  %vm3976_vm4 = vcmask 261120   ;;  %vm6197_vm5 = vcmask 1041920   ;;  %vm6058_vm6 = vcmask 523264  }
   0x2   :  { %9532 = sst [smem:[#allocation3_spill]] %s9500_s0  ;;  %s9540_s27 = sld [smem:[#allocation2_spill]]  ;;  %vm6110_vm7 = vcmask 64512  }
   0x3   :  { %9533 = sst [smem:[#allocation4_spill]] %s9501_s3  ;;  %s9541_s1 = sld [smem:[#allocation3_spill]] }
   0x4   :  { %9534 = sst [smem:[#allocation5_spill]] %s9502_s2 }
   0x5   :  { %9535 = sst [smem:[#allocation6_spill]] %s9503_s5  ;;  %s9543_s0 = sld [smem:[#allocation5_spill]] }
   0x6   :  { %9536 = sst [smem:[#allocation7_spill]] %s9504_s4 }
   0x7   :  { %9537 = sst [smem:[#allocation8_spill]] %s9505_s8  ;;  %s9545_s4 = sld [smem:[#allocation7_spill]] }
   0x8   :  { %9538 = sst [smem:[#allocation9_spill]] %s9506_s9  ;;  %v7586_v0 = vld [vmem:[%s9540_s27] sm:$0xff]   ;;  %v7587_v1 = vld [vmem:[%s9540_s27 + $0x8] sm:$0xff]   ;;  %v7588_v3 = vld [vmem:[%s9540_s27 + $0x10] sm:$0xff]   ;;  %s9544_s27 = sld [smem:[#allocation6_spill]] }
   0x9   :  { %9539 = sst [smem:[#allocation10_spill]] %s9507_s7  ;;  %7033 = vmatprep.subr.bf16.mxu0 %v7586_v0  ;;  %v7589_v2 = vld [vmem:[%s9541_s1] sm:$0xff]   ;;  %v7590_v4 = vld [vmem:[%s9541_s1 + $0x8] sm:$0xff]   ;;  %v7591_v5 = vld [vmem:[%s9541_s1 + $0x10] sm:$0xff]   ;;  %s9542_s7 = sld [smem:[#allocation4_spill]] }
   0xa   :  { %7034 = vmatpush3.bf16.msra.mxu0 %v7586_v0  ;;  %7039 = vmatprep.mubr.msk.bf16.mxu0 %vm158_vm0, %v7589_v2  ;;  %v7592_v6 = vld [vmem:[%s9541_s1 + $0x18] sm:$0xff]   ;;  %v7593_v7 = vld [vmem:[%s9541_s1 + $0x20] sm:$0xff]   ;;  %v7594_v8 = vld [vmem:[%s9541_s1 + $0x28] sm:$0xff]   ;;  %s9546_s5 = sld [smem:[#allocation8_spill]]  ;;  %s9547_s9 = sld [smem:[#allocation9_spill]] }
   0xb   :  { %7035 = vmatprep.subr.bf16.mxu0 %v7587_v1  ;;  %v7595_v9 = vld [vmem:[%s9541_s1 + $0x30] sm:$0xff]   ;;  %v7596_v10 = vld [vmem:[%s9541_s1 + $0x38] sm:$0xff]   ;;  %s9548_s25 = sld [smem:[#allocation10_spill]] }
   0xe   :  { %7036 = vmatpush3.bf16.msra.mxu0 %v7587_v1 }
   0xf   :  { %7037 = vmatprep.subr.bf16.mxu0 %v7588_v3  ;;  %v449_v11 = vld [vmem:[%s9542_s7 + $0x8] sm:$0xff]  ;;  %v448_v13 = vld [vmem:[%s9542_s7] sm:$0xff]  ;;  %v8009_v20 = vld [vmem:[%s9542_s7 + $0x10] sm:$0xff] }
  0x10   :  { %v453_v12 = vld [vmem:[%s9542_s7 + $0x28] sm:$0xff]  ;;  %v452_v15 = vld [vmem:[%s9542_s7 + $0x20] sm:$0xff]  ;;  %v8014_v21 = vld [vmem:[%s9542_s7 + $0x30] sm:$0xff] }
  0x11   :  { %v6226_v14 = vcombine.high %v449_v11, %v453_v12  ;;  %v6225_v16 = vcombine.low %v449_v11, %v453_v12  ;;  %v6224_v17 = vcombine.high %v448_v13, %v452_v15  ;;  %v6223_v18 = vcombine.low %v448_v13, %v452_v15  ;;  %v8023_v24 = vld [vmem:[%s9542_s7 + $0x18] sm:$0xff] }
  0x12   :  { %7038 = vmatpush3.bf16.msra.mxu0 %v7588_v3  ;;  %v6227_v22 = vcombine.low %v8009_v20, %v8014_v21  ;;  %v6228_v23 = vcombine.high %v8009_v20, %v8014_v21  ;;  %v8028_v25 = vld [vmem:[%s9542_s7 + $0x38] sm:$0xff]  ;;  %v7598_v20 = vld [vmem:[%s9544_s27] sm:$0xff]  }
  0x13   :  { %633 = vmatprep.subr.bf16.mxu0 %v6226_v14  ;;  %520 = vmatprep.subr.bf16.mxu1 %v6224_v17  ;;  %v6229_v26 = vcombine.low %v8023_v24, %v8028_v25  ;;  %v6230_v27 = vcombine.high %v8023_v24, %v8028_v25  ;;  %v7600_v21 = vld [vmem:[%s9544_s27 + $0x80] sm:$0xff]   ;;  %v7603_v24 = vld [vmem:[%s9544_s27 + $0xc8] sm:$0xff]  }
  0x14   :  { %521 = vmatpush1.bf16.msra.mxu1 %v6223_v18  ;;  %v7602_v25 = vld [vmem:[%s9544_s27 + $0x8] sm:$0xff]  }
  0x15   :  { %7040 = vmatmul.mubr.msk.bf16.vlgmr.msra.gmra.mrb[0].mxu0 %vm158_vm0, %v7590_v4  ;;  %746 = vmatprep.subr.bf16.mxu1 %v6228_v23 }
  0x16   :  { %7043 = vmatprep.mubr.msk.bf16.mxu0 %vm158_vm0, %v7591_v5  ;;  %634 = vmatpush1.bf16.msra.mxu0 %v6225_v16 }
  0x17   :  { %859 = vmatprep.subr.bf16.mxu0 %v6230_v27 }
  0x1d   :  { %7044 = vmatmul.mubr.msk.bf16.gmra.mrb[4].mxu0 %vm158_vm0, %v7592_v6 }
  0x1e   :  { %7047 = vmatprep.mubr.msk.bf16.mxu0 %vm158_vm0, %v7593_v7 }
  0x25   :  { %7048 = vmatmul.mubr.msk.bf16.gmra.mrb[8].mxu0 %vm158_vm0, %v7594_v8 }
  0x26   :  { %7051 = vmatprep.mubr.msk.bf16.mxu0 %vm158_vm0, %v7595_v9 }
  0x2d   :  { %7052 = vmatmul.mubr.msk.bf16.gmra.mrb[12].mxu0 %vm158_vm0, %v7596_v10 }
  0x2e   :  { %665 = vmatprep.mubr.bf16.mxu0 %v7820_v19 }
  0xe8   :  { %v8034_v28 = vpop.f32.mrb[0].mxu0 }
  0xe9   :  { %v8036_v29 = vpop.f32.mrb[1].mxu0  ;;  %v321_v33 = vmul.f32 %v8034_v28, %v8034_v28  ;;  %v285_v38 = vsel %vm281_vm1, %v8034_v28, 0.0 }
  0xea   :  { %v319_v30 = vmul.f32 %v8036_v29, %v8036_v29  ;;  %v8040_v31 = vpop.f32.mrb[2].mxu0  ;;  %v282_v34 = vsel %vm281_vm1, %v8036_v29, 0.0 }
  0xeb   :  { %v8042_v32 = vpop.f32.mrb[3].mxu0  ;;  %v322_v40 = vmul.f32 %v8040_v31, %v8040_v31  ;;  %v338_v44 = vsel %vm281_vm1, %v321_v33, 0.0  ;;  %v287_v45 = vsel %vm281_vm1, %v8040_v31, 0.0 }
  0xec   :  { %v283_v35 = vsel %vm281_vm1, %v8042_v32, 0.0  ;;  %v320_v36 = vmul.f32 %v8042_v32, %v8042_v32  ;;  %v335_v39 = vsel %vm281_vm1, %v319_v30, 0.0 }
  0xed   :  { %v284_v37 = vadd.f32 %v283_v35, %v282_v34  ;;  %v340_v50 = vsel %vm281_vm1, %v322_v40, 0.0 }
  0xee   :  { %v336_v41 = vsel %vm281_vm1, %v320_v36, 0.0 }
  0xef   :  { %v286_v42 = vadd.f32 %v285_v38, %v284_v37  ;;  %v337_v43 = vadd.f32 %v336_v41, %v335_v39 }
  0xf0   :  { %v8061_v46 = vpop.f32.mrb[4].mxu0 }
  0xf1   :  { %v339_v47 = vadd.f32 %v338_v44, %v337_v43  ;;  %v8063_v48 = vpop.f32.mrb[5].mxu0  ;;  %v288_v49 = vadd.f32 %v287_v45, %v286_v42  ;;  %v325_v57 = vmul.f32 %v8061_v46, %v8061_v46  ;;  %v293_v63 = vsel %vm281_vm1, %v8061_v46, 0.0 }
  0xf2   :  { %v289_v51 = vsel %vm281_vm1, %v8063_v48, 0.0  ;;  %v323_v52 = vmul.f32 %v8063_v48, %v8063_v48  ;;  %v8070_v53 = vpop.f32.mrb[6].mxu0 }
  0xf3   :  { %v290_v54 = vadd.f32 %v289_v51, %v288_v49  ;;  %v341_v55 = vadd.f32 %v340_v50, %v339_v47  ;;  %v8072_v56 = vpop.f32.mrb[7].mxu0  ;;  %v326_v0 = vmul.f32 %v8070_v53, %v8070_v53  ;;  %v346_v4 = vsel %vm281_vm1, %v325_v57, 0.0 }
  0xf4   :  { %v342_v58 = vsel %vm281_vm1, %v323_v52, 0.0  ;;  %v291_v59 = vsel %vm281_vm1, %v8072_v56, 0.0  ;;  %v324_v60 = vmul.f32 %v8072_v56, %v8072_v56  ;;  %v295_v5 = vsel %vm281_vm1, %v8070_v53, 0.0 }
  0xf5   :  { %v343_v61 = vadd.f32 %v342_v58, %v341_v55  ;;  %v292_v62 = vadd.f32 %v291_v59, %v290_v54  ;;  %v348_v10 = vsel %vm281_vm1, %v326_v0, 0.0 }
  0xf6   :  { %v344_v1 = vsel %vm281_vm1, %v324_v60, 0.0 }
  0xf7   :  { %v294_v2 = vadd.f32 %v293_v63, %v292_v62  ;;  %v345_v3 = vadd.f32 %v344_v1, %v343_v61 }
  0xf8   :  { %v8089_v6 = vpop.f32.mrb[8].mxu0 }
  0xf9   :  { %v347_v7 = vadd.f32 %v346_v4, %v345_v3  ;;  %v8091_v8 = vpop.f32.mrb[9].mxu0  ;;  %v296_v9 = vadd.f32 %v295_v5, %v294_v2  ;;  %v329_v17 = vmul.f32 %v8089_v6, %v8089_v6  ;;  %v301_v34 = vsel %vm281_vm1, %v8089_v6, 0.0 }
  0xfa   :  { %v297_v11 = vsel %vm281_vm1, %v8091_v8, 0.0  ;;  %v327_v12 = vmul.f32 %v8091_v8, %v8091_v8  ;;  %v8098_v13 = vpop.f32.mrb[10].mxu0 }
  0xfb   :  { %v298_v14 = vadd.f32 %v297_v11, %v296_v9  ;;  %v349_v15 = vadd.f32 %v348_v10, %v347_v7  ;;  %v8100_v16 = vpop.f32.mrb[11].mxu0  ;;  %v330_v35 = vmul.f32 %v8098_v13, %v8098_v13  ;;  %v354_v39 = vsel %vm281_vm1, %v329_v17, 0.0 }
  0xfc   :  { %v350_v18 = vsel %vm281_vm1, %v327_v12, 0.0  ;;  %v299_v23 = vsel %vm281_vm1, %v8100_v16, 0.0  ;;  %v328_v27 = vmul.f32 %v8100_v16, %v8100_v16  ;;  %v303_v40 = vsel %vm281_vm1, %v8098_v13, 0.0 }
  0xfd   :  { %v351_v30 = vadd.f32 %v350_v18, %v349_v15  ;;  %v300_v33 = vadd.f32 %v299_v23, %v298_v14  ;;  %v356_v45 = vsel %vm281_vm1, %v330_v35, 0.0 }
  0xfe   :  { %v352_v36 = vsel %vm281_vm1, %v328_v27, 0.0 }
  0xff   :  { %v302_v37 = vadd.f32 %v301_v34, %v300_v33  ;;  %v353_v38 = vadd.f32 %v352_v36, %v351_v30 }
 0x100   :  { %v8117_v41 = vpop.f32.mrb[12].mxu0 }
 0x101   :  { %v355_v42 = vadd.f32 %v354_v39, %v353_v38  ;;  %v265_v43 = vpop.f32.mrb[13].mxu0  ;;  %v304_v44 = vadd.f32 %v303_v40, %v302_v37  ;;  %v333_v55 = vmul.f32 %v8117_v41, %v8117_v41  ;;  %v309_v62 = vsel %vm281_vm1, %v8117_v41, 0.0 }
 0x102   :  { %v305_v47 = vsel %vm281_vm1, %v265_v43, 0.0  ;;  %v331_v49 = vmul.f32 %v265_v43, %v265_v43  ;;  %v8121_v50 = vpop.f32.mrb[14].mxu0 }
 0x103   :  { %v306_v51 = vadd.f32 %v305_v47, %v304_v44  ;;  %v357_v52 = vadd.f32 %v356_v45, %v355_v42  ;;  %v268_v54 = vpop.f32.mrb[15].mxu0  ;;  %v334_v63 = vmul.f32 %v8121_v50, %v8121_v50  ;;  %v362_v3 = vsel %vm281_vm1, %v333_v55, 0.0  ;;  %v280_v45 = vld [vmem:[%s9543_s0] sm:$0x3] }
 0x104   :  { %v358_v57 = vsel %vm281_vm1, %v331_v49, 0.0  ;;  %v307_v58 = vsel %vm281_vm1, %v268_v54, 0.0  ;;  %v332_v59 = vmul.f32 %v268_v54, %v268_v54  ;;  %v311_v4 = vsel %vm281_vm1, %v8121_v50, 0.0 }
 0x105   :  { %v359_v60 = vadd.f32 %v358_v57, %v357_v52  ;;  %v308_v61 = vadd.f32 %v307_v58, %v306_v51  ;;  %v364_v9 = vsel %vm281_vm1, %v334_v63, 0.0  ;;  %v384_v42 = vlaneseq }
 0x106   :  { %v360_v0 = vsel %vm281_vm1, %v332_v59, 0.0 }
 0x107   :  { %v310_v1 = vadd.f32 %v309_v62, %v308_v61  ;;  %v361_v2 = vadd.f32 %v360_v0, %v359_v60  ;;  %v8136_v44 = vshrl.u32 %v384_v42, 7 }
 0x109   :  { %v312_v5 = vadd.f32 %v311_v4, %v310_v1  ;;  %v363_v7 = vadd.f32 %v362_v3, %v361_v2  ;;  %v8142_v47 = vsub.s32 0, %v8136_v44  ;;  %v8146_v57 = vsub.s32 1, %v8136_v44 }
 0x10b   :  { %v313_v10 = vrot.slane %v312_v5, 4  ;;  %v365_v11 = vadd.f32 %v364_v9, %v363_v7 }
 0x10d   :  { %v314_v12 = vadd.f32 %v313_v10, %v312_v5  ;;  %v366_v14 = vrot.slane %v365_v11, 4 }
 0x10f   :  { %v315_v15 = vrot.slane %v314_v12, 2  ;;  %v367_v17 = vadd.f32 %v366_v14, %v365_v11 }
 0x111   :  { %v316_v18 = vadd.f32 %v315_v15, %v314_v12  ;;  %v368_v23 = vrot.slane %v367_v17, 2 }
 0x113   :  { %v317_v27 = vrot.slane %v316_v18, 1  ;;  %v369_v30 = vadd.f32 %v368_v23, %v367_v17 }
 0x115   :  { %v318_v33 = vadd.f32 %v317_v27, %v316_v18  ;;  %v370_v34 = vrot.slane %v369_v30, 1 }
 0x117   :  { %v371_v35 = vadd.f32 %v370_v34, %v369_v30  ;;  %v372_v36 = vmul.f32 0.0078125, %v318_v33  ;;  %v7597_v30 = vld [vmem:[%s9544_s27 + $0x40] sm:$0xff]  }
 0x119   :  { %v373_v37 = vmul.f32 0.0078125, %v371_v35  ;;  %v374_v38 = vmul.f32 %v372_v36, %v372_v36 }
 0x11b   :  { %v375_v39 = vsub.f32 %v373_v37, %v374_v38  ;;  %v7599_v37 = vld [vmem:[%s9544_s27 + $0xc0] sm:$0xff]  }
 0x11d   :  { %v376_v40 = vadd.f32 1e-05, %v375_v39 }
 0x11f   :  { %7814 = vrsqrt.f32 %v376_v40 }
 0x129   :  { %v7815_v49 = vpop.eup %7814 }
 0x12a   :  { %v378_v51 = vmul.f32 %v7815_v49, %v280_v45 }
 0x12c   :  { %v379_v52 = vmul.f32 %v378_v51, %v372_v36  ;;  %v387_v55 = vrot.slane %v378_v51, %v8142_v47 }
 0x12e   :  { %v381_v58 = vrot.slane %v379_v52, 7  ;;  %v400_v59 = vmul.f32 %v387_v55, %v265_v43  ;;  %v401_v60 = vmul.f32 %v387_v55, %v268_v54  ;;  %v388_v61 = vmul.f32 %v387_v55, %v8036_v29 }
 0x12f   :  { %v389_v62 = vmul.f32 %v387_v55, %v8042_v32  ;;  %v390_v63 = vmul.f32 %v8034_v28, %v387_v55  ;;  %v391_v0 = vmul.f32 %v8040_v31, %v387_v55  ;;  %v392_v1 = vmul.f32 %v387_v55, %v8063_v48 }
 0x130   :  { %v383_v2 = vsub.f32 %v280_v45, %v381_v58  ;;  %v393_v3 = vmul.f32 %v387_v55, %v8072_v56  ;;  %v394_v4 = vmul.f32 %v8061_v46, %v387_v55  ;;  %v395_v5 = vmul.f32 %v8070_v53, %v387_v55 }
 0x131   :  { %v396_v43 = vmul.f32 %v387_v55, %v8091_v8  ;;  %v397_v54 = vmul.f32 %v387_v55, %v8100_v16  ;;  %v398_v29 = vmul.f32 %v8089_v6, %v387_v55  ;;  %v399_v32 = vmul.f32 %v8098_v13, %v387_v55 }
 0x132   :  { %v407_v28 = vrot.slane %v383_v2, %v8146_v57  ;;  %v402_v31 = vmul.f32 %v8117_v41, %v387_v55  ;;  %v403_v48 = vmul.f32 %v8121_v50, %v387_v55  ;;  %v7607_v2 = vld [vmem:[%s9544_s27 + $0xd0] sm:$0xff]  }
 0x134   :  { %v420_v7 = vadd.f32 %v407_v28, %v400_v59  ;;  %v421_v56 = vadd.f32 %v407_v28, %v401_v60  ;;  %v408_v9 = vadd.f32 %v407_v28, %v388_v61  ;;  %v409_v46 = vadd.f32 %v407_v28, %v389_v62 }
 0x135   :  { %v410_v10 = vadd.f32 %v407_v28, %v390_v63  ;;  %v411_v53 = vadd.f32 %v407_v28, %v391_v0  ;;  %v412_v11 = vadd.f32 %v407_v28, %v392_v1  ;;  %v413_v8 = vadd.f32 %v407_v28, %v393_v3  ;;  %v7605_v1 = vld [vmem:[%s9544_s27 + $0x50] sm:$0xff]  }
 0x136   :  { %v436_v12 = vmax.f32 %v420_v7, 0.0  ;;  %v437_v16 = vmax.f32 %v421_v56, 0.0  ;;  %v424_v14 = vmax.f32 %v408_v9, 0.0  ;;  %v425_v6 = vmax.f32 %v409_v46, 0.0  ;;  %v7606_v3 = vld [vmem:[%s9544_s27 + $0x10] sm:$0xff]   ;;  %v7617_v7 = vld [vmem:[%s9544_s27 + $0x68] sm:$0xff]  }
 0x137   :  { %v426_v15 = vmax.f32 %v410_v10, 0.0  ;;  %v427_v13 = vmax.f32 %v411_v53, 0.0  ;;  %v428_v17 = vmax.f32 %v412_v11, 0.0  ;;  %v429_v18 = vmax.f32 %v413_v8, 0.0  ;;  %v7619_v56 = vld [vmem:[%s9544_s27 + $0xe8] sm:$0xff]   ;;  %v7621_v10 = vld [vmem:[%s9544_s27 + $0x70] sm:$0xff]  }
 0x138   :  { %v8163_v23 = vpack.c.bf16 %v437_v16, %v436_v12  ;;  %v8165_v41 = vpack.c.bf16 %v425_v6, %v424_v14  ;;  %v414_v50 = vadd.f32 %v407_v28, %v394_v4  ;;  %v415_v27 = vadd.f32 %v407_v28, %v395_v5  ;;  %v7608_v4 = vld [vmem:[%s9544_s27 + $0x90] sm:$0xff]   ;;  %v7609_v5 = vld [vmem:[%s9544_s27 + $0x58] sm:$0xff]   ;;  %v7618_v9 = vld [vmem:[%s9544_s27 + $0x28] sm:$0xff]  }
 0x139   :  { %v8170_v33 = vpack.c.bf16 %v427_v13, %v426_v15  ;;  %v8172_v34 = vpack.c.bf16 %v429_v18, %v428_v17  ;;  %v416_v35 = vadd.f32 %v407_v28, %v396_v43  ;;  %v417_v36 = vadd.f32 %v407_v28, %v397_v54  ;;  %v7611_v43 = vld [vmem:[%s9544_s27 + $0xd8] sm:$0xff]   ;;  %v7620_v46 = vld [vmem:[%s9544_s27 + $0xa8] sm:$0xff]   ;;  %v7623_v53 = vld [vmem:[%s9544_s27 + $0xf0] sm:$0xff]  }
 0x13a   :  { %6231 = vmatmul.mubr.msk.bf16.vlgmr.msra.gmra.mrb[0].mxu1 %vm281_vm1, %v8165_v41  ;;  %6239 = vmatmul.mubr.msk.bf16.vlgmr.msra.gmra.mrb[16].mxu0 %vm281_vm1, %v8165_v41  ;;  %v430_v38 = vmax.f32 %v414_v50, 0.0  ;;  %v431_v39 = vmax.f32 %v415_v27, 0.0  ;;  %v418_v40 = vadd.f32 %v407_v28, %v398_v29  ;;  %v419_v42 = vadd.f32 %v407_v28, %v399_v32  ;;  %v7610_v54 = vld [vmem:[%s9544_s27 + $0x18] sm:$0xff]   ;;  %v7613_v32 = vld [vmem:[%s9544_s27 + $0x60] sm:$0xff]   ;;  %v7622_v11 = vld [vmem:[%s9544_s27 + $0x30] sm:$0xff]  }
 0x13b   :  { %562 = vmatprep.mubr.bf16.mxu1 %v7820_v19  ;;  %675 = vmatprep.mubr.bf16.mxu0 %v7820_v19  ;;  %v432_v45 = vmax.f32 %v416_v35, 0.0  ;;  %v433_v49 = vmax.f32 %v417_v36, 0.0  ;;  %v422_v51 = vadd.f32 %v407_v28, %v402_v31  ;;  %v423_v52 = vadd.f32 %v407_v28, %v403_v48  ;;  %v7612_v29 = vld [vmem:[%s9544_s27 + $0x98] sm:$0xff]   ;;  %v7615_v28 = vld [vmem:[%s9544_s27 + $0xe0] sm:$0xff]   ;;  %v7624_v8 = vld [vmem:[%s9544_s27 + $0xb0] sm:$0xff]  }
 0x13c   :  { %747 = vmatpush1.bf16.msra.mxu1 %v6227_v22  ;;  %860 = vmatpush1.bf16.msra.mxu0 %v6229_v26  ;;  %v8189_v55 = vpack.c.bf16 %v431_v39, %v430_v38  ;;  %v434_v58 = vmax.f32 %v418_v40, 0.0  ;;  %v435_v59 = vmax.f32 %v419_v42, 0.0  ;;  %v7601_v22 = vld [vmem:[%s9544_s27 + $0x48] sm:$0xff]   ;;  %v7614_v31 = vld [vmem:[%s9544_s27 + $0x20] sm:$0xff]   ;;  %v7625_v12 = vld [vmem:[%s9544_s27 + $0x78] sm:$0xff]  }
 0x13d   :  { %v8191_v60 = vpack.c.bf16 %v433_v49, %v432_v45  ;;  %v438_v61 = vmax.f32 %v422_v51, 0.0  ;;  %v439_v62 = vmax.f32 %v423_v52, 0.0  ;;  %6551 = vmatprep.subr.bf16.mxu1 %v7597_v30  ;;  %6615 = vmatprep.subr.bf16.mxu0 %v7599_v37  ;;  %v7604_v26 = vld [vmem:[%s9544_s27 + $0x88] sm:$0xff]   ;;  %v7616_v48 = vld [vmem:[%s9544_s27 + $0xa0] sm:$0xff]   ;;  %v7627_v16 = vld [vmem:[%s9544_s27 + $0xf8] sm:$0xff]  }
 0x13e   :  { %v8193_v63 = vpack.c.bf16 %v435_v59, %v434_v58  ;;  %v7626_v14 = vld [vmem:[%s9544_s27 + $0x38] sm:$0xff]   ;;  %v7629_v15 = vld [vmem:[%s9544_s27 + $0x140] sm:$0xff]   ;;  %v973_v18 = vld [vmem:[%s9545_s4 + $0x8] sm:$0xff] }
 0x13f   :  { %v8195_v0 = vpack.c.bf16 %v439_v62, %v438_v61  ;;  %v7628_v6 = vld [vmem:[%s9544_s27 + $0xb8] sm:$0xff]   ;;  %v7637_v13 = vld [vmem:[%s9544_s27 + $0x1c0] sm:$0xff]   ;;  %v977_v27 = vld [vmem:[%s9545_s4 + $0x28] sm:$0xff]  ;;  %v1038_v35 = vunpack.c.l.bf16 %v973_v18  ;;  %v1039_v42 = vunpack.c.h.bf16 %v973_v18 }
 0x140   :  { %v972_v17 = vld [vmem:[%s9545_s4] sm:$0xff]  ;;  %v1046_v37 = vunpack.c.l.bf16 %v977_v27  ;;  %v1047_v49 = vunpack.c.h.bf16 %v977_v27  ;;  %v981_v62 = vld [vmem:[%s9545_s4 + $0x48] sm:$0xff] }
 0x141   :  { %v976_v50 = vld [vmem:[%s9545_s4 + $0x20] sm:$0xff]  ;;  %v1036_v30 = vunpack.c.l.bf16 %v972_v17  ;;  %v1037_v40 = vunpack.c.h.bf16 %v972_v17 }
 0x142   :  { %6232 = vmatmul.mubr.msk.bf16.gmra.mrb[4].mxu1 %vm281_vm1, %v8170_v33  ;;  %6240 = vmatmul.mubr.msk.bf16.gmra.mrb[20].mxu0 %vm281_vm1, %v8170_v33  ;;  %v1044_v36 = vunpack.c.l.bf16 %v976_v50  ;;  %v1045_v45 = vunpack.c.h.bf16 %v976_v50  ;;  %v980_v58 = vld [vmem:[%s9545_s4 + $0x40] sm:$0xff]  ;;  %v7633_v50 = vld [vmem:[%s9544_s27 + $0x150] sm:$0xff]  }
 0x143   :  { %572 = vmatprep.mubr.bf16.mxu1 %v7820_v19  ;;  %685 = vmatprep.mubr.bf16.mxu0 %v7820_v19  ;;  %v8423_v18 = vld [vmem:[%s9545_s4 + $0x80] sm:$0xff] }
 0x14a   :  { %6233 = vmatmul.mubr.msk.bf16.gmra.mrb[8].mxu1 %vm281_vm1, %v8172_v34  ;;  %6241 = vmatmul.mubr.msk.bf16.gmra.mrb[24].mxu0 %vm281_vm1, %v8172_v34 }
 0x14b   :  { %582 = vmatprep.mubr.bf16.mxu1 %v7820_v19  ;;  %695 = vmatprep.mubr.bf16.mxu0 %v7820_v19 }
 0x152   :  { %6234 = vmatmul.mubr.msk.bf16.gmra.mrb[12].mxu1 %vm281_vm1, %v8189_v55  ;;  %6242 = vmatmul.mubr.msk.bf16.gmra.mrb[28].mxu0 %vm281_vm1, %v8189_v55 }
 0x153   :  { %592 = vmatprep.mubr.bf16.mxu1 %v7820_v19  ;;  %705 = vmatprep.mubr.bf16.mxu0 %v7820_v19 }
 0x15a   :  { %6235 = vmatmul.mubr.msk.bf16.gmra.mrb[16].mxu1 %vm281_vm1, %v8191_v60  ;;  %6243 = vmatmul.mubr.msk.bf16.gmra.mrb[32].mxu0 %vm281_vm1, %v8191_v60 }
 0x15b   :  { %602 = vmatprep.mubr.bf16.mxu1 %v7820_v19  ;;  %715 = vmatprep.mubr.bf16.mxu0 %v7820_v19 }
 0x162   :  { %6236 = vmatmul.mubr.msk.bf16.gmra.mrb[20].mxu1 %vm281_vm1, %v8193_v63  ;;  %6244 = vmatmul.mubr.msk.bf16.gmra.mrb[36].mxu0 %vm281_vm1, %v8193_v63 }
 0x163   :  { %612 = vmatprep.mubr.bf16.mxu1 %v7820_v19  ;;  %725 = vmatprep.mubr.bf16.mxu0 %v7820_v19 }
 0x16a   :  { %6237 = vmatmul.mubr.msk.bf16.gmra.mrb[24].mxu1 %vm281_vm1, %v8163_v23  ;;  %6245 = vmatmul.mubr.msk.bf16.gmra.mrb[40].mxu0 %vm281_vm1, %v8163_v23 }
 0x16b   :  { %622 = vmatprep.mubr.bf16.mxu1 %v7820_v19  ;;  %735 = vmatprep.mubr.bf16.mxu0 %v7820_v19 }
 0x172   :  { %6238 = vmatmul.mubr.msk.bf16.gmra.mrb[28].mxu1 %vm281_vm1, %v8195_v0  ;;  %6246 = vmatmul.mubr.msk.bf16.gmra.mrb[44].mxu0 %vm281_vm1, %v8195_v0 }
 0x173   :  { %778 = vmatprep.mubr.bf16.mxu1 %v7820_v19  ;;  %891 = vmatprep.mubr.bf16.mxu0 %v7820_v19 }
 0x17a   :  { %6247 = vmatmul.mubr.msk.bf16.vlgmr.msra.gmra.mrb[32].mxu1 %vm281_vm1, %v8165_v41  ;;  %6255 = vmatmul.mubr.msk.bf16.vlgmr.msra.gmra.mrb[48].mxu0 %vm281_vm1, %v8165_v41 }
 0x17b   :  { %788 = vmatprep.mubr.bf16.mxu1 %v7820_v19  ;;  %901 = vmatprep.mubr.bf16.mxu0 %v7820_v19 }
 0x17c   :  { %6552 = vmatpush3.bf16.msra.mxu1 %v7598_v20  ;;  %6616 = vmatpush3.bf16.msra.mxu0 %v7600_v21 }
 0x17d   :  { %6553 = vmatprep.subr.bf16.mxu1 %v7601_v22  ;;  %6617 = vmatprep.subr.bf16.mxu0 %v7603_v24 }
 0x180   :  { %6554 = vmatpush3.bf16.msra.mxu1 %v7602_v25  ;;  %6618 = vmatpush3.bf16.msra.mxu0 %v7604_v26 }
 0x181   :  { %6555 = vmatprep.subr.bf16.mxu1 %v7605_v1  ;;  %6619 = vmatprep.subr.bf16.mxu0 %v7607_v2  ;;  %v984_v1 = vld [vmem:[%s9545_s4 + $0x60] sm:$0xff]  ;;  %v985_v2 = vld [vmem:[%s9545_s4 + $0x68] sm:$0xff] }
 0x182   :  { %6248 = vmatmul.mubr.msk.bf16.gmra.mrb[36].mxu1 %vm281_vm1, %v8170_v33  ;;  %6256 = vmatmul.mubr.msk.bf16.gmra.mrb[52].mxu0 %vm281_vm1, %v8170_v33 }
 0x183   :  { %798 = vmatprep.mubr.bf16.mxu1 %v7820_v19  ;;  %911 = vmatprep.mubr.bf16.mxu0 %v7820_v19 }
 0x184   :  { %6556 = vmatpush3.bf16.msra.mxu1 %v7606_v3  ;;  %6620 = vmatpush3.bf16.msra.mxu0 %v7608_v4 }
 0x185   :  { %6557 = vmatprep.subr.bf16.mxu1 %v7609_v5  ;;  %6621 = vmatprep.subr.bf16.mxu0 %v7611_v43 }
 0x188   :  { %6558 = vmatpush3.bf16.msra.mxu1 %v7610_v54  ;;  %6622 = vmatpush3.bf16.msra.mxu0 %v7612_v29  ;;  %v7630_v54 = vld [vmem:[%s9544_s27 + $0x100] sm:$0xff]  }
 0x189   :  { %6559 = vmatprep.subr.bf16.mxu1 %v7613_v32  ;;  %6623 = vmatprep.subr.bf16.mxu0 %v7615_v28  ;;  %v7638_v29 = vld [vmem:[%s9544_s27 + $0x180] sm:$0xff]  }
 0x18a   :  { %6249 = vmatmul.mubr.msk.bf16.gmra.mrb[40].mxu1 %vm281_vm1, %v8172_v34  ;;  %6257 = vmatmul.mubr.msk.bf16.gmra.mrb[56].mxu0 %vm281_vm1, %v8172_v34 }
 0x18b   :  { %808 = vmatprep.mubr.bf16.mxu1 %v7820_v19  ;;  %921 = vmatprep.mubr.bf16.mxu0 %v7820_v19 }
 0x18c   :  { %6560 = vmatpush3.bf16.msra.mxu1 %v7614_v31  ;;  %6624 = vmatpush3.bf16.msra.mxu0 %v7616_v48  ;;  %v7631_v31 = vld [vmem:[%s9544_s27 + $0x148] sm:$0xff]  }
 0x18d   :  { %6561 = vmatprep.subr.bf16.mxu1 %v7617_v7  ;;  %6625 = vmatprep.subr.bf16.mxu0 %v7619_v56  ;;  %v7643_v48 = vld [vmem:[%s9544_s27 + $0x1c8] sm:$0xff]  }
 0x190   :  { %6562 = vmatpush3.bf16.msra.mxu1 %v7618_v9  ;;  %6626 = vmatpush3.bf16.msra.mxu0 %v7620_v46  ;;  %v1052_v9 = vunpack.c.l.bf16 %v980_v58  ;;  %v1054_v46 = vunpack.c.l.bf16 %v981_v62 }
 0x191   :  { %6563 = vmatprep.subr.bf16.mxu1 %v7621_v10  ;;  %6627 = vmatprep.subr.bf16.mxu0 %v7623_v53  ;;  %v1060_v10 = vunpack.c.l.bf16 %v984_v1  ;;  %v1062_v53 = vunpack.c.l.bf16 %v985_v2 }
 0x192   :  { %6250 = vmatmul.mubr.msk.bf16.gmra.mrb[44].mxu1 %vm281_vm1, %v8189_v55  ;;  %6258 = vmatmul.mubr.msk.bf16.gmra.mrb[60].mxu0 %vm281_vm1, %v8189_v55 }
 0x193   :  { %818 = vmatprep.mubr.bf16.mxu1 %v7820_v19  ;;  %931 = vmatprep.mubr.bf16.mxu0 %v7820_v19 }
 0x194   :  { %6564 = vmatpush3.bf16.msra.mxu1 %v7622_v11  ;;  %6628 = vmatpush3.bf16.msra.mxu0 %v7624_v8 }
 0x195   :  { %6565 = vmatprep.subr.bf16.mxu1 %v7625_v12  ;;  %6629 = vmatprep.subr.bf16.mxu0 %v7627_v16  ;;  %v1053_v12 = vunpack.c.h.bf16 %v980_v58  ;;  %v1055_v16 = vunpack.c.h.bf16 %v981_v62 }
 0x198   :  { %6566 = vmatpush3.bf16.msra.mxu1 %v7626_v14  ;;  %6630 = vmatpush3.bf16.msra.mxu0 %v7628_v6  ;;  %v1061_v14 = vunpack.c.h.bf16 %v984_v1  ;;  %v1063_v6 = vunpack.c.h.bf16 %v985_v2 }
 0x199   :  { %6679 = vmatprep.subr.bf16.mxu1 %v7629_v15  ;;  %6743 = vmatprep.subr.bf16.mxu0 %v7637_v13  ;;  %v7632_v15 = vld [vmem:[%s9544_s27 + $0x108] sm:$0xff]  }
 0x19a   :  { %6251 = vmatmul.mubr.msk.bf16.gmra.mrb[48].mxu1 %vm281_vm1, %v8191_v60  ;;  %6259 = vmatmul.mubr.msk.bf16.gmra.mrb[64].mxu0 %vm281_vm1, %v8191_v60 }
 0x19b   :  { %828 = vmatprep.mubr.bf16.mxu1 %v7820_v19  ;;  %941 = vmatprep.mubr.bf16.mxu0 %v7820_v19 }
 0x1a2   :  { %6252 = vmatmul.mubr.msk.bf16.gmra.mrb[52].mxu1 %vm281_vm1, %v8193_v63  ;;  %6260 = vmatmul.mubr.msk.bf16.gmra.mrb[68].mxu0 %vm281_vm1, %v8193_v63 }
 0x1a3   :  { %838 = vmatprep.mubr.bf16.mxu1 %v7820_v19  ;;  %951 = vmatprep.mubr.bf16.mxu0 %v7820_v19 }
 0x1aa   :  { %6253 = vmatmul.mubr.msk.bf16.gmra.mrb[56].mxu1 %vm281_vm1, %v8163_v23  ;;  %6261 = vmatmul.mubr.msk.bf16.gmra.mrb[72].mxu0 %vm281_vm1, %v8163_v23 }
 0x1ab   :  { %848 = vmatprep.mubr.bf16.mxu1 %v7820_v19  ;;  %961 = vmatprep.mubr.bf16.mxu0 %v7820_v19 }
 0x1b2   :  { %6254 = vmatmul.mubr.msk.bf16.gmra.mrb[60].mxu1 %vm281_vm1, %v8195_v0  ;;  %6262 = vmatmul.mubr.msk.bf16.gmra.mrb[76].mxu0 %vm281_vm1, %v8195_v0 }
 0x20d   :  { %v554_v38 = vpop.f32.mrb[0].mxu1  ;;  %v667_v39 = vpop.f32.mrb[16].mxu0 }
 0x20e   :  { %v556_v51 = vpop.f32.mrb[1].mxu1  ;;  %v669_v52 = vpop.f32.mrb[17].mxu0  ;;  %v1164_v20 = vmul.f32 %v1036_v30, %v554_v38  ;;  %v1166_v21 = vmul.f32 %v1038_v35, %v667_v39  ;;  %v8441_v38 = vld [vmem:[%s9545_s4 + $0xa8] sm:$0xff] }
 0x20f   :  { %v558_v59 = vpop.f32.mrb[2].mxu1  ;;  %v671_v61 = vpop.f32.mrb[18].mxu0  ;;  %v1165_v3 = vmul.f32 %v1037_v40, %v556_v51  ;;  %v1167_v4 = vmul.f32 %v1039_v42, %v669_v52  ;;  %v7644_v39 = vld [vmem:[%s9544_s27 + $0x188] sm:$0xff]   ;;  %v7649_v40 = vld [vmem:[%s9544_s27 + $0x1d0] sm:$0xff]  }
 0x210   :  { %v1172_v22 = vmul.f32 %v1044_v36, %v558_v59  ;;  %v1174_v24 = vmul.f32 %v1046_v37, %v671_v61  ;;  %v560_v25 = vpop.f32.mrb[3].mxu1  ;;  %v673_v26 = vpop.f32.mrb[19].mxu0  ;;  %v8431_v36 = vld [vmem:[%s9545_s4 + $0x88] sm:$0xff]  ;;  %v8436_v37 = vld [vmem:[%s9545_s4 + $0xa0] sm:$0xff] }
 0x211   :  { %v1173_v5 = vmul.f32 %v1045_v45, %v560_v25  ;;  %v1175_v43 = vmul.f32 %v1047_v49, %v673_v26  ;;  %v7635_v25 = vld [vmem:[%s9544_s27 + $0x158] sm:$0xff]  }
 0x212   :  { %v1292_v32 = vpack.c.bf16 %v1172_v22, %v1164_v20  ;;  %v1294_v28 = vpack.c.bf16 %v1174_v24, %v1166_v21  ;;  %v7634_v20 = vld [vmem:[%s9544_s27 + $0x110] sm:$0xff]   ;;  %v7651_v26 = vld [vmem:[%s9544_s27 + $0x1d8] sm:$0xff]  }
 0x213   :  { %v1293_v7 = vpack.c.bf16 %v1173_v5, %v1165_v3  ;;  %v1295_v56 = vpack.c.bf16 %v1175_v43, %v1167_v4  ;;  %v7650_v21 = vld [vmem:[%s9544_s27 + $0x190] sm:$0xff]   ;;  %v1068_v3 = vunpack.c.l.bf16 %v8423_v18  ;;  %v1070_v4 = vunpack.c.l.bf16 %v8431_v36 }
 0x214   :  { %v1076_v5 = vunpack.c.l.bf16 %v8436_v37  ;;  %v1078_v43 = vunpack.c.l.bf16 %v8441_v38 }
 0x215   :  { %v564_v11 = vpop.f32.mrb[4].mxu1  ;;  %v677_v8 = vpop.f32.mrb[20].mxu0  ;;  %1900 = vmatprep.mubr.bf16.mxu1 %v1293_v7  ;;  %1997 = vmatprep.mubr.bf16.mxu0 %v1295_v56  ;;  %v7636_v7 = vld [vmem:[%s9544_s27 + $0x118] sm:$0xff]  }
 0x216   :  { %v566_v13 = vpop.f32.mrb[5].mxu1  ;;  %v679_v17 = vpop.f32.mrb[21].mxu0  ;;  %1901 = vmatmul.mubr.bf16.vlgmr.msra.gmra.mrb[64].mxu1 %v1292_v32  ;;  %1998 = vmatmul.mubr.bf16.vlgmr.msra.gmra.mrb[80].mxu0 %v1294_v28  ;;  %v1180_v27 = vmul.f32 %v1052_v9, %v564_v11  ;;  %v1182_v42 = vmul.f32 %v1054_v46, %v677_v8  ;;  %v1069_v32 = vunpack.c.h.bf16 %v8423_v18  ;;  %v1071_v28 = vunpack.c.h.bf16 %v8431_v36  ;;  %v8475_v46 = vld [vmem:[%s9545_s4 + $0xc0] sm:$0xff] }
 0x217   :  { %6680 = vmatpush3.bf16.msra.mxu1 %v7630_v54  ;;  %v568_v30 = vpop.f32.mrb[6].mxu1  ;;  %v681_v35 = vpop.f32.mrb[22].mxu0  ;;  %6744 = vmatpush3.bf16.msra.mxu0 %v7638_v29  ;;  %v1181_v58 = vmul.f32 %v1053_v12, %v566_v13  ;;  %v1183_v59 = vmul.f32 %v1055_v16, %v679_v17  ;;  %v8483_v12 = vld [vmem:[%s9545_s4 + $0xc8] sm:$0xff]  ;;  %v8488_v16 = vld [vmem:[%s9545_s4 + $0xe0] sm:$0xff] }
 0x218   :  { %v1188_v45 = vmul.f32 %v1060_v10, %v568_v30  ;;  %v1190_v49 = vmul.f32 %v1062_v53, %v681_v35  ;;  %v570_v51 = vpop.f32.mrb[7].mxu1  ;;  %v683_v52 = vpop.f32.mrb[23].mxu0  ;;  %6681 = vmatprep.subr.bf16.mxu1 %v7631_v31  ;;  %6745 = vmatprep.subr.bf16.mxu0 %v7643_v48  ;;  %v1077_v31 = vunpack.c.h.bf16 %v8436_v37  ;;  %v1079_v48 = vunpack.c.h.bf16 %v8441_v38  ;;  %v7639_v10 = vld [vmem:[%s9544_s27 + $0x160] sm:$0xff]  }
 0x219   :  { %v1189_v61 = vmul.f32 %v1061_v14, %v570_v51  ;;  %v1191_v62 = vmul.f32 %v1063_v6, %v683_v52  ;;  %v8493_v14 = vld [vmem:[%s9545_s4 + $0xe8] sm:$0xff]  ;;  %v7652_v6 = vld [vmem:[%s9544_s27 + $0x198] sm:$0xff]   ;;  %v7640_v38 = vld [vmem:[%s9544_s27 + $0x120] sm:$0xff]  }
 0x21a   :  { %v1300_v22 = vpack.c.bf16 %v1188_v45, %v1180_v27  ;;  %v1302_v24 = vpack.c.bf16 %v1190_v49, %v1182_v42  ;;  %v7641_v45 = vld [vmem:[%s9544_s27 + $0x168] sm:$0xff]  }
 0x21b   :  { %v1301_v1 = vpack.c.bf16 %v1189_v61, %v1181_v58  ;;  %v1303_v2 = vpack.c.bf16 %v1191_v62, %v1183_v59  ;;  %6682 = vmatpush3.bf16.msra.mxu1 %v7632_v15  ;;  %6746 = vmatpush3.bf16.msra.mxu0 %v7644_v39  ;;  %v7653_v15 = vld [vmem:[%s9544_s27 + $0x1e0] sm:$0xff]   ;;  %v7655_v49 = vld [vmem:[%s9544_s27 + $0x1e8] sm:$0xff]   ;;  %v1084_v58 = vunpack.c.l.bf16 %v8475_v46  ;;  %v1086_v59 = vunpack.c.l.bf16 %v8483_v12 }
 0x21c   :  { %6683 = vmatprep.subr.bf16.mxu1 %v7633_v50  ;;  %6747 = vmatprep.subr.bf16.mxu0 %v7649_v40  ;;  %v7654_v39 = vld [vmem:[%s9544_s27 + $0x1a0] sm:$0xff]   ;;  %v1092_v61 = vunpack.c.l.bf16 %v8488_v16  ;;  %v1094_v62 = vunpack.c.l.bf16 %v8493_v14 }
 0x21d   :  { %v574_v54 = vpop.f32.mrb[8].mxu1  ;;  %v687_v29 = vpop.f32.mrb[24].mxu0  ;;  %1908 = vmatprep.mubr.bf16.mxu1 %v1301_v1  ;;  %2005 = vmatprep.mubr.bf16.mxu0 %v1303_v2  ;;  %v7642_v1 = vld [vmem:[%s9544_s27 + $0x128] sm:$0xff]  }
 0x21e   :  { %v576_v56 = vpop.f32.mrb[9].mxu1  ;;  %v689_v9 = vpop.f32.mrb[25].mxu0  ;;  %1909 = vmatmul.mubr.bf16.gmra.mrb[68].mxu1 %v1300_v22  ;;  %2006 = vmatmul.mubr.bf16.gmra.mrb[84].mxu0 %v1302_v24  ;;  %v1196_v53 = vmul.f32 %v1068_v3, %v574_v54  ;;  %v1198_v13 = vmul.f32 %v1070_v4, %v687_v29  ;;  %v1085_v22 = vunpack.c.h.bf16 %v8475_v46  ;;  %v1087_v24 = vunpack.c.h.bf16 %v8483_v12  ;;  %v8527_v4 = vld [vmem:[%s9545_s4 + $0x100] sm:$0xff] }
 0x21f   :  { %6684 = vmatpush3.bf16.msra.mxu1 %v7634_v20  ;;  %v578_v11 = vpop.f32.mrb[10].mxu1  ;;  %v691_v8 = vpop.f32.mrb[26].mxu0  ;;  %6748 = vmatpush3.bf16.msra.mxu0 %v7650_v21  ;;  %v1197_v30 = vmul.f32 %v1069_v32, %v576_v56  ;;  %v1199_v35 = vmul.f32 %v1071_v28, %v689_v9  ;;  %v1005_v32 = vld [vmem:[%s9545_s4 + $0x108] sm:$0xff]  ;;  %v1008_v28 = vld [vmem:[%s9545_s4 + $0x120] sm:$0xff] }
 0x220   :  { %v1204_v17 = vmul.f32 %v1076_v5, %v578_v11  ;;  %v1206_v18 = vmul.f32 %v1078_v43, %v691_v8  ;;  %v580_v50 = vpop.f32.mrb[11].mxu1  ;;  %v693_v27 = vpop.f32.mrb[27].mxu0  ;;  %6685 = vmatprep.subr.bf16.mxu1 %v7635_v25  ;;  %6749 = vmatprep.subr.bf16.mxu0 %v7651_v26  ;;  %v1093_v25 = vunpack.c.h.bf16 %v8488_v16  ;;  %v1095_v26 = vunpack.c.h.bf16 %v8493_v14  ;;  %v7645_v5 = vld [vmem:[%s9544_s27 + $0x170] sm:$0xff]  }
 0x221   :  { %v1205_v36 = vmul.f32 %v1077_v31, %v580_v50  ;;  %v1207_v37 = vmul.f32 %v1079_v48, %v693_v27  ;;  %v1009_v31 = vld [vmem:[%s9545_s4 + $0x128] sm:$0xff]  ;;  %v7658_v50 = vld [vmem:[%s9544_s27 + $0x1b0] sm:$0xff]   ;;  %v1102_v27 = vunpack.c.l.bf16 %v1005_v32 }
 0x222   :  { %v1308_v40 = vpack.c.bf16 %v1204_v17, %v1196_v53  ;;  %v1310_v42 = vpack.c.bf16 %v1206_v18, %v1198_v13  ;;  %v7656_v48 = vld [vmem:[%s9544_s27 + $0x1a8] sm:$0xff]   ;;  %v1100_v17 = vunpack.c.l.bf16 %v8527_v4  ;;  %v7646_v18 = vld [vmem:[%s9544_s27 + $0x130] sm:$0xff]  }
 0x223   :  { %v1309_v51 = vpack.c.bf16 %v1205_v36, %v1197_v30  ;;  %v1311_v52 = vpack.c.bf16 %v1207_v37, %v1199_v35  ;;  %6686 = vmatpush3.bf16.msra.mxu1 %v7636_v7  ;;  %6750 = vmatpush3.bf16.msra.mxu0 %v7652_v6  ;;  %v7657_v7 = vld [vmem:[%s9544_s27 + $0x1f0] sm:$0xff]   ;;  %v1108_v30 = vunpack.c.l.bf16 %v1008_v28  ;;  %v1110_v35 = vunpack.c.l.bf16 %v1009_v31  ;;  %v7647_v36 = vld [vmem:[%s9544_s27 + $0x178] sm:$0xff]  }
 0x224   :  { %6687 = vmatprep.subr.bf16.mxu1 %v7639_v10  ;;  %6751 = vmatprep.subr.bf16.mxu0 %v7653_v15  ;;  %v7659_v37 = vld [vmem:[%s9544_s27 + $0x1f8] sm:$0xff]  }
 0x225   :  { %v584_v20 = vpop.f32.mrb[12].mxu1  ;;  %v697_v21 = vpop.f32.mrb[28].mxu0  ;;  %1916 = vmatprep.mubr.bf16.mxu1 %v1309_v51  ;;  %2013 = vmatprep.mubr.bf16.mxu0 %v1311_v52 }
 0x226   :  { %v586_v2 = vpop.f32.mrb[13].mxu1  ;;  %v699_v3 = vpop.f32.mrb[29].mxu0  ;;  %1917 = vmatmul.mubr.bf16.gmra.mrb[72].mxu1 %v1308_v40  ;;  %2014 = vmatmul.mubr.bf16.gmra.mrb[88].mxu0 %v1310_v42  ;;  %v1212_v43 = vmul.f32 %v1084_v58, %v584_v20  ;;  %v1214_v56 = vmul.f32 %v1086_v59, %v697_v21  ;;  %v1101_v40 = vunpack.c.h.bf16 %v8527_v4  ;;  %v1103_v42 = vunpack.c.h.bf16 %v1005_v32  ;;  %v7660_v20 = vld [vmem:[%s9544_s27 + $0x1b8] sm:$0xff]  }
 0x227   :  { %6688 = vmatpush3.bf16.msra.mxu1 %v7640_v38  ;;  %v588_v54 = vpop.f32.mrb[14].mxu1  ;;  %v701_v29 = vpop.f32.mrb[30].mxu0  ;;  %6752 = vmatpush3.bf16.msra.mxu0 %v7654_v39  ;;  %v1213_v11 = vmul.f32 %v1085_v22, %v586_v2  ;;  %v1215_v8 = vmul.f32 %v1087_v24, %v699_v3 }
 0x228   :  { %v1220_v9 = vmul.f32 %v1092_v61, %v588_v54  ;;  %v1222_v46 = vmul.f32 %v1094_v62, %v701_v29  ;;  %v590_v10 = vpop.f32.mrb[15].mxu1  ;;  %v703_v53 = vpop.f32.mrb[31].mxu0  ;;  %6689 = vmatprep.subr.bf16.mxu1 %v7641_v45  ;;  %6753 = vmatprep.subr.bf16.mxu0 %v7655_v49  ;;  %v1109_v45 = vunpack.c.h.bf16 %v1008_v28  ;;  %v1111_v49 = vunpack.c.h.bf16 %v1009_v31  ;;  %v7648_v62 = vld [vmem:[%s9544_s27 + $0x138] sm:$0xff]   ;;  %v1016_v54 = vld [vmem:[%s9545_s4 + $0x160] sm:$0xff]  ;;  %v1017_v29 = vld [vmem:[%s9545_s4 + $0x168] sm:$0xff] }
 0x229   :  { %v1221_v12 = vmul.f32 %v1093_v25, %v590_v10  ;;  %v1223_v16 = vmul.f32 %v1095_v26, %v703_v53 }
 0x22a   :  { %v1316_v14 = vpack.c.bf16 %v1220_v9, %v1212_v43  ;;  %v1318_v6 = vpack.c.bf16 %v1222_v46, %v1214_v56  ;;  %v1013_v43 = vld [vmem:[%s9545_s4 + $0x148] sm:$0xff]  ;;  %v1124_v9 = vunpack.c.l.bf16 %v1016_v54  ;;  %v1126_v46 = vunpack.c.l.bf16 %v1017_v29 }
 0x22b   :  { %v1317_v15 = vpack.c.bf16 %v1221_v12, %v1213_v11  ;;  %v1319_v13 = vpack.c.bf16 %v1223_v16, %v1215_v8  ;;  %6690 = vmatpush3.bf16.msra.mxu1 %v7642_v1  ;;  %6754 = vmatpush3.bf16.msra.mxu0 %v7656_v48  ;;  %v1012_v1 = vld [vmem:[%s9545_s4 + $0x140] sm:$0xff]  ;;  %v1118_v56 = vunpack.c.l.bf16 %v1013_v43  ;;  %v1119_v8 = vunpack.c.h.bf16 %v1013_v43 }
 0x22c   :  { %6691 = vmatprep.subr.bf16.mxu1 %v7645_v5  ;;  %6755 = vmatprep.subr.bf16.mxu0 %v7657_v7  ;;  %v1116_v7 = vunpack.c.l.bf16 %v1012_v1  ;;  %v1117_v11 = vunpack.c.h.bf16 %v1012_v1  ;;  %v1125_v12 = vunpack.c.h.bf16 %v1016_v54  ;;  %v1127_v16 = vunpack.c.h.bf16 %v1017_v29 }
 0x22d   :  { %v594_v38 = vpop.f32.mrb[16].mxu1  ;;  %v707_v39 = vpop.f32.mrb[32].mxu0  ;;  %1924 = vmatprep.mubr.bf16.mxu1 %v1317_v15  ;;  %2021 = vmatprep.mubr.bf16.mxu0 %v1319_v13 }
 0x22e   :  { %v596_v51 = vpop.f32.mrb[17].mxu1  ;;  %v709_v52 = vpop.f32.mrb[33].mxu0  ;;  %1925 = vmatmul.mubr.bf16.gmra.mrb[76].mxu1 %v1316_v14  ;;  %2022 = vmatmul.mubr.bf16.gmra.mrb[92].mxu0 %v1318_v6  ;;  %v1228_v58 = vmul.f32 %v1100_v17, %v594_v38  ;;  %v1230_v21 = vmul.f32 %v1102_v27, %v707_v39 }
 0x22f   :  { %6692 = vmatpush3.bf16.msra.mxu1 %v7646_v18  ;;  %v598_v59 = vpop.f32.mrb[18].mxu1  ;;  %v711_v61 = vpop.f32.mrb[34].mxu0  ;;  %6756 = vmatpush3.bf16.msra.mxu0 %v7658_v50  ;;  %v1229_v2 = vmul.f32 %v1101_v40, %v596_v51  ;;  %v1231_v3 = vmul.f32 %v1103_v42, %v709_v52  ;;  %v1021_v42 = vld [vmem:[%s9545_s4 + $0x188] sm:$0xff] }
 0x230   :  { %v1236_v22 = vmul.f32 %v1108_v30, %v598_v59  ;;  %v1238_v24 = vmul.f32 %v1110_v35, %v711_v61  ;;  %v600_v25 = vpop.f32.mrb[19].mxu1  ;;  %v713_v26 = vpop.f32.mrb[35].mxu0  ;;  %6693 = vmatprep.subr.bf16.mxu1 %v7647_v36  ;;  %6757 = vmatprep.subr.bf16.mxu0 %v7659_v37  ;;  %v1020_v36 = vld [vmem:[%s9545_s4 + $0x180] sm:$0xff] }
 0x231   :  { %v1237_v4 = vmul.f32 %v1109_v45, %v600_v25  ;;  %v1239_v5 = vmul.f32 %v1111_v49, %v713_v26  ;;  %v1024_v45 = vld [vmem:[%s9545_s4 + $0x1a0] sm:$0xff]  ;;  %v1025_v49 = vld [vmem:[%s9545_s4 + $0x1a8] sm:$0xff]  ;;  %v1132_v61 = vunpack.c.l.bf16 %v1020_v36  ;;  %v1133_v25 = vunpack.c.h.bf16 %v1020_v36 }
 0x232   :  { %v1324_v32 = vpack.c.bf16 %v1236_v22, %v1228_v58  ;;  %v1326_v28 = vpack.c.bf16 %v1238_v24, %v1230_v21  ;;  %v1142_v21 = vunpack.c.l.bf16 %v1025_v49  ;;  %v1135_v26 = vunpack.c.h.bf16 %v1021_v42 }
 0x233   :  { %v1325_v31 = vpack.c.bf16 %v1237_v4, %v1229_v2  ;;  %v1327_v48 = vpack.c.bf16 %v1239_v5, %v1231_v3  ;;  %6694 = vmatpush3.bf16.msra.mxu1 %v7648_v62  ;;  %6758 = vmatpush3.bf16.msra.mxu0 %v7660_v20  ;;  %v1134_v62 = vunpack.c.l.bf16 %v1021_v42  ;;  %v1140_v20 = vunpack.c.l.bf16 %v1024_v45 }
 0x234   :  { %7090 = vmatprep.subr.bf16.mxu1 %v8165_v41  ;;  %v1141_v1 = vunpack.c.h.bf16 %v1024_v45  ;;  %v1143_v2 = vunpack.c.h.bf16 %v1025_v49 }
 0x235   :  { %v604_v10 = vpop.f32.mrb[20].mxu1  ;;  %v717_v53 = vpop.f32.mrb[36].mxu0  ;;  %1932 = vmatprep.mubr.bf16.mxu1 %v1325_v31  ;;  %2029 = vmatprep.mubr.bf16.mxu0 %v1327_v48 }
 0x236   :  { %v606_v14 = vpop.f32.mrb[21].mxu1  ;;  %v719_v6 = vpop.f32.mrb[37].mxu0  ;;  %1933 = vmatmul.mubr.bf16.gmra.mrb[80].mxu1 %v1324_v32  ;;  %2030 = vmatmul.mubr.bf16.gmra.mrb[96].mxu0 %v1326_v28  ;;  %v1244_v17 = vmul.f32 %v1116_v7, %v604_v10  ;;  %v1246_v18 = vmul.f32 %v1118_v56, %v717_v53  ;;  %v1028_v7 = vld [vmem:[%s9545_s4 + $0x1c0] sm:$0xff]  ;;  %v1029_v53 = vld [vmem:[%s9545_s4 + $0x1c8] sm:$0xff] }
 0x237   :  { %v608_v15 = vpop.f32.mrb[22].mxu1  ;;  %v721_v13 = vpop.f32.mrb[38].mxu0  ;;  %v1245_v37 = vmul.f32 %v1117_v11, %v606_v14  ;;  %v1247_v38 = vmul.f32 %v1119_v8, %v719_v6  ;;  %v1032_v11 = vld [vmem:[%s9545_s4 + $0x1e0] sm:$0xff]  ;;  %v1033_v8 = vld [vmem:[%s9545_s4 + $0x1e8] sm:$0xff] }
 0x238   :  { %v1252_v50 = vmul.f32 %v1124_v9, %v608_v15  ;;  %v1254_v27 = vmul.f32 %v1126_v46, %v721_v13  ;;  %v610_v30 = vpop.f32.mrb[23].mxu1  ;;  %v723_v35 = vpop.f32.mrb[39].mxu0  ;;  %v1148_v15 = vunpack.c.l.bf16 %v1028_v7  ;;  %v1150_v13 = vunpack.c.l.bf16 %v1029_v53 }
 0x239   :  { %v1253_v39 = vmul.f32 %v1125_v12, %v610_v30  ;;  %v1255_v40 = vmul.f32 %v1127_v16, %v723_v35  ;;  %v1149_v30 = vunpack.c.h.bf16 %v1028_v7  ;;  %v1151_v35 = vunpack.c.h.bf16 %v1029_v53 }
 0x23a   :  { %v1332_v51 = vpack.c.bf16 %v1252_v50, %v1244_v17  ;;  %v1334_v52 = vpack.c.bf16 %v1254_v27, %v1246_v18  ;;  %v1156_v17 = vunpack.c.l.bf16 %v1032_v11  ;;  %v1158_v18 = vunpack.c.l.bf16 %v1033_v8 }
 0x23b   :  { %v1333_v58 = vpack.c.bf16 %v1253_v39, %v1245_v37  ;;  %v1335_v59 = vpack.c.bf16 %v1255_v40, %v1247_v38  ;;  %v1157_v36 = vunpack.c.h.bf16 %v1032_v11  ;;  %v1159_v37 = vunpack.c.h.bf16 %v1033_v8 }
 0x23d   :  { %v614_v22 = vpop.f32.mrb[24].mxu1  ;;  %v727_v24 = vpop.f32.mrb[40].mxu0  ;;  %1940 = vmatprep.mubr.bf16.mxu1 %v1333_v58  ;;  %2037 = vmatprep.mubr.bf16.mxu0 %v1335_v59 }
 0x23e   :  { %v616_v3 = vpop.f32.mrb[25].mxu1  ;;  %v729_v4 = vpop.f32.mrb[41].mxu0  ;;  %1941 = vmatmul.mubr.bf16.gmra.mrb[84].mxu1 %v1332_v51  ;;  %2038 = vmatmul.mubr.bf16.gmra.mrb[100].mxu0 %v1334_v52  ;;  %v1260_v54 = vmul.f32 %v1132_v61, %v614_v22  ;;  %v1262_v29 = vmul.f32 %v1134_v62, %v727_v24  ;;  %v974_v61 = vld [vmem:[%s9545_s4 + $0x10] sm:$0xff]  ;;  %v975_v24 = vld [vmem:[%s9545_s4 + $0x18] sm:$0xff] }
 0x23f   :  { %v618_v5 = vpop.f32.mrb[26].mxu1  ;;  %v731_v43 = vpop.f32.mrb[42].mxu0  ;;  %v1261_v56 = vmul.f32 %v1133_v25, %v616_v3  ;;  %v1263_v9 = vmul.f32 %v1135_v26, %v729_v4  ;;  %v978_v25 = vld [vmem:[%s9545_s4 + $0x30] sm:$0xff]  ;;  %v979_v26 = vld [vmem:[%s9545_s4 + $0x38] sm:$0xff] }
 0x240   :  { %v1268_v32 = vmul.f32 %v1140_v20, %v618_v5  ;;  %v1270_v28 = vmul.f32 %v1142_v21, %v731_v43  ;;  %v620_v31 = vpop.f32.mrb[27].mxu1  ;;  %v733_v48 = vpop.f32.mrb[43].mxu0  ;;  %v1040_v5 = vunpack.c.l.bf16 %v974_v61  ;;  %v1042_v43 = vunpack.c.l.bf16 %v975_v24 }
 0x241   :  { %v1269_v46 = vmul.f32 %v1141_v1, %v620_v31  ;;  %v1271_v10 = vmul.f32 %v1143_v2, %v733_v48  ;;  %v1041_v31 = vunpack.c.h.bf16 %v974_v61  ;;  %v1043_v48 = vunpack.c.h.bf16 %v975_v24 }
 0x242   :  { %v1340_v12 = vpack.c.bf16 %v1268_v32, %v1260_v54  ;;  %v1342_v16 = vpack.c.bf16 %v1270_v28, %v1262_v29  ;;  %v1048_v54 = vunpack.c.l.bf16 %v978_v25  ;;  %v1050_v29 = vunpack.c.l.bf16 %v979_v26 }
 0x243   :  { %v1341_v14 = vpack.c.bf16 %v1269_v46, %v1261_v56  ;;  %v1343_v6 = vpack.c.bf16 %v1271_v10, %v1263_v9  ;;  %v1049_v7 = vunpack.c.h.bf16 %v978_v25  ;;  %v1051_v56 = vunpack.c.h.bf16 %v979_v26 }
 0x245   :  { %v624_v50 = vpop.f32.mrb[28].mxu1  ;;  %v737_v27 = vpop.f32.mrb[44].mxu0  ;;  %1948 = vmatprep.mubr.bf16.mxu1 %v1341_v14  ;;  %2045 = vmatprep.mubr.bf16.mxu0 %v1343_v6 }
 0x246   :  { %v626_v38 = vpop.f32.mrb[29].mxu1  ;;  %v739_v39 = vpop.f32.mrb[45].mxu0  ;;  %1949 = vmatmul.mubr.bf16.gmra.mrb[88].mxu1 %v1340_v12  ;;  %2046 = vmatmul.mubr.bf16.gmra.mrb[104].mxu0 %v1342_v16  ;;  %v1276_v45 = vmul.f32 %v1148_v15, %v624_v50  ;;  %v1278_v49 = vmul.f32 %v1150_v13, %v737_v27  ;;  %v982_v15 = vld [vmem:[%s9545_s4 + $0x50] sm:$0xff]  ;;  %v983_v27 = vld [vmem:[%s9545_s4 + $0x58] sm:$0xff] }
 0x247   :  { %v628_v40 = vpop.f32.mrb[30].mxu1  ;;  %v741_v42 = vpop.f32.mrb[46].mxu0  ;;  %v1277_v62 = vmul.f32 %v1149_v30, %v626_v38  ;;  %v1279_v20 = vmul.f32 %v1151_v35, %v739_v39  ;;  %v986_v30 = vld [vmem:[%s9545_s4 + $0x70] sm:$0xff]  ;;  %v987_v35 = vld [vmem:[%s9545_s4 + $0x78] sm:$0xff] }
 0x248   :  { %v1284_v51 = vmul.f32 %v1156_v17, %v628_v40  ;;  %v1286_v52 = vmul.f32 %v1158_v18, %v741_v42  ;;  %v630_v58 = vpop.f32.mrb[31].mxu1  ;;  %v743_v59 = vpop.f32.mrb[47].mxu0  ;;  %v1056_v40 = vunpack.c.l.bf16 %v982_v15  ;;  %v1058_v42 = vunpack.c.l.bf16 %v983_v27 }
 0x249   :  { %v1285_v21 = vmul.f32 %v1157_v36, %v630_v58  ;;  %v1287_v22 = vmul.f32 %v1159_v37, %v743_v59  ;;  %v1057_v58 = vunpack.c.h.bf16 %v982_v15  ;;  %v1059_v59 = vunpack.c.h.bf16 %v983_v27 }
 0x24a   :  { %v1348_v1 = vpack.c.bf16 %v1284_v51, %v1276_v45  ;;  %v1350_v2 = vpack.c.bf16 %v1286_v52, %v1278_v49  ;;  %v1064_v45 = vunpack.c.l.bf16 %v986_v30  ;;  %v1066_v49 = vunpack.c.l.bf16 %v987_v35 }
 0x24b   :  { %v1349_v3 = vpack.c.bf16 %v1285_v21, %v1277_v62  ;;  %v1351_v4 = vpack.c.bf16 %v1287_v22, %v1279_v20  ;;  %v1065_v61 = vunpack.c.h.bf16 %v986_v30  ;;  %v1067_v62 = vunpack.c.h.bf16 %v987_v35 }
 0x24d   :  { %v780_v32 = vpop.f32.mrb[32].mxu1  ;;  %v893_v28 = vpop.f32.mrb[48].mxu0  ;;  %1956 = vmatprep.mubr.bf16.mxu1 %v1349_v3  ;;  %2053 = vmatprep.mubr.bf16.mxu0 %v1351_v4 }
 0x24e   :  { %v782_v9 = vpop.f32.mrb[33].mxu1  ;;  %v895_v46 = vpop.f32.mrb[49].mxu0  ;;  %1957 = vmatmul.mubr.bf16.gmra.mrb[92].mxu1 %v1348_v1  ;;  %2054 = vmatmul.mubr.bf16.gmra.mrb[108].mxu0 %v1350_v2  ;;  %v1168_v11 = vmul.f32 %v1040_v5, %v780_v32  ;;  %v1170_v8 = vmul.f32 %v1042_v43, %v893_v28  ;;  %v990_v5 = vld [vmem:[%s9545_s4 + $0x90] sm:$0xff] }
 0x24f   :  { %v784_v10 = vpop.f32.mrb[34].mxu1  ;;  %v897_v53 = vpop.f32.mrb[50].mxu0  ;;  %v1169_v13 = vmul.f32 %v1041_v31, %v782_v9  ;;  %v1171_v17 = vmul.f32 %v1043_v48, %v895_v46  ;;  %v994_v28 = vld [vmem:[%s9545_s4 + $0xb0] sm:$0xff]  ;;  %v995_v31 = vld [vmem:[%s9545_s4 + $0xb8] sm:$0xff]  ;;  %v1072_v46 = vunpack.c.l.bf16 %v990_v5 }
 0x250   :  { %v1176_v12 = vmul.f32 %v1048_v54, %v784_v10  ;;  %v1178_v16 = vmul.f32 %v1050_v29, %v897_v53  ;;  %v786_v14 = vpop.f32.mrb[35].mxu1  ;;  %v899_v6 = vpop.f32.mrb[51].mxu0  ;;  %v1080_v53 = vunpack.c.l.bf16 %v994_v28  ;;  %v1083_v15 = vunpack.c.h.bf16 %v995_v31 }
 0x251   :  { %v1177_v18 = vmul.f32 %v1049_v7, %v786_v14  ;;  %v1179_v50 = vmul.f32 %v1051_v56, %v899_v6  ;;  %v1081_v6 = vunpack.c.h.bf16 %v994_v28 }
 0x252   :  { %v1296_v36 = vpack.c.bf16 %v1176_v12, %v1168_v11  ;;  %v1298_v37 = vpack.c.bf16 %v1178_v16, %v1170_v8  ;;  %v1082_v11 = vunpack.c.l.bf16 %v995_v31  ;;  %v1073_v16 = vunpack.c.h.bf16 %v990_v5 }
 0x253   :  { %v1297_v38 = vpack.c.bf16 %v1177_v18, %v1169_v13  ;;  %v1299_v39 = vpack.c.bf16 %v1179_v50, %v1171_v17 }
 0x255   :  { %v790_v51 = vpop.f32.mrb[36].mxu1  ;;  %v903_v52 = vpop.f32.mrb[52].mxu0  ;;  %2094 = vmatprep.mubr.bf16.mxu1 %v1297_v38  ;;  %2191 = vmatprep.mubr.bf16.mxu0 %v1299_v39  ;;  %v998_v38 = vld [vmem:[%s9545_s4 + $0xd0] sm:$0xff] }
 0x256   :  { %v792_v20 = vpop.f32.mrb[37].mxu1  ;;  %v905_v21 = vpop.f32.mrb[53].mxu0  ;;  %2095 = vmatmul.mubr.bf16.vlgmr.msra.gmra.mrb[96].mxu1 %v1296_v36  ;;  %2192 = vmatmul.mubr.bf16.vlgmr.msra.gmra.mrb[112].mxu0 %v1298_v37  ;;  %v1184_v25 = vmul.f32 %v1056_v40, %v790_v51  ;;  %v1186_v26 = vmul.f32 %v1058_v42, %v903_v52  ;;  %v1003_v51 = vld [vmem:[%s9545_s4 + $0xf8] sm:$0xff] }
 0x257   :  { %7091 = vmatpush3.bf16.msra.mxu1 %v8165_v41  ;;  %v794_v22 = vpop.f32.mrb[38].mxu1  ;;  %v907_v24 = vpop.f32.mrb[54].mxu0  ;;  %v1185_v43 = vmul.f32 %v1057_v58, %v792_v20  ;;  %v1187_v54 = vmul.f32 %v1059_v59, %v905_v21  ;;  %v991_v41 = vld [vmem:[%s9545_s4 + $0x98] sm:$0xff] }
 0x258   :  { %v1192_v1 = vmul.f32 %v1064_v45, %v794_v22  ;;  %v1194_v2 = vmul.f32 %v1066_v49, %v907_v24  ;;  %7092 = vmatprep.subr.bf16.mxu1 %v8170_v33  ;;  %v796_v3 = vpop.f32.mrb[39].mxu1  ;;  %v909_v4 = vpop.f32.mrb[55].mxu0  ;;  %v1074_v10 = vunpack.c.l.bf16 %v991_v41  ;;  %v1075_v14 = vunpack.c.h.bf16 %v991_v41  ;;  %v1002_v49 = vld [vmem:[%s9545_s4 + $0xf0] sm:$0xff] }
 0x259   :  { %v1193_v29 = vmul.f32 %v1065_v61, %v796_v3  ;;  %v1195_v32 = vmul.f32 %v1067_v62, %v909_v4  ;;  %v1088_v62 = vunpack.c.l.bf16 %v998_v38  ;;  %v1096_v21 = vunpack.c.l.bf16 %v1002_v49 }
 0x25a   :  { %v1304_v48 = vpack.c.bf16 %v1192_v1, %v1184_v25  ;;  %v1306_v7 = vpack.c.bf16 %v1194_v2, %v1186_v26  ;;  %v1098_v22 = vunpack.c.l.bf16 %v1003_v51  ;;  %v1089_v26 = vunpack.c.h.bf16 %v998_v38 }
 0x25b   :  { %v1305_v56 = vpack.c.bf16 %v1193_v29, %v1185_v43  ;;  %v1307_v9 = vpack.c.bf16 %v1195_v32, %v1187_v54  ;;  %7093 = vmatpush3.bf16.msra.mxu1 %v8170_v33  ;;  %v1097_v2 = vunpack.c.h.bf16 %v1002_v49  ;;  %v1099_v3 = vunpack.c.h.bf16 %v1003_v51  ;;  %v1014_v49 = vld [vmem:[%s9545_s4 + $0x150] sm:$0xff] }
 0x25c   :  { %7094 = vmatprep.subr.bf16.mxu1 %v8172_v34 }
 0x25d   :  { %v800_v8 = vpop.f32.mrb[40].mxu1  ;;  %v913_v12 = vpop.f32.mrb[56].mxu0  ;;  %2102 = vmatprep.mubr.bf16.mxu1 %v1305_v56  ;;  %2199 = vmatprep.mubr.bf16.mxu0 %v1307_v9 }
 0x25e   :  { %v802_v13 = vpop.f32.mrb[41].mxu1  ;;  %v915_v17 = vpop.f32.mrb[57].mxu0  ;;  %2103 = vmatmul.mubr.bf16.gmra.mrb[100].mxu1 %v1304_v48  ;;  %2200 = vmatmul.mubr.bf16.gmra.mrb[116].mxu0 %v1306_v7  ;;  %v1200_v50 = vmul.f32 %v1072_v46, %v800_v8  ;;  %v1202_v27 = vmul.f32 %v1074_v10, %v913_v12  ;;  %v1006_v48 = vld [vmem:[%s9545_s4 + $0x110] sm:$0xff] }
 0x25f   :  { %7095 = vmatpush3.bf16.msra.mxu1 %v8172_v34  ;;  %v804_v33 = vpop.f32.mrb[42].mxu1  ;;  %v917_v18 = vpop.f32.mrb[58].mxu0  ;;  %v1201_v39 = vmul.f32 %v1073_v16, %v802_v13  ;;  %v1203_v40 = vmul.f32 %v1075_v14, %v915_v17  ;;  %v999_v34 = vld [vmem:[%s9545_s4 + $0xd8] sm:$0xff]  ;;  %v1010_v10 = vld [vmem:[%s9545_s4 + $0x130] sm:$0xff]  ;;  %v1104_v14 = vunpack.c.l.bf16 %v1006_v48 }
 0x260   :  { %v1208_v30 = vmul.f32 %v1080_v53, %v804_v33  ;;  %v1210_v35 = vmul.f32 %v1082_v11, %v917_v18  ;;  %7096 = vmatprep.subr.bf16.mxu1 %v8189_v55  ;;  %v806_v36 = vpop.f32.mrb[43].mxu1  ;;  %v919_v37 = vpop.f32.mrb[59].mxu0  ;;  %v1090_v20 = vunpack.c.l.bf16 %v999_v34  ;;  %v1091_v1 = vunpack.c.h.bf16 %v999_v34  ;;  %v1011_v53 = vld [vmem:[%s9545_s4 + $0x138] sm:$0xff] }
 0x261   :  { %v1209_v42 = vmul.f32 %v1081_v6, %v806_v36  ;;  %v1211_v45 = vmul.f32 %v1083_v15, %v919_v37  ;;  %v1112_v15 = vunpack.c.l.bf16 %v1010_v10  ;;  %v1114_v13 = vunpack.c.l.bf16 %v1011_v53 }
 0x262   :  { %v1312_v52 = vpack.c.bf16 %v1208_v30, %v1200_v50  ;;  %v1314_v58 = vpack.c.bf16 %v1210_v35, %v1202_v27  ;;  %v1105_v18 = vunpack.c.h.bf16 %v1006_v48  ;;  %v1113_v27 = vunpack.c.h.bf16 %v1010_v10 }
 0x263   :  { %v1313_v59 = vpack.c.bf16 %v1209_v42, %v1201_v39  ;;  %v1315_v61 = vpack.c.bf16 %v1211_v45, %v1203_v40  ;;  %7097 = vmatpush3.bf16.msra.mxu1 %v8189_v55  ;;  %v1115_v30 = vunpack.c.h.bf16 %v1011_v53 }
 0x264   :  { %7098 = vmatprep.subr.bf16.mxu1 %v8191_v60 }
 0x265   :  { %v810_v24 = vpop.f32.mrb[44].mxu1  ;;  %v923_v25 = vpop.f32.mrb[60].mxu0  ;;  %2110 = vmatprep.mubr.bf16.mxu1 %v1313_v59  ;;  %2207 = vmatprep.mubr.bf16.mxu0 %v1315_v61  ;;  %v1018_v61 = vld [vmem:[%s9545_s4 + $0x170] sm:$0xff] }
 0x266   :  { %v812_v4 = vpop.f32.mrb[45].mxu1  ;;  %v925_v5 = vpop.f32.mrb[61].mxu0  ;;  %2111 = vmatmul.mubr.bf16.gmra.mrb[104].mxu1 %v1312_v52  ;;  %2208 = vmatmul.mubr.bf16.gmra.mrb[120].mxu0 %v1314_v58  ;;  %v1216_v54 = vmul.f32 %v1088_v62, %v810_v24  ;;  %v1218_v29 = vmul.f32 %v1090_v20, %v923_v25  ;;  %v1019_v62 = vld [vmem:[%s9545_s4 + $0x178] sm:$0xff]  ;;  %v1120_v25 = vunpack.c.l.bf16 %v1014_v49 }
 0x267   :  { %7099 = vmatpush3.bf16.msra.mxu1 %v8191_v60  ;;  %v814_v55 = vpop.f32.mrb[46].mxu1  ;;  %v927_v43 = vpop.f32.mrb[62].mxu0  ;;  %v1217_v7 = vmul.f32 %v1089_v26, %v812_v4  ;;  %v1219_v56 = vmul.f32 %v1091_v1, %v925_v5  ;;  %v1007_v60 = vld [vmem:[%s9545_s4 + $0x118] sm:$0xff]  ;;  %v1128_v1 = vunpack.c.l.bf16 %v1018_v61  ;;  %v1121_v5 = vunpack.c.h.bf16 %v1014_v49 }
 0x268   :  { %v1224_v32 = vmul.f32 %v1096_v21, %v814_v55  ;;  %v1226_v41 = vmul.f32 %v1098_v22, %v927_v43  ;;  %7100 = vmatprep.subr.bf16.mxu1 %v8193_v63  ;;  %v816_v28 = vpop.f32.mrb[47].mxu1  ;;  %v929_v31 = vpop.f32.mrb[63].mxu0  ;;  %v1106_v6 = vunpack.c.l.bf16 %v1007_v60  ;;  %v1107_v50 = vunpack.c.h.bf16 %v1007_v60 }
 0x269   :  { %v1225_v9 = vmul.f32 %v1097_v2, %v816_v28  ;;  %v1227_v46 = vmul.f32 %v1099_v3, %v929_v31  ;;  %v1130_v2 = vunpack.c.l.bf16 %v1019_v62  ;;  %v1129_v43 = vunpack.c.h.bf16 %v1018_v61 }
 0x26a   :  { %v1320_v11 = vpack.c.bf16 %v1224_v32, %v1216_v54  ;;  %v1322_v8 = vpack.c.bf16 %v1226_v41, %v1218_v29  ;;  %v1131_v54 = vunpack.c.h.bf16 %v1019_v62 }
 0x26b   :  { %v1321_v12 = vpack.c.bf16 %v1225_v9, %v1217_v7  ;;  %v1323_v16 = vpack.c.bf16 %v1227_v46, %v1219_v56  ;;  %7101 = vmatpush3.bf16.msra.mxu1 %v8193_v63  ;;  %v1022_v46 = vld [vmem:[%s9545_s4 + $0x190] sm:$0xff] }
 0x26c   :  { %7102 = vmatprep.subr.bf16.mxu1 %v8163_v23 }
 0x26d   :  { %v820_v17 = vpop.f32.mrb[48].mxu1  ;;  %v933_v33 = vpop.f32.mrb[64].mxu0  ;;  %2118 = vmatprep.mubr.bf16.mxu1 %v1321_v12  ;;  %2215 = vmatprep.mubr.bf16.mxu0 %v1323_v16  ;;  %v1026_v12 = vld [vmem:[%s9545_s4 + $0x1b0] sm:$0xff]  ;;  %v1027_v16 = vld [vmem:[%s9545_s4 + $0x1b8] sm:$0xff] }
 0x26e   :  { %v822_v35 = vpop.f32.mrb[49].mxu1  ;;  %v935_v36 = vpop.f32.mrb[65].mxu0  ;;  %2119 = vmatmul.mubr.bf16.gmra.mrb[108].mxu1 %v1320_v11  ;;  %2216 = vmatmul.mubr.bf16.gmra.mrb[124].mxu0 %v1322_v8  ;;  %v1232_v38 = vmul.f32 %v1104_v14, %v820_v17  ;;  %v1234_v39 = vmul.f32 %v1106_v6, %v933_v33  ;;  %v1023_v8 = vld [vmem:[%s9545_s4 + $0x198] sm:$0xff]  ;;  %v1136_v17 = vunpack.c.l.bf16 %v1022_v46 }
 0x26f   :  { %7103 = vmatpush3.bf16.msra.mxu1 %v8163_v23  ;;  %v824_v63 = vpop.f32.mrb[50].mxu1  ;;  %v937_v37 = vpop.f32.mrb[66].mxu0  ;;  %v1233_v51 = vmul.f32 %v1105_v18, %v822_v35  ;;  %v1235_v52 = vmul.f32 %v1107_v50, %v935_v36  ;;  %v1015_v23 = vld [vmem:[%s9545_s4 + $0x158] sm:$0xff]  ;;  %v1138_v33 = vunpack.c.l.bf16 %v1023_v8  ;;  %v1144_v18 = vunpack.c.l.bf16 %v1026_v12 }
 0x270   :  { %v1240_v40 = vmul.f32 %v1112_v15, %v824_v63  ;;  %v1242_v42 = vmul.f32 %v1114_v13, %v937_v37  ;;  %7104 = vmatprep.subr.bf16.mxu1 %v8195_v0  ;;  %v826_v45 = vpop.f32.mrb[51].mxu1  ;;  %v939_v34 = vpop.f32.mrb[67].mxu0  ;;  %v1122_v26 = vunpack.c.l.bf16 %v1015_v23  ;;  %v1123_v55 = vunpack.c.h.bf16 %v1015_v23 }
 0x271   :  { %v1241_v58 = vmul.f32 %v1113_v27, %v826_v45  ;;  %v1243_v59 = vmul.f32 %v1115_v30, %v939_v34  ;;  %v1146_v50 = vunpack.c.l.bf16 %v1027_v16  ;;  %v1137_v35 = vunpack.c.h.bf16 %v1022_v46 }
 0x272   :  { %v1328_v20 = vpack.c.bf16 %v1240_v40, %v1232_v38  ;;  %v1330_v21 = vpack.c.bf16 %v1242_v42, %v1234_v39  ;;  %v1139_v36 = vunpack.c.h.bf16 %v1023_v8  ;;  %v1145_v63 = vunpack.c.h.bf16 %v1026_v12 }
 0x273   :  { %v1329_v22 = vpack.c.bf16 %v1241_v58, %v1233_v51  ;;  %v1331_v24 = vpack.c.bf16 %v1243_v59, %v1235_v52  ;;  %7105 = vmatpush3.bf16.msra.mxu1 %v8195_v0  ;;  %v1147_v37 = vunpack.c.h.bf16 %v1027_v16  ;;  %v1030_v59 = vld [vmem:[%s9545_s4 + $0x1d0] sm:$0xff] }
 0x275   :  { %v830_v3 = vpop.f32.mrb[52].mxu1  ;;  %v943_v4 = vpop.f32.mrb[68].mxu0  ;;  %2126 = vmatprep.mubr.bf16.mxu1 %v1329_v22  ;;  %2223 = vmatprep.mubr.bf16.mxu0 %v1331_v24  ;;  %v1034_v22 = vld [vmem:[%s9545_s4 + $0x1f0] sm:$0xff]  ;;  %v1035_v24 = vld [vmem:[%s9545_s4 + $0x1f8] sm:$0xff] }
 0x276   :  { %v832_v29 = vpop.f32.mrb[53].mxu1  ;;  %v945_v32 = vpop.f32.mrb[69].mxu0  ;;  %2127 = vmatmul.mubr.bf16.gmra.mrb[112].mxu1 %v1328_v20  ;;  %2224 = vmatmul.mubr.bf16.gmra.mrb[128].mxu0 %v1330_v21  ;;  %v1248_v31 = vmul.f32 %v1120_v25, %v830_v3  ;;  %v1250_v0 = vmul.f32 %v1122_v26, %v943_v4  ;;  %v1031_v21 = vld [vmem:[%s9545_s4 + $0x1d8] sm:$0xff]  ;;  %v1152_v3 = vunpack.c.l.bf16 %v1030_v59 }
 0x277   :  { %v834_v41 = vpop.f32.mrb[54].mxu1  ;;  %v947_v28 = vpop.f32.mrb[70].mxu0  ;;  %v1249_v60 = vmul.f32 %v1121_v5, %v832_v29  ;;  %v1251_v10 = vmul.f32 %v1123_v55, %v945_v32  ;;  %v1154_v4 = vunpack.c.l.bf16 %v1031_v21  ;;  %v1160_v5 = vunpack.c.l.bf16 %v1034_v22 }
 0x278   :  { %v1256_v48 = vmul.f32 %v1128_v1, %v834_v41  ;;  %v1258_v7 = vmul.f32 %v1130_v2, %v947_v28  ;;  %v836_v56 = vpop.f32.mrb[55].mxu1  ;;  %v949_v9 = vpop.f32.mrb[71].mxu0  ;;  %v1162_v55 = vunpack.c.l.bf16 %v1035_v24  ;;  %v1153_v29 = vunpack.c.h.bf16 %v1030_v59  ;;  %v7680_v59 = vld [vmem:[%s9546_s5 + $0x98] sm:$0xff]  }
 0x279   :  { %v1257_v53 = vmul.f32 %v1129_v43, %v836_v56  ;;  %v1259_v11 = vmul.f32 %v1131_v54, %v949_v9  ;;  %v1155_v32 = vunpack.c.h.bf16 %v1031_v21  ;;  %v1161_v41 = vunpack.c.h.bf16 %v1034_v22 }
 0x27a   :  { %v1336_v14 = vpack.c.bf16 %v1256_v48, %v1248_v31  ;;  %v1338_v6 = vpack.c.bf16 %v1258_v7, %v1250_v0  ;;  %v1163_v28 = vunpack.c.h.bf16 %v1035_v24 }
 0x27b   :  { %v1337_v15 = vpack.c.bf16 %v1257_v53, %v1249_v60  ;;  %v1339_v13 = vpack.c.bf16 %v1259_v11, %v1251_v10 }
 0x27d   :  { %v840_v27 = vpop.f32.mrb[56].mxu1  ;;  %v953_v30 = vpop.f32.mrb[72].mxu0  ;;  %2134 = vmatprep.mubr.bf16.mxu1 %v1337_v15  ;;  %2231 = vmatprep.mubr.bf16.mxu0 %v1339_v13 }
 0x27e   :  { %v842_v38 = vpop.f32.mrb[57].mxu1  ;;  %v955_v39 = vpop.f32.mrb[73].mxu0  ;;  %2135 = vmatmul.mubr.bf16.gmra.mrb[116].mxu1 %v1336_v14  ;;  %2232 = vmatmul.mubr.bf16.gmra.mrb[132].mxu0 %v1338_v6  ;;  %v1264_v45 = vmul.f32 %v1136_v17, %v840_v27  ;;  %v1266_v34 = vmul.f32 %v1138_v33, %v953_v30  ;;  %v7661_v17 = vld [vmem:[%s9546_s5] sm:$0xff]   ;;  %v7662_v33 = vld [vmem:[%s9546_s5 + $0x8] sm:$0xff]  }
 0x27f   :  { %v844_v40 = vpop.f32.mrb[58].mxu1  ;;  %v957_v42 = vpop.f32.mrb[74].mxu0  ;;  %v1265_v23 = vmul.f32 %v1137_v35, %v842_v38  ;;  %v1267_v61 = vmul.f32 %v1139_v36, %v955_v39  ;;  %v7665_v27 = vld [vmem:[%s9546_s5 + $0x20] sm:$0xff]   ;;  %v7666_v30 = vld [vmem:[%s9546_s5 + $0x28] sm:$0xff]   ;;  %v7667_v35 = vld [vmem:[%s9546_s5 + $0x30] sm:$0xff]  }
 0x280   :  { %v1272_v49 = vmul.f32 %v1144_v18, %v844_v40  ;;  %v1274_v51 = vmul.f32 %v1146_v50, %v957_v42  ;;  %v846_v52 = vpop.f32.mrb[59].mxu1  ;;  %v959_v58 = vpop.f32.mrb[75].mxu0  ;;  %v7663_v18 = vld [vmem:[%s9546_s5 + $0x10] sm:$0xff]   ;;  %v7664_v50 = vld [vmem:[%s9546_s5 + $0x18] sm:$0xff]   ;;  %v7673_v40 = vld [vmem:[%s9546_s5 + $0x60] sm:$0xff]   ;;  %v7821_v42 = vmov 0.0|0.0  }
 0x281   :  { %v1273_v62 = vmul.f32 %v1145_v63, %v846_v52  ;;  %v1275_v20 = vmul.f32 %v1147_v37, %v959_v58  ;;  %v7668_v36 = vld [vmem:[%s9546_s5 + $0x38] sm:$0xff]   ;;  %v7669_v63 = vld [vmem:[%s9546_s5 + $0x40] sm:$0xff]   ;;  %v7670_v37 = vld [vmem:[%s9546_s5 + $0x48] sm:$0xff]   ;;  %7430 = vmatprep.subr.bf16.mxu0 %v7821_v42 }
 0x282   :  { %v1344_v25 = vpack.c.bf16 %v1272_v49, %v1264_v45  ;;  %v1346_v26 = vpack.c.bf16 %v1274_v51, %v1266_v34  ;;  %v7671_v38 = vld [vmem:[%s9546_s5 + $0x50] sm:$0xff]   ;;  %v7672_v39 = vld [vmem:[%s9546_s5 + $0x58] sm:$0xff]   ;;  %v7674_v45 = vld [vmem:[%s9546_s5 + $0x68] sm:$0xff]  }
 0x283   :  { %v1345_v1 = vpack.c.bf16 %v1273_v62, %v1265_v23  ;;  %v1347_v2 = vpack.c.bf16 %v1275_v20, %v1267_v61  ;;  %v7675_v34 = vld [vmem:[%s9546_s5 + $0x70] sm:$0xff]   ;;  %v7676_v49 = vld [vmem:[%s9546_s5 + $0x78] sm:$0xff]   ;;  %v7677_v51 = vld [vmem:[%s9546_s5 + $0x80] sm:$0xff]  }
 0x284   :  { %v7678_v52 = vld [vmem:[%s9546_s5 + $0x88] sm:$0xff]   ;;  %v7679_v58 = vld [vmem:[%s9546_s5 + $0x90] sm:$0xff]   ;;  %v7681_v23 = vld [vmem:[%s9546_s5 + $0xa0] sm:$0xff]  }
 0x285   :  { %v850_v43 = vpop.f32.mrb[60].mxu1  ;;  %v963_v54 = vpop.f32.mrb[76].mxu0  ;;  %2142 = vmatprep.mubr.bf16.mxu1 %v1345_v1  ;;  %2239 = vmatprep.mubr.bf16.mxu0 %v1347_v2  ;;  %v7682_v61 = vld [vmem:[%s9546_s5 + $0xa8] sm:$0xff]   ;;  %v7683_v62 = vld [vmem:[%s9546_s5 + $0xb0] sm:$0xff]  }
 0x286   :  { %v852_v31 = vpop.f32.mrb[61].mxu1  ;;  %v965_v0 = vpop.f32.mrb[77].mxu0  ;;  %2143 = vmatmul.mubr.bf16.gmra.mrb[120].mxu1 %v1344_v25  ;;  %2240 = vmatmul.mubr.bf16.gmra.mrb[136].mxu0 %v1346_v26  ;;  %v1280_v56 = vmul.f32 %v1152_v3, %v850_v43  ;;  %v1282_v9 = vmul.f32 %v1154_v4, %v963_v54  ;;  %v7684_v25 = vld [vmem:[%s9546_s5 + $0xb8] sm:$0xff]   ;;  %v7685_v4 = vld [vmem:[%s9546_s5 + $0xc0] sm:$0xff]  }
 0x287   :  { %v854_v48 = vpop.f32.mrb[62].mxu1  ;;  %v967_v7 = vpop.f32.mrb[78].mxu0  ;;  %v1281_v11 = vmul.f32 %v1153_v29, %v852_v31  ;;  %v1283_v8 = vmul.f32 %v1155_v32, %v965_v0 }
 0x288   :  { %v1288_v46 = vmul.f32 %v1160_v5, %v854_v48  ;;  %v1290_v60 = vmul.f32 %v1162_v55, %v967_v7  ;;  %v856_v10 = vpop.f32.mrb[63].mxu1  ;;  %v969_v53 = vpop.f32.mrb[79].mxu0  ;;  %v7686_v48 = vld [vmem:[%s9546_s5 + $0xc8] sm:$0xff]   ;;  %v7823_v7 = vmov 0.0  }
 0x289   :  { %v1289_v12 = vmul.f32 %v1161_v41, %v856_v10  ;;  %v1291_v16 = vmul.f32 %v1163_v28, %v969_v53  ;;  %v7687_v10 = vld [vmem:[%s9546_s5 + $0xd0] sm:$0xff]  }
 0x28a   :  { %v1352_v14 = vpack.c.bf16 %v1288_v46, %v1280_v56  ;;  %v1354_v6 = vpack.c.bf16 %v1290_v60, %v1282_v9 }
 0x28b   :  { %v1353_v15 = vpack.c.bf16 %v1289_v12, %v1281_v11  ;;  %v1355_v13 = vpack.c.bf16 %v1291_v16, %v1283_v8 }
 0x28d   :  { %2150 = vmatprep.mubr.bf16.mxu1 %v1353_v15  ;;  %2247 = vmatprep.mubr.bf16.mxu0 %v1355_v13  ;;  %v7688_v13 = vld [vmem:[%s9546_s5 + $0xd8] sm:$0xff]  }
 0x28e   :  { %2151 = vmatmul.mubr.bf16.gmra.mrb[124].mxu1 %v1352_v14  ;;  %2248 = vmatmul.mubr.bf16.gmra.mrb[140].mxu0 %v1354_v6 }
 0x28f   :  { %7106 = vmatprep.mubr.bf16.mxu1 %v7661_v17  ;;  %7087 = vmatprep.mubr.msk.f32.mxu0 %vm7822_vm2, %v7823_v7  ;;  %v7689_v17 = vld [vmem:[%s9546_s5 + $0xe0] sm:$0xff]  }
 0x296   :  { %7107 = vmatmul.mubr.bf16.vlgmr.msra.gmra.mrb[128].mxu1 %v7662_v33 }
 0x297   :  { %7110 = vmatprep.mubr.bf16.mxu1 %v7663_v18 }
 0x29e   :  { %7111 = vmatmul.mubr.bf16.gmra.mrb[132].mxu1 %v7664_v50 }
 0x29f   :  { %7114 = vmatprep.mubr.bf16.mxu1 %v7665_v27 }
 0x2a6   :  { %7115 = vmatmul.mubr.bf16.gmra.mrb[136].mxu1 %v7666_v30 }
 0x2a7   :  { %7118 = vmatprep.mubr.bf16.mxu1 %v7667_v35 }
 0x2ae   :  { %7119 = vmatmul.mubr.bf16.gmra.mrb[140].mxu1 %v7668_v36 }
 0x2af   :  { %7122 = vmatprep.mubr.bf16.mxu1 %v7669_v63 }
 0x2b6   :  { %7123 = vmatmul.mubr.bf16.gmra.mrb[144].mxu1 %v7670_v37 }
 0x2b7   :  { %7126 = vmatprep.mubr.bf16.mxu1 %v7671_v38 }
 0x2be   :  { %7127 = vmatmul.mubr.bf16.gmra.mrb[148].mxu1 %v7672_v39 }
 0x2bf   :  { %7130 = vmatprep.mubr.bf16.mxu1 %v7673_v40 }
 0x2c6   :  { %7131 = vmatmul.mubr.bf16.gmra.mrb[152].mxu1 %v7674_v45  ;;  %v7690_v45 = vld [vmem:[%s9546_s5 + $0xe8] sm:$0xff]  }
 0x2c7   :  { %7134 = vmatprep.mubr.bf16.mxu1 %v7675_v34 }
 0x2ce   :  { %7135 = vmatmul.mubr.bf16.gmra.mrb[156].mxu1 %v7676_v49 }
 0x2cf   :  { %7138 = vmatprep.mubr.bf16.mxu1 %v7677_v51 }
 0x2d6   :  { %7139 = vmatmul.mubr.bf16.gmra.mrb[160].mxu1 %v7678_v52 }
 0x2d7   :  { %7142 = vmatprep.mubr.bf16.mxu1 %v7679_v58 }
 0x2de   :  { %7143 = vmatmul.mubr.bf16.gmra.mrb[164].mxu1 %v7680_v59 }
 0x2df   :  { %7146 = vmatprep.mubr.bf16.mxu1 %v7681_v23 }
 0x2e6   :  { %7147 = vmatmul.mubr.bf16.gmra.mrb[168].mxu1 %v7682_v61 }
 0x2e7   :  { %7150 = vmatprep.mubr.bf16.mxu1 %v7683_v62  ;;  %v7691_v62 = vld [vmem:[%s9546_s5 + $0xf0] sm:$0xff]  }
 0x2e9   :  { %v6567_v20 = vpop.f32.mrb[64].mxu1  ;;  %v6631_v21 = vpop.f32.mrb[80].mxu0 }
 0x2ea   :  { %v6568_v22 = vpop.f32.mrb[65].mxu1  ;;  %v6632_v24 = vpop.f32.mrb[81].mxu0 }
 0x2eb   :  { %v6569_v26 = vadd.f32 %v6568_v22, %v6567_v20  ;;  %v6633_v1 = vadd.f32 %v6632_v24, %v6631_v21  ;;  %v6570_v2 = vpop.f32.mrb[66].mxu1  ;;  %v6634_v3 = vpop.f32.mrb[82].mxu0 }
 0x2ec   :  { %v6571_v5 = vpop.f32.mrb[67].mxu1  ;;  %v6635_v55 = vpop.f32.mrb[83].mxu0 }
 0x2ed   :  { %v8791_v43 = vadd.f32 %v6633_v1, %v6569_v26  ;;  %v6572_v54 = vadd.f32 %v6571_v5, %v6570_v2  ;;  %v6636_v29 = vadd.f32 %v6635_v55, %v6634_v3  ;;  %v7692_v5 = vld [vmem:[%s9546_s5 + $0xf8] sm:$0xff]  }
 0x2ee   :  { %7151 = vmatmul.mubr.bf16.gmra.mrb[172].mxu1 %v7684_v25 }
 0x2ef   :  { %v8793_v32 = vadd.f32 %v6636_v29, %v6572_v54  ;;  %7154 = vmatprep.mubr.bf16.mxu1 %v7685_v4 }
 0x2f1   :  { %v6573_v41 = vpop.f32.mrb[68].mxu1  ;;  %v6637_v28 = vpop.f32.mrb[84].mxu0 }
 0x2f2   :  { %v6574_v31 = vpop.f32.mrb[69].mxu1  ;;  %v6638_v0 = vpop.f32.mrb[85].mxu0 }
 0x2f3   :  { %v6575_v56 = vadd.f32 %v6574_v31, %v6573_v41  ;;  %v6639_v9 = vadd.f32 %v6638_v0, %v6637_v28  ;;  %v6576_v46 = vpop.f32.mrb[70].mxu1  ;;  %v6640_v60 = vpop.f32.mrb[86].mxu0 }
 0x2f4   :  { %v6577_v53 = vpop.f32.mrb[71].mxu1  ;;  %v6641_v11 = vpop.f32.mrb[87].mxu0 }
 0x2f5   :  { %v8803_v8 = vadd.f32 %v6639_v9, %v6575_v56  ;;  %v6578_v12 = vadd.f32 %v6577_v53, %v6576_v46  ;;  %v6642_v16 = vadd.f32 %v6641_v11, %v6640_v60 }
 0x2f6   :  { %7155 = vmatmul.mubr.bf16.gmra.mrb[176].mxu1 %v7686_v48 }
 0x2f7   :  { %v8805_v14 = vadd.f32 %v6642_v16, %v6578_v12  ;;  %7158 = vmatprep.mubr.bf16.mxu1 %v7687_v10 }
 0x2f9   :  { %v6579_v6 = vpop.f32.mrb[72].mxu1  ;;  %v6643_v15 = vpop.f32.mrb[88].mxu0 }
 0x2fa   :  { %v6580_v33 = vpop.f32.mrb[73].mxu1  ;;  %v6644_v18 = vpop.f32.mrb[89].mxu0 }
 0x2fb   :  { %v6581_v50 = vadd.f32 %v6580_v33, %v6579_v6  ;;  %v6645_v27 = vadd.f32 %v6644_v18, %v6643_v15  ;;  %v6582_v30 = vpop.f32.mrb[74].mxu1  ;;  %v6646_v35 = vpop.f32.mrb[90].mxu0 }
 0x2fc   :  { %v6583_v36 = vpop.f32.mrb[75].mxu1  ;;  %v6647_v63 = vpop.f32.mrb[91].mxu0 }
 0x2fd   :  { %v8813_v37 = vadd.f32 %v6645_v27, %v6581_v50  ;;  %v6584_v38 = vadd.f32 %v6583_v36, %v6582_v30  ;;  %v6648_v39 = vadd.f32 %v6647_v63, %v6646_v35 }
 0x2fe   :  { %7159 = vmatmul.mubr.bf16.gmra.mrb[180].mxu1 %v7688_v13 }
 0x2ff   :  { %v8815_v40 = vadd.f32 %v6648_v39, %v6584_v38  ;;  %7162 = vmatprep.mubr.bf16.mxu1 %v7689_v17 }
 0x301   :  { %v6585_v34 = vpop.f32.mrb[76].mxu1  ;;  %v6649_v49 = vpop.f32.mrb[92].mxu0 }
 0x302   :  { %v6586_v51 = vpop.f32.mrb[77].mxu1  ;;  %v6650_v52 = vpop.f32.mrb[93].mxu0 }
 0x303   :  { %v6587_v58 = vadd.f32 %v6586_v51, %v6585_v34  ;;  %v6651_v59 = vadd.f32 %v6650_v52, %v6649_v49  ;;  %v6588_v23 = vpop.f32.mrb[78].mxu1  ;;  %v6652_v61 = vpop.f32.mrb[94].mxu0 }
 0x304   :  { %v6589_v20 = vpop.f32.mrb[79].mxu1  ;;  %v6653_v21 = vpop.f32.mrb[95].mxu0 }
 0x305   :  { %v8823_v22 = vadd.f32 %v6651_v59, %v6587_v58  ;;  %v6590_v24 = vadd.f32 %v6589_v20, %v6588_v23  ;;  %v6654_v25 = vadd.f32 %v6653_v21, %v6652_v61 }
 0x306   :  { %7163 = vmatmul.mubr.bf16.gmra.mrb[184].mxu1 %v7690_v45 }
 0x307   :  { %v8825_v26 = vadd.f32 %v6654_v25, %v6590_v24  ;;  %7166 = vmatprep.mubr.bf16.mxu1 %v7691_v62 }
 0x309   :  { %v6591_v1 = vpop.f32.mrb[80].mxu1  ;;  %v6655_v2 = vpop.f32.mrb[96].mxu0 }
 0x30a   :  { %v6592_v3 = vpop.f32.mrb[81].mxu1  ;;  %v6656_v4 = vpop.f32.mrb[97].mxu0 }
 0x30b   :  { %v6593_v55 = vadd.f32 %v6592_v3, %v6591_v1  ;;  %v6657_v54 = vadd.f32 %v6656_v4, %v6655_v2  ;;  %v6594_v29 = vpop.f32.mrb[82].mxu1  ;;  %v6658_v41 = vpop.f32.mrb[98].mxu0 }
 0x30c   :  { %v6595_v28 = vpop.f32.mrb[83].mxu1  ;;  %v6659_v31 = vpop.f32.mrb[99].mxu0 }
 0x30d   :  { %v8830_v0 = vadd.f32 %v6657_v54, %v6593_v55  ;;  %v6596_v48 = vadd.f32 %v6595_v28, %v6594_v29  ;;  %v6660_v56 = vadd.f32 %v6659_v31, %v6658_v41 }
 0x30e   :  { %7167 = vmatmul.mubr.bf16.gmra.mrb[188].mxu1 %v7692_v5 }
 0x30f   :  { %v8832_v9 = vadd.f32 %v6660_v56, %v6596_v48  ;;  %4127 = vmatprep.mubr.bf16.mxu1 %v7820_v19 }
 0x311   :  { %v6597_v46 = vpop.f32.mrb[84].mxu1  ;;  %v6661_v60 = vpop.f32.mrb[100].mxu0 }
 0x312   :  { %v6598_v10 = vpop.f32.mrb[85].mxu1  ;;  %v6662_v53 = vpop.f32.mrb[101].mxu0 }
 0x313   :  { %v6599_v11 = vadd.f32 %v6598_v10, %v6597_v46  ;;  %v6663_v12 = vadd.f32 %v6662_v53, %v6661_v60  ;;  %v6600_v16 = vpop.f32.mrb[86].mxu1  ;;  %v6664_v6 = vpop.f32.mrb[102].mxu0 }
 0x314   :  { %v6601_v15 = vpop.f32.mrb[87].mxu1  ;;  %v6665_v13 = vpop.f32.mrb[103].mxu0 }
 0x315   :  { %v8835_v17 = vadd.f32 %v6663_v12, %v6599_v11  ;;  %v6602_v33 = vadd.f32 %v6601_v15, %v6600_v16  ;;  %v6666_v18 = vadd.f32 %v6665_v13, %v6664_v6 }
 0x317   :  { %v8837_v50 = vadd.f32 %v6666_v18, %v6602_v33 }
 0x319   :  { %v6603_v27 = vpop.f32.mrb[88].mxu1  ;;  %v6667_v30 = vpop.f32.mrb[104].mxu0 }
 0x31a   :  { %v6604_v35 = vpop.f32.mrb[89].mxu1  ;;  %v6668_v36 = vpop.f32.mrb[105].mxu0 }
 0x31b   :  { %v6605_v63 = vadd.f32 %v6604_v35, %v6603_v27  ;;  %v6669_v38 = vadd.f32 %v6668_v36, %v6667_v30  ;;  %v6606_v39 = vpop.f32.mrb[90].mxu1  ;;  %v6670_v45 = vpop.f32.mrb[106].mxu0 }
 0x31c   :  { %v6607_v34 = vpop.f32.mrb[91].mxu1  ;;  %v6671_v49 = vpop.f32.mrb[107].mxu0 }
 0x31d   :  { %v8839_v51 = vadd.f32 %v6669_v38, %v6605_v63  ;;  %v6608_v52 = vadd.f32 %v6607_v34, %v6606_v39  ;;  %v6672_v58 = vadd.f32 %v6671_v49, %v6670_v45 }
 0x31f   :  { %v8841_v59 = vadd.f32 %v6672_v58, %v6608_v52 }
 0x321   :  { %v6609_v23 = vpop.f32.mrb[92].mxu1  ;;  %v6673_v61 = vpop.f32.mrb[108].mxu0 }
 0x322   :  { %v6610_v62 = vpop.f32.mrb[93].mxu1  ;;  %v6674_v20 = vpop.f32.mrb[109].mxu0 }
 0x323   :  { %v6611_v21 = vadd.f32 %v6610_v62, %v6609_v23  ;;  %v6675_v24 = vadd.f32 %v6674_v20, %v6673_v61  ;;  %v6612_v25 = vpop.f32.mrb[94].mxu1  ;;  %v6676_v1 = vpop.f32.mrb[110].mxu0 }
 0x324   :  { %v6613_v2 = vpop.f32.mrb[95].mxu1  ;;  %v6677_v3 = vpop.f32.mrb[111].mxu0 }
 0x325   :  { %v8843_v4 = vadd.f32 %v6675_v24, %v6611_v21  ;;  %v6614_v5 = vadd.f32 %v6613_v2, %v6612_v25  ;;  %v6678_v55 = vadd.f32 %v6677_v3, %v6676_v1 }
 0x327   :  { %v8845_v54 = vadd.f32 %v6678_v55, %v6614_v5 }
 0x329   :  { %v6695_v29 = vpop.f32.mrb[96].mxu1  ;;  %v6759_v41 = vpop.f32.mrb[112].mxu0 }
 0x32a   :  { %v6696_v28 = vpop.f32.mrb[97].mxu1  ;;  %v6760_v31 = vpop.f32.mrb[113].mxu0 }
 0x32b   :  { %v6697_v48 = vadd.f32 %v6696_v28, %v6695_v29  ;;  %v6761_v56 = vadd.f32 %v6760_v31, %v6759_v41  ;;  %v6698_v46 = vpop.f32.mrb[98].mxu1  ;;  %v6762_v60 = vpop.f32.mrb[114].mxu0 }
 0x32c   :  { %v6699_v10 = vpop.f32.mrb[99].mxu1  ;;  %v6763_v53 = vpop.f32.mrb[115].mxu0 }
 0x32d   :  { %v2097_v11 = vadd.f32 %v6697_v48, %v8791_v43  ;;  %v6700_v12 = vadd.f32 %v6699_v10, %v6698_v46  ;;  %v6764_v16 = vadd.f32 %v6763_v53, %v6762_v60 }
 0x32f   :  { %v2194_v6 = vadd.f32 %v6761_v56, %v2097_v11  ;;  %v2100_v15 = vadd.f32 %v6700_v12, %v8793_v32 }
 0x331   :  { %v2197_v13 = vadd.f32 %v6764_v16, %v2100_v15  ;;  %v6701_v33 = vpop.f32.mrb[100].mxu1  ;;  %v6765_v18 = vpop.f32.mrb[116].mxu0 }
 0x332   :  { %v6702_v27 = vpop.f32.mrb[101].mxu1  ;;  %v6766_v30 = vpop.f32.mrb[117].mxu0 }
 0x333   :  { %v7431_v35 = vpack.c.bf16 %v2197_v13, %v2194_v6  ;;  %v6703_v36 = vadd.f32 %v6702_v27, %v6701_v33  ;;  %v6767_v63 = vadd.f32 %v6766_v30, %v6765_v18  ;;  %v6704_v38 = vpop.f32.mrb[102].mxu1  ;;  %v6768_v39 = vpop.f32.mrb[118].mxu0 }
 0x334   :  { %v6705_v45 = vpop.f32.mrb[103].mxu1  ;;  %v6769_v34 = vpop.f32.mrb[119].mxu0 }
 0x335   :  { %v2105_v49 = vadd.f32 %v6703_v36, %v8803_v8  ;;  %v6706_v43 = vadd.f32 %v6705_v45, %v6704_v38  ;;  %v6770_v52 = vadd.f32 %v6769_v34, %v6768_v39  ;;  %7432 = vmatpush3.bf16.msra.mxu0 %v7431_v35 }
 0x336   :  { %7433 = vmatprep.subr.bf16.mxu0 %v7821_v42 }
 0x337   :  { %v2202_v32 = vadd.f32 %v6767_v63, %v2105_v49  ;;  %v2108_v58 = vadd.f32 %v6706_v43, %v8805_v14 }
 0x339   :  { %v2205_v23 = vadd.f32 %v6770_v52, %v2108_v58  ;;  %v6707_v61 = vpop.f32.mrb[104].mxu1  ;;  %v6771_v62 = vpop.f32.mrb[120].mxu0 }
 0x33a   :  { %v6708_v20 = vpop.f32.mrb[105].mxu1  ;;  %v6772_v21 = vpop.f32.mrb[121].mxu0 }
 0x33b   :  { %v7434_v24 = vpack.c.bf16 %v2205_v23, %v2202_v32  ;;  %v6709_v25 = vadd.f32 %v6708_v20, %v6707_v61  ;;  %v6773_v1 = vadd.f32 %v6772_v21, %v6771_v62  ;;  %v6710_v2 = vpop.f32.mrb[106].mxu1  ;;  %v6774_v3 = vpop.f32.mrb[122].mxu0 }
 0x33c   :  { %v6711_v5 = vpop.f32.mrb[107].mxu1  ;;  %v6775_v8 = vpop.f32.mrb[123].mxu0 }
 0x33d   :  { %v2113_v55 = vadd.f32 %v6709_v25, %v8813_v37  ;;  %v6712_v29 = vadd.f32 %v6711_v5, %v6710_v2  ;;  %v6776_v41 = vadd.f32 %v6775_v8, %v6774_v3  ;;  %7435 = vmatpush3.bf16.msra.mxu0 %v7434_v24 }
 0x33e   :  { %7436 = vmatprep.subr.bf16.mxu0 %v7821_v42 }
 0x33f   :  { %v2210_v14 = vadd.f32 %v6773_v1, %v2113_v55  ;;  %v2116_v28 = vadd.f32 %v6712_v29, %v8815_v40 }
 0x341   :  { %v2213_v31 = vadd.f32 %v6776_v41, %v2116_v28  ;;  %v6713_v48 = vpop.f32.mrb[108].mxu1  ;;  %v6777_v56 = vpop.f32.mrb[124].mxu0 }
 0x342   :  { %v6714_v46 = vpop.f32.mrb[109].mxu1  ;;  %v6778_v60 = vpop.f32.mrb[125].mxu0 }
 0x343   :  { %v7437_v10 = vpack.c.bf16 %v2213_v31, %v2210_v14  ;;  %v6715_v53 = vadd.f32 %v6714_v46, %v6713_v48  ;;  %v6779_v11 = vadd.f32 %v6778_v60, %v6777_v56  ;;  %v6716_v12 = vpop.f32.mrb[110].mxu1  ;;  %v6780_v16 = vpop.f32.mrb[126].mxu0 }
 0x344   :  { %v6717_v6 = vpop.f32.mrb[111].mxu1  ;;  %v6781_v37 = vpop.f32.mrb[127].mxu0 }
 0x345   :  { %v2121_v15 = vadd.f32 %v6715_v53, %v8823_v22  ;;  %v6718_v13 = vadd.f32 %v6717_v6, %v6716_v12  ;;  %v6782_v33 = vadd.f32 %v6781_v37, %v6780_v16  ;;  %7438 = vmatpush3.bf16.msra.mxu0 %v7437_v10 }
 0x346   :  { %7439 = vmatprep.subr.bf16.mxu0 %v7821_v42 }
 0x347   :  { %v2218_v40 = vadd.f32 %v6779_v11, %v2121_v15  ;;  %v2124_v18 = vadd.f32 %v6718_v13, %v8825_v26 }
 0x349   :  { %v2221_v27 = vadd.f32 %v6782_v33, %v2124_v18  ;;  %v6719_v30 = vpop.f32.mrb[112].mxu1  ;;  %v6783_v35 = vpop.f32.mrb[128].mxu0 }
 0x34a   :  { %v6720_v36 = vpop.f32.mrb[113].mxu1  ;;  %v6784_v63 = vpop.f32.mrb[129].mxu0 }
 0x34b   :  { %v7440_v38 = vpack.c.bf16 %v2221_v27, %v2218_v40  ;;  %v6721_v39 = vadd.f32 %v6720_v36, %v6719_v30  ;;  %v6785_v45 = vadd.f32 %v6784_v63, %v6783_v35  ;;  %v6722_v34 = vpop.f32.mrb[114].mxu1  ;;  %v6786_v49 = vpop.f32.mrb[130].mxu0 }
 0x34c   :  { %v6723_v43 = vpop.f32.mrb[115].mxu1  ;;  %v6787_v22 = vpop.f32.mrb[131].mxu0 }
 0x34d   :  { %v2129_v52 = vadd.f32 %v6721_v39, %v8830_v0  ;;  %v6724_v32 = vadd.f32 %v6723_v43, %v6722_v34  ;;  %v6788_v58 = vadd.f32 %v6787_v22, %v6786_v49  ;;  %7441 = vmatpush3.bf16.msra.mxu0 %v7440_v38 }
 0x34e   :  { %7442 = vmatprep.subr.bf16.mxu0 %v7821_v42 }
 0x34f   :  { %v2226_v26 = vadd.f32 %v6785_v45, %v2129_v52  ;;  %v2132_v23 = vadd.f32 %v6724_v32, %v8832_v9 }
 0x351   :  { %v2229_v61 = vadd.f32 %v6788_v58, %v2132_v23  ;;  %v6725_v62 = vpop.f32.mrb[116].mxu1  ;;  %v6789_v20 = vpop.f32.mrb[132].mxu0 }
 0x352   :  { %v6726_v21 = vpop.f32.mrb[117].mxu1  ;;  %v6790_v24 = vpop.f32.mrb[133].mxu0 }
 0x353   :  { %v7443_v25 = vpack.c.bf16 %v2229_v61, %v2226_v26  ;;  %v6727_v1 = vadd.f32 %v6726_v21, %v6725_v62  ;;  %v6791_v2 = vadd.f32 %v6790_v24, %v6789_v20  ;;  %v6728_v3 = vpop.f32.mrb[118].mxu1  ;;  %v6792_v5 = vpop.f32.mrb[134].mxu0  ;;  %v7693_v26 = vld [vmem:[%s9547_s9 + $0x8] sm:$0xff]   ;;  %v2256_v21 = vld [vmem:[%s9548_s25] sm:$0x3] }
 0x354   :  { %v6729_v8 = vpop.f32.mrb[119].mxu1  ;;  %v6793_v0 = vpop.f32.mrb[135].mxu0 }
 0x355   :  { %v2137_v55 = vadd.f32 %v6727_v1, %v8835_v17  ;;  %v6730_v29 = vadd.f32 %v6729_v8, %v6728_v3  ;;  %v6794_v41 = vadd.f32 %v6793_v0, %v6792_v5  ;;  %7444 = vmatpush3.bf16.msra.mxu0 %v7443_v25  ;;  %v7695_v8 = vld [vmem:[%s9547_s9 + $0x10] sm:$0xff]  }
 0x356   :  { %7445 = vmatprep.subr.bf16.mxu0 %v7821_v42 }
 0x357   :  { %v2234_v9 = vadd.f32 %v6791_v2, %v2137_v55  ;;  %v2140_v14 = vadd.f32 %v6730_v29, %v8837_v50 }
 0x359   :  { %v2237_v28 = vadd.f32 %v6794_v41, %v2140_v14  ;;  %v6731_v31 = vpop.f32.mrb[120].mxu1  ;;  %v6795_v48 = vpop.f32.mrb[136].mxu0 }
 0x35a   :  { %v6732_v56 = vpop.f32.mrb[121].mxu1  ;;  %v6796_v46 = vpop.f32.mrb[137].mxu0 }
 0x35b   :  { %v7446_v60 = vpack.c.bf16 %v2237_v28, %v2234_v9  ;;  %v6733_v10 = vadd.f32 %v6732_v56, %v6731_v31  ;;  %v6797_v53 = vadd.f32 %v6796_v46, %v6795_v48  ;;  %v6734_v11 = vpop.f32.mrb[122].mxu1  ;;  %v6798_v12 = vpop.f32.mrb[138].mxu0  ;;  %v7696_v48 = vld [vmem:[%s9547_s9 + $0x18] sm:$0xff]  }
 0x35c   :  { %v6735_v16 = vpop.f32.mrb[123].mxu1  ;;  %v6799_v17 = vpop.f32.mrb[139].mxu0 }
 0x35d   :  { %v2145_v6 = vadd.f32 %v6733_v10, %v8839_v51  ;;  %v6736_v37 = vadd.f32 %v6735_v16, %v6734_v11  ;;  %v6800_v15 = vadd.f32 %v6799_v17, %v6798_v12  ;;  %7447 = vmatpush3.bf16.msra.mxu0 %v7446_v60 }
 0x35e   :  { %7448 = vmatprep.subr.bf16.mxu0 %v7821_v42 }
 0x35f   :  { %v2242_v50 = vadd.f32 %v6797_v53, %v2145_v6  ;;  %v2148_v13 = vadd.f32 %v6736_v37, %v8841_v59  ;;  %v7697_v37 = vld [vmem:[%s9547_s9 + $0x20] sm:$0xff]  }
 0x361   :  { %v2245_v33 = vadd.f32 %v6800_v15, %v2148_v13  ;;  %v6737_v40 = vpop.f32.mrb[124].mxu1  ;;  %v6801_v18 = vpop.f32.mrb[140].mxu0 }
 0x362   :  { %v6738_v27 = vpop.f32.mrb[125].mxu1  ;;  %v6802_v30 = vpop.f32.mrb[141].mxu0 }
 0x363   :  { %v7449_v35 = vpack.c.bf16 %v2245_v33, %v2242_v50  ;;  %v6739_v36 = vadd.f32 %v6738_v27, %v6737_v40  ;;  %v6803_v63 = vadd.f32 %v6802_v30, %v6801_v18  ;;  %v6740_v38 = vpop.f32.mrb[126].mxu1  ;;  %v6804_v39 = vpop.f32.mrb[142].mxu0  ;;  %v7698_v30 = vld [vmem:[%s9547_s9 + $0x28] sm:$0xff]  }
 0x364   :  { %v6741_v45 = vpop.f32.mrb[127].mxu1  ;;  %v6805_v51 = vpop.f32.mrb[143].mxu0 }
 0x365   :  { %v2153_v34 = vadd.f32 %v6739_v36, %v8843_v4  ;;  %v6742_v49 = vadd.f32 %v6741_v45, %v6740_v38  ;;  %v6806_v43 = vadd.f32 %v6805_v51, %v6804_v39  ;;  %7450 = vmatpush3.bf16.msra.mxu0 %v7449_v35 }
 0x366   :  { %7451 = vmatprep.subr.bf16.mxu0 %v7821_v42 }
 0x367   :  { %v2250_v59 = vadd.f32 %v6803_v63, %v2153_v34  ;;  %v2156_v22 = vadd.f32 %v6742_v49, %v8845_v54  ;;  %v7694_v54 = vld [vmem:[%s9547_s9] sm:$0xff]  }
 0x369   :  { %v2253_v52 = vadd.f32 %v6806_v43, %v2156_v22  ;;  %v7108_v32 = vpop.f32.mrb[128].mxu1  ;;  %v7699_v22 = vld [vmem:[%s9547_s9 + $0x30] sm:$0xff]  }
 0x36a   :  { %v2624_v58 = vpop.f32.mrb[129].mxu1 }
 0x36b   :  { %v7452_v23 = vpack.c.bf16 %v2253_v52, %v2250_v59  ;;  %v7109_v61 = vpop.f32.mrb[130].mxu1 }
 0x36c   :  { %v2880_v62 = vpack.c.bf16 %v7109_v61, %v7108_v32  ;;  %v2627_v20 = vpop.f32.mrb[131].mxu1 }
 0x36d   :  { %v2879_v4 = vpack.c.bf16 %v2627_v20, %v2624_v58  ;;  %7453 = vmatpush3.bf16.msra.mxu0 %v7452_v23  ;;  %v7700_v20 = vld [vmem:[%s9547_s9 + $0x38] sm:$0xff]  }
 0x36e   :  { %7170 = vmatprep.subr.bf16.mxu0 %v7693_v26 }
 0x370   :  { %7088 = vmatmul.mubr.f32.vlgmr.msra.gmra.mrb[144].mxu0 %v2256_v21 }
 0x371   :  { %v7112_v24 = vpop.f32.mrb[132].mxu1  ;;  %7171 = vmatpush3.bf16.msra.mxu0 %v7693_v26 }
 0x372   :  { %v2640_v25 = vpop.f32.mrb[133].mxu1  ;;  %7176 = vmatprep.subr.bf16.mxu0 %v7694_v54 }
 0x373   :  { %v7113_v1 = vpop.f32.mrb[134].mxu1 }
 0x374   :  { %v2884_v2 = vpack.c.bf16 %v7113_v1, %v7112_v24  ;;  %v2643_v3 = vpop.f32.mrb[135].mxu1 }
 0x375   :  { %v2883_v5 = vpack.c.bf16 %v2643_v3, %v2640_v25 }
 0x377   :  { %7172 = vmatprep.mubr.msk.bf16.mxu0 %vm281_vm1, %v2883_v5 }
 0x378   :  { %7173 = vmatmul.mubr.msk.bf16.vlgmr.msra.gmra.mrb[148].mxu0 %vm281_vm1, %v2884_v2 }
 0x379   :  { %7178 = vmatprep.mubr.msk.bf16.mxu0 %vm281_vm1, %v2879_v4  ;;  %7177 = vmatpush3.bf16.msra.mxu0 %v7694_v54  ;;  %v7116_v0 = vpop.f32.mrb[136].mxu1 }
 0x37a   :  { %v2656_v55 = vpop.f32.mrb[137].mxu1  ;;  %7182 = vmatprep.subr.bf16.mxu0 %v7695_v8 }
 0x37b   :  { %v7117_v29 = vpop.f32.mrb[138].mxu1 }
 0x37c   :  { %v3010_v41 = vpack.c.bf16 %v7117_v29, %v7116_v0  ;;  %v2659_v9 = vpop.f32.mrb[139].mxu1 }
 0x37d   :  { %v3009_v14 = vpack.c.bf16 %v2659_v9, %v2656_v55  ;;  %v7701_v55 = vld [vmem:[%s9547_s9 + $0x40] sm:$0xff]  }
 0x381   :  { %v7120_v28 = vpop.f32.mrb[140].mxu1 }
 0x382   :  { %v2672_v31 = vpop.f32.mrb[141].mxu1 }
 0x383   :  { %v7121_v56 = vpop.f32.mrb[142].mxu1 }
 0x384   :  { %7179 = vmatmul.mubr.msk.bf16.vlgmr.msra.gmra.mrb[148].mxu0 %vm281_vm1, %v2880_v62  ;;  %v3079_v46 = vpack.c.bf16 %v7121_v56, %v7120_v28  ;;  %v2675_v60 = vpop.f32.mrb[143].mxu1  ;;  %v7711_v56 = vld [vmem:[%s9508_s11 + $0x4] ss:$16 sps:$4 sm:$0xff]  }
 0x385   :  { %7183 = vmatpush3.bf16.msra.mxu0 %v7695_v8  ;;  %7184 = vmatprep.mubr.msk.bf16.mxu0 %vm281_vm1, %v3009_v14  ;;  %v3078_v10 = vpack.c.bf16 %v2675_v60, %v2672_v31  ;;  %v7702_v60 = vld [vmem:[%s9547_s9 + $0x48] sm:$0xff]  }
 0x386   :  { %7188 = vmatprep.subr.bf16.mxu0 %v7696_v48  ;;  %4095 = vmatprep.subr.bf16.mxu1 %v7711_v56 }
 0x389   :  { %v7124_v53 = vpop.f32.mrb[144].mxu1 }
 0x38a   :  { %v2688_v11 = vpop.f32.mrb[145].mxu1 }
 0x38b   :  { %v7125_v12 = vpop.f32.mrb[146].mxu1 }
 0x38c   :  { %v3148_v16 = vpack.c.bf16 %v7125_v12, %v7124_v53  ;;  %v2691_v17 = vpop.f32.mrb[147].mxu1 }
 0x38d   :  { %v3147_v6 = vpack.c.bf16 %v2691_v17, %v2688_v11 }
 0x390   :  { %7185 = vmatmul.mubr.msk.bf16.vlgmr.msra.gmra.mrb[148].mxu0 %vm281_vm1, %v3010_v41 }
 0x391   :  { %7189 = vmatpush3.bf16.msra.mxu0 %v7696_v48  ;;  %7190 = vmatprep.mubr.msk.bf16.mxu0 %vm281_vm1, %v3078_v10  ;;  %v7128_v15 = vpop.f32.mrb[148].mxu1  ;;  %v7709_v48 = vld [vmem:[%s9508_s11] ss:$16 sps:$4 sm:$0xff]  }
 0x392   :  { %7194 = vmatprep.subr.bf16.mxu0 %v7697_v37  ;;  %v2704_v50 = vpop.f32.mrb[149].mxu1  ;;  %4096 = vmatpush1.bf16.msra.mxu1 %v7709_v48 }
 0x393   :  { %v7129_v13 = vpop.f32.mrb[150].mxu1 }
 0x394   :  { %v3217_v33 = vpack.c.bf16 %v7129_v13, %v7128_v15  ;;  %v2707_v40 = vpop.f32.mrb[151].mxu1 }
 0x395   :  { %v3216_v18 = vpack.c.bf16 %v2707_v40, %v2704_v50 }
 0x399   :  { %v7132_v27 = vpop.f32.mrb[152].mxu1 }
 0x39a   :  { %v2720_v35 = vpop.f32.mrb[153].mxu1 }
 0x39b   :  { %v7133_v36 = vpop.f32.mrb[154].mxu1 }
 0x39c   :  { %7191 = vmatmul.mubr.msk.bf16.vlgmr.msra.gmra.mrb[148].mxu0 %vm281_vm1, %v3079_v46  ;;  %v3286_v63 = vpack.c.bf16 %v7133_v36, %v7132_v27  ;;  %v2723_v38 = vpop.f32.mrb[155].mxu1 }
 0x39d   :  { %7195 = vmatpush3.bf16.msra.mxu0 %v7697_v37  ;;  %7196 = vmatprep.mubr.msk.bf16.mxu0 %vm281_vm1, %v3147_v6  ;;  %v3285_v39 = vpack.c.bf16 %v2723_v38, %v2720_v35  ;;  %v7704_v38 = vld [vmem:[%s9547_s9 + $0x58] sm:$0xff]  }
 0x39e   :  { %7200 = vmatprep.subr.bf16.mxu0 %v7698_v30 }
 0x3a1   :  { %v7136_v45 = vpop.f32.mrb[156].mxu1 }
 0x3a2   :  { %v2736_v51 = vpop.f32.mrb[157].mxu1 }
 0x3a3   :  { %v7137_v34 = vpop.f32.mrb[158].mxu1 }
 0x3a4   :  { %v3355_v49 = vpack.c.bf16 %v7137_v34, %v7136_v45  ;;  %v2739_v43 = vpop.f32.mrb[159].mxu1 }
 0x3a5   :  { %v3354_v59 = vpack.c.bf16 %v2739_v43, %v2736_v51  ;;  %v7705_v43 = vld [vmem:[%s9547_s9 + $0x60] sm:$0xff]  }
 0x3a8   :  { %7197 = vmatmul.mubr.msk.bf16.vlgmr.msra.gmra.mrb[148].mxu0 %vm281_vm1, %v3148_v16 }
 0x3a9   :  { %7201 = vmatpush3.bf16.msra.mxu0 %v7698_v30  ;;  %7202 = vmatprep.mubr.msk.bf16.mxu0 %vm281_vm1, %v3216_v18  ;;  %v7140_v52 = vpop.f32.mrb[160].mxu1 }
 0x3aa   :  { %7206 = vmatprep.subr.bf16.mxu0 %v7699_v22  ;;  %v2752_v32 = vpop.f32.mrb[161].mxu1 }
 0x3ab   :  { %v7141_v58 = vpop.f32.mrb[162].mxu1 }
 0x3ac   :  { %v3424_v26 = vpack.c.bf16 %v7141_v58, %v7140_v52  ;;  %v2755_v23 = vpop.f32.mrb[163].mxu1  ;;  %v7708_v52 = vld [vmem:[%s9547_s9 + $0x78] sm:$0xff]  }
 0x3ad   :  { %v3423_v61 = vpack.c.bf16 %v2755_v23, %v2752_v32  ;;  %v6327_v32 = vld [vmem:[%s9509_s6] ss:$0 sm:$0xff] }
 0x3b1   :  { %v8905_v62 = vpop.f32.mrb[164].mxu1 }
 0x3b2   :  { %v2768_v4 = vpop.f32.mrb[165].mxu1 }
 0x3b3   :  { %v8910_v21 = vpop.f32.mrb[166].mxu1 }
 0x3b4   :  { %7203 = vmatmul.mubr.msk.bf16.vlgmr.msra.gmra.mrb[148].mxu0 %vm281_vm1, %v3217_v33  ;;  %v3493_v54 = vpack.c.bf16 %v8910_v21, %v8905_v62  ;;  %v2771_v24 = vpop.f32.mrb[167].mxu1  ;;  %v7703_v33 = vld [vmem:[%s9547_s9 + $0x50] sm:$0xff]   ;;  %v7720_v21 = vld [vmem:[%s9508_s11 + $0x2c] ss:$16 sps:$4 sm:$0xff]  }
 0x3b5   :  { %7207 = vmatpush3.bf16.msra.mxu0 %v7699_v22  ;;  %7208 = vmatprep.mubr.msk.bf16.mxu0 %vm281_vm1, %v3285_v39  ;;  %v3492_v25 = vpack.c.bf16 %v2771_v24, %v2768_v4  ;;  %v7707_v22 = vld [vmem:[%s9547_s9 + $0x70] sm:$0xff]   ;;  %v7715_v4 = vld [vmem:[%s9508_s11 + $0x8] ss:$16 sps:$4 sm:$0xff]   ;;  %v7721_v24 = vld [vmem:[%s9511_s13 + $0xc0] sm:$0xff]  }
 0x3b6   :  { %7212 = vmatprep.subr.bf16.mxu0 %v7700_v20  ;;  %v7714_v62 = vld [vmem:[%s9508_s11 + $0x24] ss:$16 sps:$4 sm:$0xff]  }
 0x3b7   :  { %4097 = vmatprep.subr.bf16.mxu1 %v7714_v62 }
 0x3b9   :  { %v8916_v1 = vpop.f32.mrb[168].mxu1 }
 0x3ba   :  { %v2784_v2 = vpop.f32.mrb[169].mxu1 }
 0x3bb   :  { %v7149_v3 = vpop.f32.mrb[170].mxu1 }
 0x3bc   :  { %v3562_v5 = vpack.c.bf16 %v7149_v3, %v8916_v1  ;;  %v2787_v8 = vpop.f32.mrb[171].mxu1 }
 0x3bd   :  { %v3561_v0 = vpack.c.bf16 %v2787_v8, %v2784_v2 }
 0x3c0   :  { %7209 = vmatmul.mubr.msk.bf16.vlgmr.msra.gmra.mrb[148].mxu0 %vm281_vm1, %v3286_v63 }
 0x3c1   :  { %7213 = vmatpush3.bf16.msra.mxu0 %v7700_v20  ;;  %7214 = vmatprep.mubr.msk.bf16.mxu0 %vm281_vm1, %v3354_v59  ;;  %v7152_v29 = vpop.f32.mrb[172].mxu1  ;;  %v7706_v59 = vld [vmem:[%s9547_s9 + $0x68] sm:$0xff]  }
 0x3c2   :  { %7218 = vmatprep.subr.bf16.mxu0 %v7701_v55  ;;  %v2800_v41 = vpop.f32.mrb[173].mxu1  ;;  %v7717_v20 = vld [vmem:[%s9508_s11 + $0xc] ss:$16 sps:$4 sm:$0xff]  }
 0x3c3   :  { %v7153_v9 = vpop.f32.mrb[174].mxu1 }
 0x3c4   :  { %v3631_v14 = vpack.c.bf16 %v7153_v9, %v7152_v29  ;;  %v2803_v28 = vpop.f32.mrb[175].mxu1 }
 0x3c5   :  { %v3630_v31 = vpack.c.bf16 %v2803_v28, %v2800_v41 }
 0x3c9   :  { %v7156_v46 = vpop.f32.mrb[176].mxu1 }
 0x3ca   :  { %v2816_v10 = vpop.f32.mrb[177].mxu1 }
 0x3cb   :  { %v7157_v53 = vpop.f32.mrb[178].mxu1 }
 0x3cc   :  { %7215 = vmatmul.mubr.msk.bf16.vlgmr.msra.gmra.mrb[148].mxu0 %vm281_vm1, %v3355_v49  ;;  %v3700_v11 = vpack.c.bf16 %v7157_v53, %v7156_v46  ;;  %v2819_v12 = vpop.f32.mrb[179].mxu1 }
 0x3cd   :  { %7219 = vmatpush3.bf16.msra.mxu0 %v7701_v55  ;;  %7220 = vmatprep.mubr.msk.bf16.mxu0 %vm281_vm1, %v3423_v61  ;;  %v3699_v16 = vpack.c.bf16 %v2819_v12, %v2816_v10  ;;  %v7712_v61 = vld [vmem:[%s9508_s11 + $0x20] ss:$16 sps:$4 sm:$0xff]  }
 0x3ce   :  { %7224 = vmatprep.subr.bf16.mxu0 %v7702_v60  ;;  %4098 = vmatpush1.bf16.msra.mxu1 %v7712_v61 }
 0x3d1   :  { %v7160_v17 = vpop.f32.mrb[180].mxu1 }
 0x3d2   :  { %v2832_v6 = vpop.f32.mrb[181].mxu1 }
 0x3d3   :  { %v7161_v37 = vpop.f32.mrb[182].mxu1 }
 0x3d4   :  { %v3769_v15 = vpack.c.bf16 %v7161_v37, %v7160_v17  ;;  %v2835_v50 = vpop.f32.mrb[183].mxu1 }
 0x3d5   :  { %v3768_v13 = vpack.c.bf16 %v2835_v50, %v2832_v6 }
 0x3d8   :  { %7221 = vmatmul.mubr.msk.bf16.vlgmr.msra.gmra.mrb[148].mxu0 %vm281_vm1, %v3424_v26 }
 0x3d9   :  { %7225 = vmatpush3.bf16.msra.mxu0 %v7702_v60  ;;  %7226 = vmatprep.mubr.msk.bf16.mxu0 %vm281_vm1, %v3492_v25  ;;  %v7164_v40 = vpop.f32.mrb[184].mxu1  ;;  %v7737_v25 = vld [vmem:[%s9511_s13 + $0x40] sm:$0xff]  }
 0x3da   :  { %7230 = vmatprep.subr.bf16.mxu0 %v7703_v33  ;;  %v2848_v18 = vpop.f32.mrb[185].mxu1  ;;  %6912 = vmatprep.subr.bf16.mxu1 %v7737_v25 }
 0x3db   :  { %v7165_v27 = vpop.f32.mrb[186].mxu1 }
 0x3dc   :  { %v3838_v30 = vpack.c.bf16 %v7165_v27, %v7164_v40  ;;  %v2851_v35 = vpop.f32.mrb[187].mxu1 }
 0x3dd   :  { %v3837_v36 = vpack.c.bf16 %v2851_v35, %v2848_v18 }
 0x3e1   :  { %v7168_v63 = vpop.f32.mrb[188].mxu1 }
 0x3e2   :  { %v2864_v39 = vpop.f32.mrb[189].mxu1 }
 0x3e3   :  { %v7169_v45 = vpop.f32.mrb[190].mxu1 }
 0x3e4   :  { %7227 = vmatmul.mubr.msk.bf16.vlgmr.msra.gmra.mrb[148].mxu0 %vm281_vm1, %v3493_v54  ;;  %v3907_v51 = vpack.c.bf16 %v7169_v45, %v7168_v63  ;;  %v2867_v34 = vpop.f32.mrb[191].mxu1  ;;  %v7718_v54 = vld [vmem:[%s9508_s11 + $0x28] ss:$16 sps:$4 sm:$0xff]  }
 0x3e5   :  { %7231 = vmatpush3.bf16.msra.mxu0 %v7703_v33  ;;  %7232 = vmatprep.mubr.msk.bf16.mxu0 %vm281_vm1, %v3561_v0  ;;  %v3906_v49 = vpack.c.bf16 %v2867_v34, %v2864_v39 }
 0x3e6   :  { %7236 = vmatprep.subr.bf16.mxu0 %v7704_v38 }
 0x3f0   :  { %7233 = vmatmul.mubr.msk.bf16.vlgmr.msra.gmra.mrb[148].mxu0 %vm281_vm1, %v3562_v5 }
 0x3f1   :  { %7237 = vmatpush3.bf16.msra.mxu0 %v7704_v38  ;;  %7238 = vmatprep.mubr.msk.bf16.mxu0 %vm281_vm1, %v3630_v31 }
 0x3f2   :  { %7242 = vmatprep.subr.bf16.mxu0 %v7705_v43 }
 0x3fc   :  { %7239 = vmatmul.mubr.msk.bf16.vlgmr.msra.gmra.mrb[148].mxu0 %vm281_vm1, %v3631_v14 }
 0x3fd   :  { %7243 = vmatpush3.bf16.msra.mxu0 %v7705_v43  ;;  %7244 = vmatprep.mubr.msk.bf16.mxu0 %vm281_vm1, %v3699_v16 }
 0x3fe   :  { %7248 = vmatprep.subr.bf16.mxu0 %v7706_v59 }
 0x408   :  { %7245 = vmatmul.mubr.msk.bf16.vlgmr.msra.gmra.mrb[148].mxu0 %vm281_vm1, %v3700_v11 }
 0x409   :  { %7249 = vmatpush3.bf16.msra.mxu0 %v7706_v59  ;;  %7250 = vmatprep.mubr.msk.bf16.mxu0 %vm281_vm1, %v3768_v13 }
 0x40a   :  { %7254 = vmatprep.subr.bf16.mxu0 %v7707_v22 }
 0x414   :  { %7251 = vmatmul.mubr.msk.bf16.vlgmr.msra.gmra.mrb[148].mxu0 %vm281_vm1, %v3769_v15 }
 0x415   :  { %7255 = vmatpush3.bf16.msra.mxu0 %v7707_v22  ;;  %7256 = vmatprep.mubr.msk.bf16.mxu0 %vm281_vm1, %v3837_v36 }
 0x416   :  { %7260 = vmatprep.subr.bf16.mxu0 %v7708_v52 }
 0x420   :  { %7257 = vmatmul.mubr.msk.bf16.vlgmr.msra.gmra.mrb[148].mxu0 %vm281_vm1, %v3838_v30 }
 0x421   :  { %7261 = vmatpush3.bf16.msra.mxu0 %v7708_v52  ;;  %7262 = vmatprep.mubr.msk.bf16.mxu0 %vm281_vm1, %v3906_v49 }
 0x422   :  { %4148 = vmatprep.subr.bf16.mxu0 %v7717_v20 }
 0x42c   :  { %7263 = vmatmul.mubr.msk.bf16.vlgmr.msra.gmra.mrb[148].mxu0 %vm281_vm1, %v3907_v51  ;;  %v3975_v51 = vld [vmem:[%s9512_s10] sm:$0x3] }
 0x42d   :  { %4180 = vmatprep.mubr.bf16.mxu0 %v7820_v19  ;;  %4149 = vmatpush1.bf16.msra.mxu0 %v7715_v4 }
 0x42e   :  { %4150 = vmatprep.subr.bf16.mxu0 %v7720_v21 }
 0x431   :  { %4151 = vmatpush1.bf16.msra.mxu0 %v7718_v54 }
 0x432   :  { %6940 = vmatprep.subr.bf16.mxu0 %v7721_v24 }
 0x443   :  { %v2330_v58 = vpop.f32.mrb[144].mxu0 }
 0x444   :  { %v2331_v26 = vadd.f32 %v6327_v32, %v2330_v58  ;;  %v7089_v23 = vpop.f32.mrb[145].mxu0 }
 0x446   :  { %6185 = vst.msk [vmem:[%s9510_s24] sm:$0x3] %vm6184_vm3, %v2331_v26 }
 0x4ff   :  { %v7264_v1 = vpop.f32.mrb[148].mxu0 }
 0x500   :  { %v3956_v2 = vpop.f32.mrb[149].mxu0  ;;  %v3992_v0 = vmul.f32 %v7264_v1, %v7264_v1  ;;  %v3980_v14 = vsel %vm3976_vm4, %v7264_v1, 0.0 }
 0x501   :  { %v3990_v3 = vmul.f32 %v3956_v2, %v3956_v2  ;;  %v7265_v5 = vpop.f32.mrb[150].mxu0  ;;  %v3977_v55 = vsel %vm3976_vm4, %v3956_v2, 0.0 }
 0x502   :  { %v3959_v8 = vpop.f32.mrb[151].mxu0  ;;  %v3993_v31 = vmul.f32 %v7265_v5, %v7265_v5  ;;  %v3997_v60 = vsel %vm3976_vm4, %v3992_v0, 0.0  ;;  %v3982_v10 = vsel %vm3976_vm4, %v7265_v5, 0.0  ;;  %v7722_v0 = vld [vmem:[%s9511_s13 + $0x80] sm:$0xff]  }
 0x503   :  { %v3978_v29 = vsel %vm3976_vm4, %v3959_v8, 0.0  ;;  %v3991_v41 = vmul.f32 %v3959_v8, %v3959_v8  ;;  %v3994_v28 = vsel %vm3976_vm4, %v3990_v3, 0.0 }
 0x504   :  { %v3979_v9 = vadd.f32 %v3978_v29, %v3977_v55  ;;  %v3999_v12 = vsel %vm3976_vm4, %v3993_v31, 0.0  ;;  %v7724_v29 = vld [vmem:[%s9511_s13 + $0x88] sm:$0xff]   ;;  %v7727_v31 = vld [vmem:[%s9511_s13 + $0xd8] sm:$0xff]  }
 0x505   :  { %v3995_v48 = vsel %vm3976_vm4, %v3991_v41, 0.0  ;;  %v7725_v41 = vld [vmem:[%s9511_s13 + $0xd0] sm:$0xff]  }
 0x506   :  { %v3981_v56 = vadd.f32 %v3980_v14, %v3979_v9  ;;  %v3996_v46 = vadd.f32 %v3995_v48, %v3994_v28  ;;  %v7740_v9 = vld [vmem:[%s9511_s13 + $0x8] sm:$0xff]   ;;  %v7726_v14 = vld [vmem:[%s9511_s13 + $0x90] sm:$0xff]  }
 0x507   :  { %v7741_v28 = vld [vmem:[%s9511_s13 + $0x50] sm:$0xff]  }
 0x508   :  { %v3983_v53 = vadd.f32 %v3982_v10, %v3981_v56  ;;  %v3998_v11 = vadd.f32 %v3997_v60, %v3996_v46  ;;  %v7742_v48 = vld [vmem:[%s9511_s13 + $0x10] sm:$0xff]   ;;  %v7743_v56 = vld [vmem:[%s9511_s13 + $0x58] sm:$0xff]   ;;  %v7729_v60 = vld [vmem:[%s9511_s13 + $0xe0] sm:$0xff]  }
 0x509   :  { %v7728_v46 = vld [vmem:[%s9511_s13 + $0x98] sm:$0xff]  }
 0x50a   :  { %v3984_v16 = vrot.slane %v3983_v53, 4  ;;  %v4000_v17 = vadd.f32 %v3999_v12, %v3998_v11  ;;  %v7744_v10 = vld [vmem:[%s9511_s13 + $0x18] sm:$0xff]   ;;  %v7730_v11 = vld [vmem:[%s9511_s13 + $0xa0] sm:$0xff]   ;;  %v7731_v12 = vld [vmem:[%s9511_s13 + $0xe8] sm:$0xff]  }
 0x50c   :  { %v3985_v6 = vadd.f32 %v3984_v16, %v3983_v53  ;;  %v4001_v37 = vrot.slane %v4000_v17, 4  ;;  %v7745_v53 = vld [vmem:[%s9511_s13 + $0x60] sm:$0xff]  }
 0x50d   :  { %v7746_v16 = vld [vmem:[%s9511_s13 + $0x20] sm:$0xff]  }
 0x50e   :  { %v3986_v15 = vrot.slane %v3985_v6, 2  ;;  %v4002_v50 = vadd.f32 %v4001_v37, %v4000_v17  ;;  %v7747_v17 = vld [vmem:[%s9511_s13 + $0x68] sm:$0xff]   ;;  %v7733_v37 = vld [vmem:[%s9511_s13 + $0xf0] sm:$0xff]  }
 0x510   :  { %v3987_v13 = vadd.f32 %v3986_v15, %v3985_v6  ;;  %v4003_v33 = vrot.slane %v4002_v50, 2  ;;  %v7732_v6 = vld [vmem:[%s9511_s13 + $0xa8] sm:$0xff]  }
 0x511   :  { %v7748_v15 = vld [vmem:[%s9511_s13 + $0x28] sm:$0xff]  }
 0x512   :  { %v3988_v40 = vrot.slane %v3987_v13, 1  ;;  %v4004_v18 = vadd.f32 %v4003_v33, %v4002_v50  ;;  %v7734_v50 = vld [vmem:[%s9511_s13 + $0xb0] sm:$0xff]   ;;  %v7736_v33 = vld [vmem:[%s9511_s13 + $0xb8] sm:$0xff]  }
 0x514   :  { %v3989_v27 = vadd.f32 %v3988_v40, %v3987_v13  ;;  %v4005_v30 = vrot.slane %v4004_v18, 1  ;;  %v7735_v13 = vld [vmem:[%s9511_s13 + $0xf8] sm:$0xff]   ;;  %v7749_v40 = vld [vmem:[%s9511_s13 + $0x70] sm:$0xff]  }
 0x516   :  { %v4006_v35 = vadd.f32 %v4005_v30, %v4004_v18  ;;  %v4007_v36 = vmul.f32 0.03125, %v3989_v27  ;;  %v7750_v18 = vld [vmem:[%s9511_s13 + $0x30] sm:$0xff]   ;;  %v7751_v27 = vld [vmem:[%s9511_s13 + $0x78] sm:$0xff]  }
 0x517   :  { %v7752_v30 = vld [vmem:[%s9511_s13 + $0x38] sm:$0xff]  }
 0x518   :  { %v4008_v63 = vmul.f32 0.03125, %v4006_v35  ;;  %v4009_v38 = vmul.f32 %v4007_v36, %v4007_v36  ;;  %v4201_v35 = vld [vmem:[%s9514_s12] sm:$0xff] }
 0x51a   :  { %v4010_v39 = vsub.f32 %v4008_v63, %v4009_v38  ;;  %v4203_v63 = vld [vmem:[%s9514_s12 + $0x10] sm:$0xff]  ;;  %v4204_v38 = vld [vmem:[%s9514_s12 + $0x18] sm:$0xff] }
 0x51c   :  { %v4011_v45 = vadd.f32 1e-05, %v4010_v39  ;;  %v4209_v39 = vunpack.c.l.bf16 %v4201_v35 }
 0x51e   :  { %7816 = vrsqrt.f32 %v4011_v45 }
 0x528   :  { %v7817_v34 = vpop.eup %7816 }
 0x529   :  { %v4013_v49 = vmul.f32 %v7817_v34, %v3975_v51  ;;  %v4215_v34 = vunpack.c.l.bf16 %v4204_v38 }
 0x52b   :  { %v4014_v43 = vmul.f32 %v4013_v49, %v4007_v36  ;;  %v4022_v59 = vrot.slane %v4013_v49, %v8142_v47  ;;  %v4202_v36 = vld [vmem:[%s9514_s12 + $0x8] sm:$0xff] }
 0x52c   :  { %v4211_v45 = vunpack.c.l.bf16 %v4202_v36 }
 0x52d   :  { %v4016_v22 = vrot.slane %v4014_v43, 7  ;;  %v4023_v52 = vmul.f32 %v4022_v59, %v3956_v2  ;;  %v4024_v32 = vmul.f32 %v4022_v59, %v3959_v8  ;;  %v4025_v58 = vmul.f32 %v7264_v1, %v4022_v59  ;;  %v7723_v1 = vld [vmem:[%s9511_s13 + $0xc8] sm:$0xff]  }
 0x52e   :  { %v4026_v26 = vmul.f32 %v7265_v5, %v4022_v59  ;;  %v7738_v5 = vld [vmem:[%s9511_s13] sm:$0xff]   ;;  %v7739_v8 = vld [vmem:[%s9511_s13 + $0x48] sm:$0xff]   ;;  %v4210_v59 = vunpack.c.h.bf16 %v4201_v35 }
 0x52f   :  { %v4018_v23 = vsub.f32 %v3975_v51, %v4016_v22  ;;  %v4213_v51 = vunpack.c.l.bf16 %v4203_v63  ;;  %v4212_v22 = vunpack.c.h.bf16 %v4202_v36 }
 0x531   :  { %v4030_v61 = vrot.slane %v4018_v23, %v8146_v57 }
 0x533   :  { %v4031_v62 = vadd.f32 %v4030_v61, %v4023_v52  ;;  %v4032_v20 = vadd.f32 %v4030_v61, %v4024_v32  ;;  %v4033_v4 = vadd.f32 %v4030_v61, %v4025_v58  ;;  %v4034_v21 = vadd.f32 %v4030_v61, %v4026_v26 }
 0x534   :  { %v4214_v52 = vunpack.c.h.bf16 %v4203_v63  ;;  %v4216_v32 = vunpack.c.h.bf16 %v4204_v38 }
 0x535   :  { %v4035_v54 = vmax.f32 %v4031_v62, 0.0  ;;  %v4036_v24 = vmax.f32 %v4032_v20, 0.0  ;;  %v4037_v25 = vmax.f32 %v4033_v4, 0.0  ;;  %v4038_v3 = vmax.f32 %v4034_v21, 0.0 }
 0x537   :  { %v9016_v55 = vpack.c.bf16 %v4036_v24, %v4035_v54  ;;  %v9021_v2 = vpack.c.bf16 %v4038_v3, %v4037_v25  ;;  %v4205_v25 = vld [vmem:[%s9514_s12 + $0x20] sm:$0xff] }
 0x539   :  { %6416 = vmatmul.mubr.msk.bf16.vlgmr.msra.gmra.mrb[192].mxu1 %vm3976_vm4, %v9016_v55  ;;  %6418 = vmatmul.mubr.msk.bf16.vlgmr.msra.gmra.mrb[152].mxu0 %vm3976_vm4, %v9016_v55 }
 0x53a   :  { %6941 = vmatpush3.bf16.msra.mxu0 %v7722_v0  ;;  %4137 = vmatprep.mubr.bf16.mxu1 %v7820_v19 }
 0x53b   :  { %6942 = vmatprep.subr.bf16.mxu0 %v7723_v1  ;;  %4190 = vmatprep.mubr.bf16.mxu0 %v7820_v19 }
 0x53c   :  { %6913 = vmatpush3.bf16.msra.mxu1 %v7738_v5 }
 0x53d   :  { %6914 = vmatprep.subr.bf16.mxu1 %v7739_v8  ;;  %v4206_v8 = vld [vmem:[%s9514_s12 + $0x28] sm:$0xff] }
 0x53e   :  { %6943 = vmatpush3.bf16.msra.mxu0 %v7724_v29  ;;  %v4207_v29 = vld [vmem:[%s9514_s12 + $0x30] sm:$0xff] }
 0x53f   :  { %6944 = vmatprep.subr.bf16.mxu0 %v7725_v41  ;;  %v4208_v41 = vld [vmem:[%s9514_s12 + $0x38] sm:$0xff] }
 0x540   :  { %6915 = vmatpush3.bf16.msra.mxu1 %v7740_v9 }
 0x541   :  { %6417 = vmatmul.mubr.msk.bf16.gmra.mrb[196].mxu1 %vm3976_vm4, %v9021_v2  ;;  %6419 = vmatmul.mubr.msk.bf16.gmra.mrb[156].mxu0 %vm3976_vm4, %v9021_v2 }
 0x542   :  { %6945 = vmatpush3.bf16.msra.mxu0 %v7726_v14  ;;  %6916 = vmatprep.subr.bf16.mxu1 %v7741_v28 }
 0x543   :  { %6946 = vmatprep.subr.bf16.mxu0 %v7727_v31 }
 0x544   :  { %6917 = vmatpush3.bf16.msra.mxu1 %v7742_v48  ;;  %v4217_v48 = vunpack.c.l.bf16 %v4205_v25 }
 0x545   :  { %6918 = vmatprep.subr.bf16.mxu1 %v7743_v56  ;;  %v4219_v56 = vunpack.c.l.bf16 %v4206_v8 }
 0x546   :  { %6947 = vmatpush3.bf16.msra.mxu0 %v7728_v46  ;;  %v4221_v46 = vunpack.c.l.bf16 %v4207_v29 }
 0x547   :  { %6948 = vmatprep.subr.bf16.mxu0 %v7729_v60  ;;  %v4223_v60 = vunpack.c.l.bf16 %v4208_v41 }
 0x548   :  { %6919 = vmatpush3.bf16.msra.mxu1 %v7744_v10 }
 0x549   :  { %6920 = vmatprep.subr.bf16.mxu1 %v7745_v53 }
 0x54a   :  { %6949 = vmatpush3.bf16.msra.mxu0 %v7730_v11  ;;  %v4218_v11 = vunpack.c.h.bf16 %v4205_v25 }
 0x54b   :  { %6950 = vmatprep.subr.bf16.mxu0 %v7731_v12  ;;  %v4220_v12 = vunpack.c.h.bf16 %v4206_v8 }
 0x54c   :  { %6921 = vmatpush3.bf16.msra.mxu1 %v7746_v16  ;;  %v4222_v16 = vunpack.c.h.bf16 %v4207_v29 }
 0x54d   :  { %6922 = vmatprep.subr.bf16.mxu1 %v7747_v17  ;;  %v4224_v17 = vunpack.c.h.bf16 %v4208_v41 }
 0x54e   :  { %6951 = vmatpush3.bf16.msra.mxu0 %v7732_v6 }
 0x54f   :  { %6952 = vmatprep.subr.bf16.mxu0 %v7733_v37 }
 0x550   :  { %6923 = vmatpush3.bf16.msra.mxu1 %v7748_v15 }
 0x551   :  { %6924 = vmatprep.subr.bf16.mxu1 %v7749_v40 }
 0x552   :  { %6953 = vmatpush3.bf16.msra.mxu0 %v7734_v50 }
 0x553   :  { %6954 = vmatprep.subr.bf16.mxu0 %v7735_v13 }
 0x554   :  { %6925 = vmatpush3.bf16.msra.mxu1 %v7750_v18 }
 0x555   :  { %6926 = vmatprep.subr.bf16.mxu1 %v7751_v27 }
 0x556   :  { %6955 = vmatpush3.bf16.msra.mxu0 %v7736_v33 }
 0x557   :  { %7277 = vmatprep.subr.bf16.mxu0 %v9016_v55 }
 0x558   :  { %6927 = vmatpush3.bf16.msra.mxu1 %v7752_v30 }
 0x559   :  { %7454 = vmatprep.subr.bf16.mxu1 %v7821_v42 }
 0x60c   :  { %v4129_v49 = vpop.f32.mrb[192].mxu1  ;;  %v4182_v43 = vpop.f32.mrb[152].mxu0 }
 0x60d   :  { %v4131_v58 = vpop.f32.mrb[193].mxu1  ;;  %v4184_v26 = vpop.f32.mrb[153].mxu0  ;;  %v4225_v62 = vmul.f32 %v4209_v39, %v4129_v49  ;;  %v4227_v20 = vmul.f32 %v4211_v45, %v4182_v43  ;;  %v7754_v49 = vld [vmem:[%s9513_s16 + $0x8] sm:$0xff]   ;;  %v7756_v43 = vld [vmem:[%s9513_s16 + $0x18] sm:$0xff]  }
 0x60e   :  { %v4133_v23 = vpop.f32.mrb[194].mxu1  ;;  %v4186_v61 = vpop.f32.mrb[154].mxu0  ;;  %v4226_v3 = vmul.f32 %v4210_v59, %v4131_v58  ;;  %v4228_v0 = vmul.f32 %v4212_v22, %v4184_v26  ;;  %v7757_v59 = vld [vmem:[%s9513_s16 + $0x20] sm:$0xff]   ;;  %v7758_v22 = vld [vmem:[%s9513_s16 + $0x28] sm:$0xff]  }
 0x60f   :  { %v4229_v4 = vmul.f32 %v4213_v51, %v4133_v23  ;;  %v4231_v21 = vmul.f32 %v4215_v34, %v4186_v61  ;;  %v4135_v54 = vpop.f32.mrb[195].mxu1  ;;  %v4188_v24 = vpop.f32.mrb[155].mxu0 }
 0x610   :  { %v4230_v1 = vmul.f32 %v4214_v52, %v4135_v54  ;;  %v4232_v5 = vmul.f32 %v4216_v32, %v4188_v24  ;;  %v7759_v52 = vld [vmem:[%s9513_s16 + $0x30] sm:$0xff]   ;;  %v7760_v32 = vld [vmem:[%s9513_s16 + $0x38] sm:$0xff]  }
 0x611   :  { %v4241_v9 = vpack.c.bf16 %v4229_v4, %v4225_v62  ;;  %v4243_v14 = vpack.c.bf16 %v4231_v21, %v4227_v20 }
 0x612   :  { %v4242_v28 = vpack.c.bf16 %v4230_v1, %v4226_v3  ;;  %v4244_v31 = vpack.c.bf16 %v4232_v5, %v4228_v0 }
 0x614   :  { %v4139_v10 = vpop.f32.mrb[196].mxu1  ;;  %v4192_v53 = vpop.f32.mrb[156].mxu0  ;;  %4537 = vmatprep.mubr.bf16.mxu1 %v4242_v28  ;;  %4586 = vmatprep.mubr.bf16.mxu0 %v4244_v31 }
 0x615   :  { %v4141_v6 = vpop.f32.mrb[197].mxu1  ;;  %v4194_v37 = vpop.f32.mrb[157].mxu0  ;;  %4538 = vmatmul.mubr.bf16.vlgmr.msra.gmra.mrb[200].mxu1 %v4241_v9  ;;  %4587 = vmatmul.mubr.bf16.vlgmr.msra.gmra.mrb[160].mxu0 %v4243_v14  ;;  %v4233_v13 = vmul.f32 %v4217_v48, %v4139_v10  ;;  %v4235_v33 = vmul.f32 %v4219_v56, %v4192_v53 }
 0x616   :  { %7278 = vmatpush3.bf16.msra.mxu0 %v9016_v55  ;;  %v4143_v15 = vpop.f32.mrb[198].mxu1  ;;  %v4196_v50 = vpop.f32.mrb[158].mxu0  ;;  %v4234_v35 = vmul.f32 %v4218_v11, %v4141_v6  ;;  %v4236_v36 = vmul.f32 %v4220_v12, %v4194_v37  ;;  %v7753_v55 = vld [vmem:[%s9513_s16] sm:$0xff]  }
 0x617   :  { %v4237_v40 = vmul.f32 %v4221_v46, %v4143_v15  ;;  %v4239_v18 = vmul.f32 %v4223_v60, %v4196_v50  ;;  %7279 = vmatprep.subr.bf16.mxu0 %v9021_v2  ;;  %v4145_v27 = vpop.f32.mrb[199].mxu1  ;;  %v4198_v30 = vpop.f32.mrb[159].mxu0  ;;  %v4603_v6 = vld [vmem:[%s9516_s15] sm:$0x3]  ;;  %v7761_v15 = vld [vmem:[%s9515_s17 + $0x10] sm:$0xff]   ;;  %v7762_v50 = vld [vmem:[%s9515_s17 + $0x18] sm:$0xff]  }
 0x618   :  { %v4238_v63 = vmul.f32 %v4222_v16, %v4145_v27  ;;  %v4240_v38 = vmul.f32 %v4224_v17, %v4198_v30 }
 0x619   :  { %v4245_v39 = vpack.c.bf16 %v4237_v40, %v4233_v13  ;;  %v4247_v45 = vpack.c.bf16 %v4239_v18, %v4235_v33  ;;  %v7763_v40 = vld [vmem:[%s9515_s17] sm:$0xff]  }
 0x61a   :  { %v4246_v51 = vpack.c.bf16 %v4238_v63, %v4234_v35  ;;  %v4248_v34 = vpack.c.bf16 %v4240_v38, %v4236_v36  ;;  %7280 = vmatpush3.bf16.msra.mxu0 %v9021_v2  ;;  %v7755_v2 = vld [vmem:[%s9513_s16 + $0x10] sm:$0xff]   ;;  %v7764_v35 = vld [vmem:[%s9515_s17 + $0x8] sm:$0xff]  }
 0x61c   :  { %4545 = vmatprep.mubr.bf16.mxu1 %v4246_v51  ;;  %4594 = vmatprep.mubr.bf16.mxu0 %v4248_v34 }
 0x61d   :  { %4546 = vmatmul.mubr.bf16.gmra.mrb[204].mxu1 %v4245_v39  ;;  %4595 = vmatmul.mubr.bf16.gmra.mrb[164].mxu0 %v4247_v45  ;;  %v7765_v45 = vld [vmem:[%s9515_s17 + $0x20] sm:$0xff]  }
 0x61e   :  { %7281 = vmatprep.mubr.msk.bf16.mxu0 %vm3976_vm4, %v7753_v55  ;;  %7274 = vmatprep.mubr.msk.f32.mxu1 %vm7822_vm2, %v7823_v7 }
 0x625   :  { %7282 = vmatmul.mubr.msk.bf16.vlgmr.msra.gmra.mrb[168].mxu0 %vm3976_vm4, %v7754_v49  ;;  %v7766_v49 = vld [vmem:[%s9515_s17 + $0x28] sm:$0xff]  }
 0x626   :  { %7285 = vmatprep.mubr.msk.bf16.mxu0 %vm3976_vm4, %v7755_v2 }
 0x62d   :  { %7286 = vmatmul.mubr.msk.bf16.gmra.mrb[172].mxu0 %vm3976_vm4, %v7756_v43 }
 0x62e   :  { %7289 = vmatprep.mubr.msk.bf16.mxu0 %vm3976_vm4, %v7757_v59  ;;  %v7767_v59 = vld [vmem:[%s9515_s17 + $0x30] sm:$0xff]  }
 0x635   :  { %7290 = vmatmul.mubr.msk.bf16.gmra.mrb[176].mxu0 %vm3976_vm4, %v7758_v22 }
 0x636   :  { %7293 = vmatprep.mubr.msk.bf16.mxu0 %vm3976_vm4, %v7759_v52  ;;  %v7768_v52 = vld [vmem:[%s9515_s17 + $0x38] sm:$0xff]  }
 0x63d   :  { %7294 = vmatmul.mubr.msk.bf16.gmra.mrb[180].mxu0 %vm3976_vm4, %v7760_v32  ;;  %v7769_v32 = vld [vmem:[%s9515_s17 + $0x40] sm:$0xff]  }
 0x63e   :  { %5946 = vmatprep.mubr.bf16.mxu0 %v7820_v19 }
 0x6e8   :  { %v6928_v58 = vpop.f32.mrb[200].mxu1  ;;  %v6956_v26 = vpop.f32.mrb[160].mxu0 }
 0x6e9   :  { %v6929_v23 = vpop.f32.mrb[201].mxu1  ;;  %v6957_v61 = vpop.f32.mrb[161].mxu0 }
 0x6ea   :  { %v6930_v62 = vadd.f32 %v6929_v23, %v6928_v58  ;;  %v6958_v20 = vadd.f32 %v6957_v61, %v6956_v26  ;;  %v6931_v4 = vpop.f32.mrb[202].mxu1  ;;  %v6959_v21 = vpop.f32.mrb[162].mxu0  ;;  %v7770_v26 = vld [vmem:[%s9515_s17 + $0x48] sm:$0xff]   ;;  %v7771_v61 = vld [vmem:[%s9515_s17 + $0x50] sm:$0xff]  }
 0x6eb   :  { %v6932_v54 = vpop.f32.mrb[203].mxu1  ;;  %v6960_v24 = vpop.f32.mrb[163].mxu0 }
 0x6ec   :  { %v4589_v25 = vadd.f32 %v6958_v20, %v6930_v62  ;;  %v6933_v3 = vadd.f32 %v6932_v54, %v6931_v4  ;;  %v6961_v0 = vadd.f32 %v6960_v24, %v6959_v21  ;;  %v7772_v62 = vld [vmem:[%s9515_s17 + $0x58] sm:$0xff]   ;;  %v7773_v20 = vld [vmem:[%s9515_s17 + $0x60] sm:$0xff]   ;;  %v7774_v21 = vld [vmem:[%s9515_s17 + $0x68] sm:$0xff]  }
 0x6ed   :  { %v7775_v54 = vld [vmem:[%s9515_s17 + $0x70] sm:$0xff]  }
 0x6ee   :  { %v4592_v1 = vadd.f32 %v6961_v0, %v6933_v3  ;;  %v7777_v3 = vld [vmem:[%s9515_s17 + $0x80] sm:$0xff]  }
 0x6f0   :  { %v7455_v5 = vpack.c.bf16 %v4592_v1, %v4589_v25  ;;  %v6934_v8 = vpop.f32.mrb[204].mxu1  ;;  %v6962_v29 = vpop.f32.mrb[164].mxu0  ;;  %v7776_v25 = vld [vmem:[%s9515_s17 + $0x78] sm:$0xff]   ;;  %v7778_v1 = vld [vmem:[%s9515_s17 + $0x88] sm:$0xff]  }
 0x6f1   :  { %v6935_v41 = vpop.f32.mrb[205].mxu1  ;;  %v6963_v9 = vpop.f32.mrb[165].mxu0 }
 0x6f2   :  { %v6936_v14 = vadd.f32 %v6935_v41, %v6934_v8  ;;  %v6964_v28 = vadd.f32 %v6963_v9, %v6962_v29  ;;  %v6937_v31 = vpop.f32.mrb[206].mxu1  ;;  %v6965_v48 = vpop.f32.mrb[166].mxu0  ;;  %7456 = vmatpush3.bf16.msra.mxu1 %v7455_v5  ;;  %v7779_v8 = vld [vmem:[%s9515_s17 + $0x90] sm:$0xff]   ;;  %v7780_v29 = vld [vmem:[%s9515_s17 + $0x98] sm:$0xff]   ;;  %v7781_v41 = vld [vmem:[%s9515_s17 + $0xa0] sm:$0xff]  }
 0x6f3   :  { %v6938_v56 = vpop.f32.mrb[207].mxu1  ;;  %v6966_v46 = vpop.f32.mrb[167].mxu0  ;;  %7457 = vmatprep.subr.bf16.mxu1 %v7821_v42 }
 0x6f4   :  { %v4597_v60 = vadd.f32 %v6964_v28, %v6936_v14  ;;  %v6939_v10 = vadd.f32 %v6938_v56, %v6937_v31  ;;  %v6967_v53 = vadd.f32 %v6966_v46, %v6965_v48  ;;  %v7782_v14 = vld [vmem:[%s9515_s17 + $0xa8] sm:$0xff]   ;;  %v7783_v28 = vld [vmem:[%s9515_s17 + $0xb0] sm:$0xff]   ;;  %v7784_v48 = vld [vmem:[%s9515_s17 + $0xb8] sm:$0xff]  }
 0x6f5   :  { %v7785_v56 = vld [vmem:[%s9515_s17 + $0xc0] sm:$0xff]  }
 0x6f6   :  { %v4600_v11 = vadd.f32 %v6967_v53, %v6939_v10  ;;  %v7787_v53 = vld [vmem:[%s9515_s17 + $0xd0] sm:$0xff]  }
 0x6f8   :  { %v7458_v12 = vpack.c.bf16 %v4600_v11, %v4597_v60  ;;  %v7283_v16 = vpop.f32.mrb[168].mxu0  ;;  %v7786_v60 = vld [vmem:[%s9515_s17 + $0xc8] sm:$0xff]   ;;  %v7788_v11 = vld [vmem:[%s9515_s17 + $0xd8] sm:$0xff]  }
 0x6f9   :  { %v4798_v17 = vpop.f32.mrb[169].mxu0  ;;  %v4981_v22 = vpack.c.bf16 %v7283_v16, %v7283_v16 }
 0x6fa   :  { %7459 = vmatpush3.bf16.msra.mxu1 %v7458_v12  ;;  %v7284_v37 = vpop.f32.mrb[170].mxu0  ;;  %v4861_v51 = vpack.c.bf16 %v4798_v17, %v4798_v17  ;;  %v7789_v12 = vld [vmem:[%s9515_s17 + $0xe0] sm:$0xff]   ;;  %v7790_v17 = vld [vmem:[%s9515_s17 + $0xe8] sm:$0xff]  }
 0x6fb   :  { %7297 = vmatprep.subr.bf16.mxu1 %v7823_v7  ;;  %v4801_v42 = vpop.f32.mrb[171].mxu0  ;;  %v5042_v58 = vpack.c.bf16 %v7284_v37, %v7284_v37 }
 0x6fc   :  { %v4866_v27 = vpack.c.bf16 %v4801_v42, %v4801_v42 }
 0x6fd   :  { %7275 = vmatmul.mubr.msk.f32.vlgmr.msra.gmra.mrb[208].mxu1 %vm3976_vm4, %v4603_v6  ;;  %v7791_v6 = vld [vmem:[%s9515_s17 + $0xf0] sm:$0xff]  }
 0x6fe   :  { %7298 = vmatpush3.bf16.msra.mxu1 %v7761_v15  ;;  %7301 = vmatprep.mubr.msk.bf16.mxu1 %vm7822_vm2, %v7823_v7  ;;  %v7792_v15 = vld [vmem:[%s9515_s17 + $0xf8] sm:$0xff]   ;;  %s7825_s17 = smov 64  }
 0x6ff   :  { %7299 = vmatprep.subr.bf16.mxu1 %v7823_v7 }
 0x700   :  { %v9196_v13 = vpop.f32.mrb[172].mxu0 }
 0x701   :  { %v4814_v33 = vpop.f32.mrb[173].mxu0  ;;  %v5225_v24 = vpack.c.bf16 %v9196_v13, %v9196_v13 }
 0x702   :  { %7300 = vmatpush3.bf16.msra.mxu1 %v7762_v50  ;;  %v9201_v18 = vpop.f32.mrb[174].mxu0  ;;  %v5103_v23 = vpack.c.bf16 %v4814_v33, %v4814_v33  ;;  %v7824_v50 = vmov 1983009808  }
 0x703   :  { %7305 = vmatprep.subr.bf16.mxu1 %v7823_v7  ;;  %v4817_v30 = vpop.f32.mrb[175].mxu0  ;;  %v5286_v0 = vpack.c.bf16 %v9201_v18, %v9201_v18  ;;  %v6188_v13 = vunpack.c.l.s4 %v7824_v50  ;;  %v7812_v50 = vld [vmem:[%s9519_s21 + $0x50] sm:$0xff]  }
 0x704   :  { %v5164_v4 = vpack.c.bf16 %v4817_v30, %v4817_v30 }
 0x705   :  { %7302 = vmatmul.mubr.msk.bf16.vlgmr.msra.gmra.mrb[212].mxu1 %vm3976_vm4, %v4866_v27  ;;  %v6189_v33 = vunpack.c.0.s8 %v6188_v13  ;;  %v7813_v13 = vld [vmem:[%s9519_s21 + $0x58] sm:$0xff]  }
 0x706   :  { %7306 = vmatpush3.bf16.msra.mxu1 %v7763_v40  ;;  %7309 = vmatprep.mubr.msk.bf16.mxu1 %vm7822_vm2, %v7823_v7  ;;  %v6452_v40 = vld [vmem:[%s9517_s14] ss:$0 sm:$0xff] }
 0x707   :  { %7307 = vmatprep.subr.bf16.mxu1 %v7823_v7  ;;  %v6192_v18 = vsub.s32 %v6189_v33, %v8136_v44  ;;  %v7798_v44 = vld [vmem:[%s9518_s19 + $0x14] ss:$8 sps:$4 sm:$0xff]   ;;  %v5955_v33 = vld [vmem:[%s9521_s20] sm:$0xff] }
 0x708   :  { %v9211_v36 = vpop.f32.mrb[176].mxu0 }
 0x709   :  { %v9213_v63 = vpop.f32.mrb[177].mxu0  ;;  %v5469_v31 = vpack.c.bf16 %v9211_v36, %v9211_v36 }
 0x70a   :  { %7308 = vmatpush3.bf16.msra.mxu1 %v7764_v35  ;;  %v9215_v38 = vpop.f32.mrb[178].mxu0  ;;  %v5347_v5 = vpack.c.bf16 %v9213_v63, %v9213_v63  ;;  %v7795_v63 = vld [vmem:[%s9518_s19 + $0x4] ss:$8 sps:$4 sm:$0xff]  }
 0x70b   :  { %7313 = vmatprep.subr.bf16.mxu1 %v7823_v7  ;;  %v9218_v39 = vpop.f32.mrb[179].mxu0  ;;  %v5530_v46 = vpack.c.bf16 %v9215_v38, %v9215_v38  ;;  %v7793_v38 = vld [vmem:[%s9518_s19] ss:$8 sps:$4 sm:$0xff]   ;;  %5914 = vmatprep.subr.bf16.mxu0 %v7795_v63 }
 0x70c   :  { %v5408_v9 = vpack.c.bf16 %v9218_v39, %v9218_v39  ;;  %5915 = vmatpush1.bf16.msra.mxu0 %v7793_v38  ;;  %v7796_v39 = vld [vmem:[%s9518_s19 + $0x10] ss:$8 sps:$4 sm:$0xff]  }
 0x70d   :  { %5916 = vmatprep.subr.bf16.mxu0 %v7798_v44 }
 0x710   :  { %v9223_v34 = vpop.f32.mrb[180].mxu0  ;;  %5917 = vmatpush1.bf16.msra.mxu0 %v7796_v39 }
 0x711   :  { %7310 = vmatmul.mubr.msk.bf16.vlgmr.msra.gmra.mrb[212].mxu1 %vm3976_vm4, %v4861_v51  ;;  %v9226_v55 = vpop.f32.mrb[181].mxu0  ;;  %v5713_v37 = vpack.c.bf16 %v9223_v34, %v9223_v34  ;;  %v7799_v51 = vld [vmem:[%s9518_s19 + $0x20] ss:$8 sps:$4 sm:$0xff]  }
 0x712   :  { %7314 = vmatpush3.bf16.msra.mxu1 %v7765_v45  ;;  %7317 = vmatprep.mubr.msk.bf16.mxu1 %vm7822_vm2, %v7823_v7  ;;  %v9233_v2 = vpop.f32.mrb[182].mxu0  ;;  %v5591_v10 = vpack.c.bf16 %v9226_v55, %v9226_v55  ;;  %v7801_v45 = vld [vmem:[%s9518_s19 + $0x24] ss:$8 sps:$4 sm:$0xff]  }
 0x713   :  { %7315 = vmatprep.subr.bf16.mxu1 %v7823_v7  ;;  %v9236_v43 = vpop.f32.mrb[183].mxu0  ;;  %v5774_v42 = vpack.c.bf16 %v9233_v2, %v9233_v2  ;;  %5918 = vmatprep.subr.bf16.mxu0 %v7801_v45 }
 0x714   :  { %v5652_v16 = vpack.c.bf16 %v9236_v43, %v9236_v43  ;;  %5919 = vmatpush1.bf16.msra.mxu0 %v7799_v51 }
 0x715   :  { %6062 = vmatprep.subr.bf16.mxu0 %v7820_v19 }
 0x716   :  { %7316 = vmatpush3.bf16.msra.mxu1 %v7766_v49 }
 0x717   :  { %7321 = vmatprep.subr.bf16.mxu1 %v7823_v7 }
 0x71d   :  { %7318 = vmatmul.mubr.msk.bf16.vlgmr.msra.gmra.mrb[212].mxu1 %vm3976_vm4, %v4981_v22 }
 0x71e   :  { %7322 = vmatpush3.bf16.msra.mxu1 %v7767_v59  ;;  %7325 = vmatprep.mubr.msk.bf16.mxu1 %vm7822_vm2, %v7823_v7 }
 0x71f   :  { %7323 = vmatprep.subr.bf16.mxu1 %v7823_v7 }
 0x722   :  { %7324 = vmatpush3.bf16.msra.mxu1 %v7768_v52 }
 0x723   :  { %7329 = vmatprep.subr.bf16.mxu1 %v7823_v7 }
 0x729   :  { %7326 = vmatmul.mubr.msk.bf16.vlgmr.msra.gmra.mrb[212].mxu1 %vm3976_vm4, %v5042_v58 }
 0x72a   :  { %7330 = vmatpush3.bf16.msra.mxu1 %v7769_v32  ;;  %7333 = vmatprep.mubr.msk.bf16.mxu1 %vm7822_vm2, %v7823_v7 }
 0x72b   :  { %7331 = vmatprep.subr.bf16.mxu1 %v7823_v7 }
 0x72e   :  { %7332 = vmatpush3.bf16.msra.mxu1 %v7770_v26 }
 0x72f   :  { %7337 = vmatprep.subr.bf16.mxu1 %v7823_v7 }
 0x735   :  { %7334 = vmatmul.mubr.msk.bf16.vlgmr.msra.gmra.mrb[212].mxu1 %vm3976_vm4, %v5103_v23 }
 0x736   :  { %7338 = vmatpush3.bf16.msra.mxu1 %v7771_v61  ;;  %7341 = vmatprep.mubr.msk.bf16.mxu1 %vm7822_vm2, %v7823_v7 }
 0x737   :  { %7339 = vmatprep.subr.bf16.mxu1 %v7823_v7 }
 0x73a   :  { %7340 = vmatpush3.bf16.msra.mxu1 %v7772_v62 }
 0x73b   :  { %7345 = vmatprep.subr.bf16.mxu1 %v7823_v7 }
 0x741   :  { %7342 = vmatmul.mubr.msk.bf16.vlgmr.msra.gmra.mrb[212].mxu1 %vm3976_vm4, %v5164_v4 }
 0x742   :  { %7346 = vmatpush3.bf16.msra.mxu1 %v7773_v20  ;;  %7349 = vmatprep.mubr.msk.bf16.mxu1 %vm7822_vm2, %v7823_v7 }
 0x743   :  { %7347 = vmatprep.subr.bf16.mxu1 %v7823_v7 }
 0x746   :  { %7348 = vmatpush3.bf16.msra.mxu1 %v7774_v21 }
 0x747   :  { %7353 = vmatprep.subr.bf16.mxu1 %v7823_v7 }
 0x74d   :  { %7350 = vmatmul.mubr.msk.bf16.vlgmr.msra.gmra.mrb[212].mxu1 %vm3976_vm4, %v5225_v24 }
 0x74e   :  { %7354 = vmatpush3.bf16.msra.mxu1 %v7775_v54  ;;  %7357 = vmatprep.mubr.msk.bf16.mxu1 %vm7822_vm2, %v7823_v7 }
 0x74f   :  { %7355 = vmatprep.subr.bf16.mxu1 %v7823_v7 }
 0x752   :  { %7356 = vmatpush3.bf16.msra.mxu1 %v7776_v25 }
 0x753   :  { %7361 = vmatprep.subr.bf16.mxu1 %v7823_v7 }
 0x759   :  { %7358 = vmatmul.mubr.msk.bf16.vlgmr.msra.gmra.mrb[212].mxu1 %vm3976_vm4, %v5286_v0 }
 0x75a   :  { %7362 = vmatpush3.bf16.msra.mxu1 %v7777_v3  ;;  %7365 = vmatprep.mubr.msk.bf16.mxu1 %vm7822_vm2, %v7823_v7 }
 0x75b   :  { %7363 = vmatprep.subr.bf16.mxu1 %v7823_v7 }
 0x75e   :  { %7364 = vmatpush3.bf16.msra.mxu1 %v7778_v1 }
 0x75f   :  { %7369 = vmatprep.subr.bf16.mxu1 %v7823_v7 }
 0x765   :  { %7366 = vmatmul.mubr.msk.bf16.vlgmr.msra.gmra.mrb[212].mxu1 %vm3976_vm4, %v5347_v5 }
 0x766   :  { %7370 = vmatpush3.bf16.msra.mxu1 %v7779_v8  ;;  %7373 = vmatprep.mubr.msk.bf16.mxu1 %vm7822_vm2, %v7823_v7 }
 0x767   :  { %7371 = vmatprep.subr.bf16.mxu1 %v7823_v7 }
 0x76a   :  { %7372 = vmatpush3.bf16.msra.mxu1 %v7780_v29  ;;  %v5835_v29 = vld [vmem:[%s9520_s18] sm:$0x3] }
 0x76b   :  { %7377 = vmatprep.subr.bf16.mxu1 %v7823_v7 }
 0x771   :  { %7374 = vmatmul.mubr.msk.bf16.vlgmr.msra.gmra.mrb[212].mxu1 %vm3976_vm4, %v5408_v9 }
 0x772   :  { %7378 = vmatpush3.bf16.msra.mxu1 %v7781_v41  ;;  %7381 = vmatprep.mubr.msk.bf16.mxu1 %vm7822_vm2, %v7823_v7 }
 0x773   :  { %7379 = vmatprep.subr.bf16.mxu1 %v7823_v7 }
 0x776   :  { %7380 = vmatpush3.bf16.msra.mxu1 %v7782_v14 }
 0x777   :  { %7385 = vmatprep.subr.bf16.mxu1 %v7823_v7 }
 0x77d   :  { %7382 = vmatmul.mubr.msk.bf16.vlgmr.msra.gmra.mrb[212].mxu1 %vm3976_vm4, %v5469_v31 }
 0x77e   :  { %7386 = vmatpush3.bf16.msra.mxu1 %v7783_v28  ;;  %7389 = vmatprep.mubr.msk.bf16.mxu1 %vm7822_vm2, %v7823_v7 }
 0x77f   :  { %7387 = vmatprep.subr.bf16.mxu1 %v7823_v7 }
 0x782   :  { %7388 = vmatpush3.bf16.msra.mxu1 %v7784_v48 }
 0x783   :  { %7393 = vmatprep.subr.bf16.mxu1 %v7823_v7 }
 0x789   :  { %7390 = vmatmul.mubr.msk.bf16.vlgmr.msra.gmra.mrb[212].mxu1 %vm3976_vm4, %v5530_v46 }
 0x78a   :  { %7394 = vmatpush3.bf16.msra.mxu1 %v7785_v56  ;;  %7397 = vmatprep.mubr.msk.bf16.mxu1 %vm7822_vm2, %v7823_v7 }
 0x78b   :  { %7395 = vmatprep.subr.bf16.mxu1 %v7823_v7 }
 0x78e   :  { %7396 = vmatpush3.bf16.msra.mxu1 %v7786_v60 }
 0x78f   :  { %7401 = vmatprep.subr.bf16.mxu1 %v7823_v7 }
 0x795   :  { %7398 = vmatmul.mubr.msk.bf16.vlgmr.msra.gmra.mrb[212].mxu1 %vm3976_vm4, %v5591_v10 }
 0x796   :  { %7402 = vmatpush3.bf16.msra.mxu1 %v7787_v53  ;;  %7405 = vmatprep.mubr.msk.bf16.mxu1 %vm7822_vm2, %v7823_v7  ;;  %v7802_v53 = vld [vmem:[%s9519_s21] sm:$0xff]  }
 0x797   :  { %7403 = vmatprep.subr.bf16.mxu1 %v7823_v7 }
 0x79a   :  { %7404 = vmatpush3.bf16.msra.mxu1 %v7788_v11 }
 0x79b   :  { %7409 = vmatprep.subr.bf16.mxu1 %v7823_v7 }
 0x7a1   :  { %7406 = vmatmul.mubr.msk.bf16.vlgmr.msra.gmra.mrb[212].mxu1 %vm3976_vm4, %v5652_v16  ;;  %v7806_v16 = vld [vmem:[%s9519_s21 + $0x20] sm:$0xff]  }
 0x7a2   :  { %7410 = vmatpush3.bf16.msra.mxu1 %v7789_v12  ;;  %7413 = vmatprep.mubr.msk.bf16.mxu1 %vm7822_vm2, %v7823_v7  ;;  %v7803_v12 = vld [vmem:[%s9519_s21 + $0x8] sm:$0xff]  }
 0x7a3   :  { %7411 = vmatprep.subr.bf16.mxu1 %v7823_v7 }
 0x7a6   :  { %7412 = vmatpush3.bf16.msra.mxu1 %v7790_v17  ;;  %v7807_v17 = vld [vmem:[%s9519_s21 + $0x28] sm:$0xff]  }
 0x7a7   :  { %7417 = vmatprep.subr.bf16.mxu1 %v7823_v7 }
 0x7ad   :  { %7414 = vmatmul.mubr.msk.bf16.vlgmr.msra.gmra.mrb[212].mxu1 %vm3976_vm4, %v5713_v37  ;;  %v7809_v37 = vld [vmem:[%s9519_s21 + $0x38] sm:$0xff]  }
 0x7ae   :  { %7418 = vmatpush3.bf16.msra.mxu1 %v7791_v6  ;;  %7421 = vmatprep.mubr.msk.bf16.mxu1 %vm7822_vm2, %v7823_v7  ;;  %v7808_v6 = vld [vmem:[%s9519_s21 + $0x30] sm:$0xff]  }
 0x7af   :  { %7419 = vmatprep.subr.bf16.mxu1 %v7823_v7 }
 0x7b2   :  { %7420 = vmatpush3.bf16.msra.mxu1 %v7792_v15  ;;  %v7810_v15 = vld [vmem:[%s9519_s21 + $0x40] sm:$0xff]  }
 0x7b9   :  { %7422 = vmatmul.mubr.msk.bf16.vlgmr.msra.gmra.mrb[212].mxu1 %vm3976_vm4, %v5774_v42  ;;  %v7811_v42 = vld [vmem:[%s9519_s21 + $0x48] sm:$0xff]  }
 0x7d0   :  { %v4680_v27 = vpop.f32.mrb[208].mxu1 }
 0x7d1   :  { %v4681_v30 = vadd.f32 %v6452_v40, %v4680_v27  ;;  %v7276_v35 = vpop.f32.mrb[209].mxu1  ;;  %v5956_v40 = vunpack.c.l.bf16 %v5955_v33 }
 0x7d3   :  { %v6193_v36 = vrot.slane %v4681_v30, %v6192_v18  ;;  %v5957_v18 = vunpack.c.h.bf16 %v5955_v33 }
 0x7d5   :  { %6194 = vrot.lane.b32.xlu0 %v6193_v36, %s7825_s17 }
 0x847   :  { %v6195_v34 = vpop.permute.xlu0 %6194 }
 0x848   :  { %6198 = vst.msk [vmem:[%s9510_s24] sm:$0x3] %vm6197_vm5, %v6195_v34 }
 0x88c   :  { %v5828_v55 = vpop.f32.mrb[212].mxu1 }
 0x88d   :  { %v5836_v49 = vsel %vm158_vm0, %v5828_v55, 0.0  ;;  %v5843_v2 = vmul.f32 %v5828_v55, %v5828_v55  ;;  %v7423_v43 = vpop.f32.mrb[213].mxu1 }
 0x88e   :  { %v5837_v59 = vrot.slane %v5836_v49, 4  ;;  %v5831_v22 = vpop.f32.mrb[214].mxu1 }
 0x88f   :  { %v5844_v52 = vsel %vm158_vm0, %v5843_v2, 0.0  ;;  %v7424_v32 = vpop.f32.mrb[215].mxu1 }
 0x890   :  { %v5838_v58 = vadd.f32 %v5837_v59, %v5836_v49  ;;  %v5845_v26 = vrot.slane %v5844_v52, 4  ;;  %v6538_v49 = vld [vmem:[%s9523_s22] ss:$0 sm:$0xff] }
 0x892   :  { %v5839_v23 = vrot.slane %v5838_v58, 2  ;;  %v5846_v61 = vadd.f32 %v5845_v26, %v5844_v52 }
 0x894   :  { %v5840_v62 = vadd.f32 %v5839_v23, %v5838_v58  ;;  %v5847_v20 = vrot.slane %v5846_v61, 2 }
 0x896   :  { %v5841_v4 = vrot.slane %v5840_v62, 1  ;;  %v5848_v21 = vadd.f32 %v5847_v20, %v5846_v61 }
 0x898   :  { %v5842_v54 = vadd.f32 %v5841_v4, %v5840_v62  ;;  %v5849_v24 = vrot.slane %v5848_v21, 1 }
 0x89a   :  { %v5850_v25 = vadd.f32 %v5849_v24, %v5848_v21  ;;  %v5851_v3 = vmul.f32 0.125, %v5842_v54 }
 0x89c   :  { %v5852_v0 = vmul.f32 0.125, %v5850_v25  ;;  %v5853_v1 = vmul.f32 %v5851_v3, %v5851_v3 }
 0x89e   :  { %v5854_v5 = vsub.f32 %v5852_v0, %v5853_v1 }
 0x8a0   :  { %v5855_v8 = vadd.f32 1e-05, %v5854_v5 }
 0x8a2   :  { %7818 = vrsqrt.f32 %v5855_v8 }
 0x8ac   :  { %v7819_v41 = vpop.eup %7818 }
 0x8ad   :  { %v5857_v9 = vmul.f32 %v7819_v41, %v5835_v29 }
 0x8af   :  { %v5858_v14 = vmul.f32 %v5857_v9, %v5851_v3  ;;  %v5866_v31 = vrot.slane %v5857_v9, %v8142_v47  ;;  %v7804_v47 = vld [vmem:[%s9519_s21 + $0x10] sm:$0xff]  }
 0x8b1   :  { %v5860_v28 = vrot.slane %v5858_v14, 7  ;;  %v5867_v56 = vmul.f32 %v5866_v31, %v5828_v55 }
 0x8b3   :  { %v5862_v48 = vsub.f32 %v5835_v29, %v5860_v28 }
 0x8b5   :  { %v5871_v46 = vrot.slane %v5862_v48, %v8146_v57  ;;  %v7805_v57 = vld [vmem:[%s9519_s21 + $0x18] sm:$0xff]  }
 0x8b7   :  { %v5872_v60 = vadd.f32 %v5871_v46, %v5867_v56 }
 0x8b9   :  { %v5873_v10 = vmax.f32 %v5872_v60, 0.0 }
 0x8bb   :  { %v5874_v11 = vpack.c.bf16 %v5873_v10, %v5873_v10 }
 0x8bd   :  { %6524 = vmatmul.mubr.msk.bf16.vlgmr.msra.gmra.mrb[184].mxu0 %vm158_vm0, %v5874_v11 }
 0x8be   :  { %6063 = vmatpush1.bf16.msra.mxu0 %v7802_v53 }
 0x8bf   :  { %6064 = vmatprep.subr.bf16.mxu0 %v7820_v19 }
 0x8c2   :  { %6065 = vmatpush1.bf16.msra.mxu0 %v7803_v12 }
 0x8c3   :  { %6066 = vmatprep.subr.bf16.mxu0 %v7820_v19 }
 0x8c6   :  { %6067 = vmatpush1.bf16.msra.mxu0 %v7804_v47 }
 0x8c7   :  { %6068 = vmatprep.subr.bf16.mxu0 %v7820_v19 }
 0x8ca   :  { %6069 = vmatpush1.bf16.msra.mxu0 %v7805_v57 }
 0x8cb   :  { %6070 = vmatprep.subr.bf16.mxu0 %v7820_v19 }
 0x8ce   :  { %6071 = vmatpush1.bf16.msra.mxu0 %v7806_v16 }
 0x8cf   :  { %6072 = vmatprep.subr.bf16.mxu0 %v7820_v19 }
 0x8d2   :  { %6073 = vmatpush1.bf16.msra.mxu0 %v7807_v17 }
 0x8d3   :  { %6074 = vmatprep.subr.bf16.mxu0 %v7820_v19 }
 0x8d6   :  { %6075 = vmatpush1.bf16.msra.mxu0 %v7808_v6 }
 0x8d7   :  { %6076 = vmatprep.subr.bf16.mxu0 %v7820_v19 }
 0x8da   :  { %6077 = vmatpush1.bf16.msra.mxu0 %v7809_v37 }
 0x8db   :  { %6078 = vmatprep.subr.bf16.mxu0 %v7820_v19 }
 0x8de   :  { %6079 = vmatpush1.bf16.msra.mxu0 %v7810_v15 }
 0x8df   :  { %6080 = vmatprep.subr.bf16.mxu0 %v7820_v19 }
 0x8e2   :  { %6081 = vmatpush1.bf16.msra.mxu0 %v7811_v42 }
 0x8e3   :  { %6082 = vmatprep.subr.bf16.mxu0 %v7820_v19 }
 0x8e6   :  { %6083 = vmatpush1.bf16.msra.mxu0 %v7812_v50 }
 0x8e7   :  { %6084 = vmatprep.subr.bf16.mxu0 %v7820_v19  ;;  %v6102_v19 = vld [vmem:[%s9522_s23] sm:$0x3] }
 0x8ea   :  { %6085 = vmatpush1.bf16.msra.mxu0 %v7813_v13 }
 0x8eb   :  { %7425 = vmatprep.subr.mxu0 %v7823_v7 }
 0x990   :  { %v5948_v27 = vpop.f32.mrb[184].mxu0 }
 0x991   :  { %v5958_v30 = vmul.f32 %v5956_v40, %v5948_v27  ;;  %v5950_v35 = vpop.f32.mrb[185].mxu0 }
 0x992   :  { %v5959_v36 = vmul.f32 %v5957_v18, %v5950_v35  ;;  %v5952_v63 = vpop.f32.mrb[186].mxu0 }
 0x993   :  { %v5953_v38 = vpop.f32.mrb[187].mxu0  ;;  %v5960_v39 = vpack.c.bf16 %v5958_v30, %v5958_v30 }
 0x994   :  { %v5961_v44 = vpack.c.bf16 %v5959_v36, %v5959_v36 }
 0x996   :  { %6537 = vmatprep.mubr.msk.bf16.mxu0 %vm6058_vm6, %v5961_v44 }
 0x997   :  { %6095 = vmatmul.mubr.bf16.vlgmr.msra.gmra.mrb[188].mxu0 %v5960_v39 }
 0x998   :  { %7427 = vmatprep.mubr.msk.f32.mxu0 %vm7822_vm2, %v7823_v7 }
 0xa6a   :  { %v6096_v45 = vpop.f32.mrb[188].mxu0 }
 0xa6b   :  { %v6098_v51 = vpop.f32.mrb[189].mxu0  ;;  %7426 = vmatpush3.msra.mxu0 %v6096_v45 }
 0xa6c   :  { %v6099_v34 = vpop.f32.mrb[190].mxu0  ;;  %7428 = vmatmul.mubr.msk.f32.vlgmr.msra.gmra.mrb[146].mxu0 %vm6110_vm7, %v6102_v19 }
 0xa6d   :  { %v6100_v55 = vpop.f32.mrb[191].mxu0 }
 0xb3f   :  { %v6180_v2 = vpop.f32.mrb[146].mxu0 }
 0xb40   :  { %v6181_v43 = vadd.f32 %v6538_v49, %v6180_v2  ;;  %v7429_v59 = vpop.f32.mrb[147].mxu0 }
 0xb42   :  { %6199 = vst.msk [vmem:[%s9510_s24 + $0x2] sm:$0x3] %vm6184_vm3, %v6181_v43 }

</bundles_post_ra>
